<compile_context>
chip_gen: v6e
topology: v6e:2x2x1
jax: 0.10.0
libtpu: 0.0.40
codegen_flags: <defaults>
</compile_context>

<pallas_src>
import functools

import jax
import jax.numpy as jnp
from jax import lax
from jax.experimental import pallas as pl
from jax.experimental.pallas import tpu as pltpu

NEG_INF = -1e20  # same fill value as the torch module's masked_fill


# ----------------------------- in-kernel building blocks -----------------------------

def _layer_norm(x, g, b, eps=1e-5):
    """LayerNorm over the last dim, f32 math (matches nn.LayerNorm, eps=1e-5)."""
    mu = jnp.mean(x, axis=-1, keepdims=True)
    var = jnp.mean(jnp.square(x - mu), axis=-1, keepdims=True)
    return (x - mu) * lax.rsqrt(var + eps) * g + b


def _ffn(x, w1, b1, w2, b2):
    """Linear -> ReLU -> Linear on the flattened (N*L, E) slab; bf16 matmul, f32 accum."""
    n, l, e = x.shape
    x2 = x.reshape(n * l, e).astype(jnp.bfloat16)
    h = jnp.dot(x2, w1, preferred_element_type=jnp.float32) + b1
    h = jnp.maximum(h, 0.0).astype(jnp.bfloat16)
    y = jnp.dot(h, w2, preferred_element_type=jnp.float32) + b2
    return y.reshape(n, l, e)


def _mha(xq, xkv, wq, wk, wv, wo, bo, bias, heads, head_dim):
    """Multi-head attention for the full batch.

    xq: (N, Lq, E) f32, xkv: (N, Lk, E) f32
    wq/wk/wv: (E, E) bf16 block-diagonal per-head projections (1/sqrt(E) folded into wq)
    wo: (E, E) bf16, bo: (1, E) f32
    bias: additive mask (0 keep / -1e20 masked), shape (1, Lq, Lk) or (N, 1, Lk)
    """
    n, lq, e = xq.shape
    lk = xkv.shape[1]
    q2 = xq.reshape(n * lq, e).astype(jnp.bfloat16)
    kv2 = xkv.reshape(n * lk, e).astype(jnp.bfloat16)
    # One (N*L, E) @ (E, E) matmul per projection instead of heads tiny (L, dh) ones.
    qp = jnp.dot(q2, wq, preferred_element_type=jnp.float32).reshape(n, lq, e)
    kp = jnp.dot(kv2, wk, preferred_element_type=jnp.float32).reshape(n, lk, e)
    vp = jnp.dot(kv2, wv, preferred_element_type=jnp.float32).reshape(n, lk, e)

    # Move heads into the leading (batch) axis, head-major: (heads*N, L, dh).
    def heads_to_batch(x):
        return jnp.concatenate(
            [x[:, :, h * head_dim:(h + 1) * head_dim] for h in range(heads)], axis=0)

    qb = heads_to_batch(qp).astype(jnp.bfloat16)
    kb = heads_to_batch(kp).astype(jnp.bfloat16)
    vb = heads_to_batch(vp).astype(jnp.bfloat16)

    # Single batched QK^T over all heads and batch elements (scale already in wq).
    scores = jnp.einsum("bqd,bkd->bqk", qb, kb,
                        preferred_element_type=jnp.float32)       # (heads*N, Lq, Lk)
    if bias.shape[0] != 1:                                        # per-batch key mask
        bias = jnp.tile(bias, (heads, 1, 1))                      # -> (heads*N, 1, Lk)
    scores = scores + bias

    # f32 softmax; reciprocal on the EUP.
    m = jnp.max(scores, axis=-1, keepdims=True)
    p = jnp.exp(scores - m)
    inv = pl.reciprocal(jnp.sum(p, axis=-1, keepdims=True), approx=True)
    attn = (p * inv).astype(jnp.bfloat16)

    ctx_b = jnp.einsum("bqk,bkd->bqd", attn, vb,
                       preferred_element_type=jnp.float32)        # (heads*N, Lq, dh)
    # Heads back onto the feature (lane) axis, then one (N*L, E)@(E, E) output proj.
    ctx = jnp.concatenate([ctx_b[h * n:(h + 1) * n] for h in range(heads)], axis=-1)
    out = jnp.dot(ctx.reshape(n * lq, e).astype(jnp.bfloat16), wo,
                  preferred_element_type=jnp.float32) + bo
    return out.reshape(n, lq, e)


# ----------------------------- fused layer-stack kernels -----------------------------

def encoder_layer_kernel(x_ref, keep_ref,
                         wq_ref, wk_ref, wv_ref, wo_ref, bo_ref,
                         g1_ref, b1_ref, w1_ref, fb1_ref, w2_ref, fb2_ref,
                         g2_ref, b2_ref,
                         o_ref, *, heads, head_dim):
    """One encoder layer per grid step; activation resident in the output block."""
    @pl.when(pl.program_id(0) == 0)
    def _init():
        o_ref[...] = x_ref[...]

    x = o_ref[...]                                      # (N, Ls, E)
    keep = keep_ref[...]                                # (N, Ls): 1 keep / 0 pad
    bias = ((keep - 1.0) * -NEG_INF * -1.0)[:, None, :]  # 0 keep / NEG_INF pad
    bias = ((keep - 1.0) * (-NEG_INF))[:, None, :] * -1.0  # keep simple below
    bias = ((keep - 1.0) * 1e20)[:, None, :]            # (N, 1, Ls): 0 / -1e20

    attn = _mha(x, x, wq_ref[...], wk_ref[...], wv_ref[...], wo_ref[...], bo_ref[...],
                bias, heads, head_dim)
    h = _layer_norm(attn + x, g1_ref[...], b1_ref[...])   # dropout(p=0) == identity
    ff = _ffn(h, w1_ref[...], fb1_ref[...], w2_ref[...], fb2_ref[...])
    o_ref[...] = _layer_norm(ff + h, g2_ref[...], b2_ref[...])


def decoder_layer_kernel(trg_ref, enc_ref, keep_ref,
                         swq, swk, swv, swo, sbo, sg, sb,
                         cwq, cwk, cwv, cwo, cbo, g1, b1, w1, fb1, w2, fb2, g2, b2,
                         fcw_ref, fcb_ref,
                         logits_ref, x_scr, *, heads, head_dim):
    """One decoder layer per grid step; final vocab projection fused into the last step."""
    l = pl.program_id(0)

    @pl.when(l == 0)
    def _init():
        x_scr[...] = trg_ref[...]

    x = x_scr[...]                                       # (N, Lt, E)
    n, lt, e = x.shape

    # Causal additive bias rebuilt in-kernel (no dense mask DMA).
    rows = lax.broadcasted_iota(jnp.int32, (lt, lt), 0)
    cols = lax.broadcasted_iota(jnp.int32, (lt, lt), 1)
    causal_bias = jnp.where(rows >= cols, 0.0, NEG_INF)[None, :, :]      # (1, Lt, Lt)

    sattn = _mha(x, x, swq[...], swk[...], swv[...], swo[...], sbo[...],
                 causal_bias, heads, head_dim)
    q = _layer_norm(sattn + x, sg[...], sb[...])

    enc = enc_ref[...]                                   # (N, Ls, E)
    keep = keep_ref[...]                                 # (N, Ls)
    src_bias = ((keep - 1.0) * 1e20)[:, None, :]         # (N, 1, Ls)
    cattn = _mha(q, enc, cwq[...], cwk[...], cwv[...], cwo[...], cbo[...],
                 src_bias, heads, head_dim)
    h = _layer_norm(cattn + q, g1[...], b1[...])
    ff = _ffn(h, w1[...], fb1[...], w2[...], fb2[...])
    out = _layer_norm(ff + h, g2[...], b2[...])
    x_scr[...] = out

    @pl.when(l == pl.num_programs(0) - 1)
    def _final():
        vpad = fcb_ref.shape[1]
        logits = jnp.dot(out.reshape(n * lt, e).astype(jnp.bfloat16), fcw_ref[...],
                         preferred_element_type=jnp.float32) + fcb_ref[...]
        logits_ref[...] = logits.reshape(n, lt, vpad)     # lane-dense (vpad % 128 == 0)


# ----------------------------- pallas_call wrappers -----------------------------

def _wspec(*shape):
    """BlockSpec for a layer-stacked weight (layer axis squeezed out in the kernel)."""
    zeros = (0,) * len(shape)
    return pl.BlockSpec((None,) + shape, lambda l: (l,) + zeros)


def encoder_stack(x_emb, keep, p, heads, e):
    n, ls, _ = x_emb.shape
    num_layers = p["wq"].shape[0]
    hdim = p["ff_w1"].shape[2]
    dh = e // heads
    kernel = functools.partial(encoder_layer_kernel, heads=heads, head_dim=dh)
    full3 = pl.BlockSpec((n, ls, e), lambda l: (0, 0, 0))
    return pl.pallas_call(
        kernel,
        out_shape=jax.ShapeDtypeStruct((n, ls, e), jnp.float32),
        grid=(num_layers,),
        in_specs=[
            full3,                                         # embedded src (read at l==0)
            pl.BlockSpec((n, ls), lambda l: (0, 0)),       # keep vector
            _wspec(e, e), _wspec(e, e), _wspec(e, e),      # wq/wk/wv (block-diag)
            _wspec(e, e), _wspec(1, e),                    # wo, bo
            _wspec(1, e), _wspec(1, e),                    # ln1 g,b
            _wspec(e, hdim), _wspec(1, hdim),              # ffn w1,b1
            _wspec(hdim, e), _wspec(1, e),                 # ffn w2,b2
            _wspec(1, e), _wspec(1, e),                    # ln2 g,b
        ],
        out_specs=full3,                                   # resident accumulator
        compiler_params=pltpu.CompilerParams(dimension_semantics=("arbitrary",)),
    )(x_emb, keep,
      p["wq"], p["wk"], p["wv"], p["wo"], p["bo"],
      p["ln1_g"], p["ln1_b"], p["ff_w1"], p["ff_b1"], p["ff_w2"], p["ff_b2"],
      p["ln2_g"], p["ln2_b"])


def decoder_stack(x_emb, enc_out, keep, p, heads, e):
    n, lt, _ = x_emb.shape
    ls = enc_out.shape[1]
    num_layers = p["s_wq"].shape[0]
    hdim = p["c_ff_w1"].shape[2]
    vpad = p["fc_w"].shape[1]
    dh = e // heads
    kernel = functools.partial(decoder_layer_kernel, heads=heads, head_dim=dh)
    return pl.pallas_call(
        kernel,
        out_shape=jax.ShapeDtypeStruct((n, lt, vpad), jnp.float32),
        grid=(num_layers,),
        in_specs=[
            pl.BlockSpec((n, lt, e), lambda l: (0, 0, 0)),   # embedded trg
            pl.BlockSpec((n, ls, e), lambda l: (0, 0, 0)),   # encoder output
            pl.BlockSpec((n, ls), lambda l: (0, 0)),         # src keep vector
            _wspec(e, e), _wspec(e, e), _wspec(e, e),        # self-attn wq/wk/wv
            _wspec(e, e), _wspec(1, e),                      # self-attn wo, bo
            _wspec(1, e), _wspec(1, e),                      # self ln g,b
            _wspec(e, e), _wspec(e, e), _wspec(e, e),        # cross-attn wq/wk/wv
            _wspec(e, e), _wspec(1, e),                      # cross-attn wo, bo
            _wspec(1, e), _wspec(1, e),                      # ln1 g,b
            _wspec(e, hdim), _wspec(1, hdim),                # ffn w1,b1
            _wspec(hdim, e), _wspec(1, e),                   # ffn w2,b2
            _wspec(1, e), _wspec(1, e),                      # ln2 g,b
            pl.BlockSpec((e, vpad), lambda l: (0, 0)),       # fc_w (padded, bf16)
            pl.BlockSpec((1, vpad), lambda l: (0, 0)),       # fc_b (padded)
        ],
        out_specs=pl.BlockSpec((n, lt, vpad), lambda l: (0, 0, 0)),
        scratch_shapes=[pltpu.VMEM((n, lt, e), jnp.float32)],  # carried activation
        compiler_params=pltpu.CompilerParams(dimension_semantics=("arbitrary",)),
    )(x_emb, enc_out, keep,
      p["s_wq"], p["s_wk"], p["s_wv"], p["s_wo"], p["s_bo"], p["s_ln_g"], p["s_ln_b"],
      p["c_wq"], p["c_wk"], p["c_wv"], p["c_wo"], p["c_bo"],
      p["c_ln1_g"], p["c_ln1_b"], p["c_ff_w1"], p["c_ff_b1"], p["c_ff_w2"], p["c_ff_b2"],
      p["c_ln2_g"], p["c_ln2_b"],
      p["fc_w"], p["fc_b"])


# ----------------------------- model forward (glue) -----------------------------

def transformer_fwd(packed, src, trg, *, src_pad_idx, heads, e, trg_vocab):
    enc_p, dec_p = packed["encoder"], packed["decoder"]
    n, ls = src.shape
    lt = trg.shape[1]
    keep = (src != src_pad_idx).astype(jnp.float32)                      # (N, Ls)
    # Embedding gathers + positional add stay in plain JAX (pure indexing glue).
    x_src = jnp.take(enc_p["word_emb"], src, axis=0) + enc_p["pos_emb"][:ls][None]
    x_trg = jnp.take(dec_p["word_emb"], trg, axis=0) + dec_p["pos_emb"][:lt][None]
    enc_out = encoder_stack(x_src, keep, enc_p, heads, e)
    logits_pad = decoder_stack(x_trg, enc_out, keep, dec_p, heads, e)
    return logits_pad[:, :, :trg_vocab]                                   # drop lane pad


# ----------------------------- parameter init + packing -----------------------------

def _init_linear(key, in_f, out_f, scale=0.05):
    kw, kb = jax.random.split(key)
    w = scale * jax.random.normal(kw, (in_f, out_f), jnp.float32)   # input-major (= W_torch.T)
    b = scale * jax.random.normal(kb, (1, out_f), jnp.float32)
    return w, b


def _init_attn(key, e, heads):
    dh = e // heads
    k1, k2, k3, k4 = jax.random.split(key, 4)
    wq = 0.1 * jax.random.normal(k1, (dh, dh), jnp.float32)
    wk = 0.1 * jax.random.normal(k2, (dh, dh), jnp.float32)
    wv = 0.1 * jax.random.normal(k3, (dh, dh), jnp.float32)
    wo, bo = _init_linear(k4, e, e)
    return {"wq": wq, "wk": wk, "wv": wv, "wo": wo, "bo": bo}


def _init_tblock(key, e, heads, fe):
    k1, k2, k3 = jax.random.split(key, 3)
    w1, b1 = _init_linear(k2, e, fe * e)
    w2, b2 = _init_linear(k3, fe * e, e)
    return {
        "attn": _init_attn(k1, e, heads),
        "ln1_g": jnp.ones((1, e), jnp.float32), "ln1_b": jnp.zeros((1, e), jnp.float32),
        "ln2_g": jnp.ones((1, e), jnp.float32), "ln2_b": jnp.zeros((1, e), jnp.float32),
        "ff_w1": w1, "ff_b1": b1, "ff_w2": w2, "ff_b2": b2,
    }


def _init_decblock(key, e, heads, fe):
    k1, k2 = jax.random.split(key)
    return {
        "attn": _init_attn(k1, e, heads),
        "ln_g": jnp.ones((1, e), jnp.float32), "ln_b": jnp.zeros((1, e), jnp.float32),
        "tblock": _init_tblock(k2, e, heads, fe),
    }


def init_transformer(key, src_vocab, trg_vocab, e, heads, fe, num_layers, max_len):
    ke, kd = jax.random.split(key)
    ke_keys = jax.random.split(ke, 2 + num_layers)
    enc = {
        "word_emb": 0.1 * jax.random.normal(ke_keys[0], (src_vocab, e), jnp.float32),
        "pos_emb": 0.1 * jax.random.normal(ke_keys[1], (max_len, e), jnp.float32),
        "layers": [_init_tblock(k, e, heads, fe) for k in ke_keys[2:]],
    }
    kd_keys = jax.random.split(kd, 3 + num_layers)
    fc_w, fc_b = _init_linear(kd_keys[2], e, trg_vocab)
    dec = {
        "word_emb": 0.1 * jax.random.normal(kd_keys[0], (trg_vocab, e), jnp.float32),
        "pos_emb": 0.1 * jax.random.normal(kd_keys[1], (max_len, e), jnp.float32),
        "layers": [_init_decblock(k, e, heads, fe) for k in kd_keys[3:]],
        "fc_w": fc_w, "fc_b": fc_b,
    }
    return {"encoder": enc, "decoder": dec}


def pack_params(params, heads, e):
    """One-time packing: expand per-head weights to block-diag (E,E), fold in the softmax
    scale, stack per-layer weights along a leading layer axis, bf16-cast matmul weights,
    and pad the vocab projection to a lane-dense multiple of 128."""
    scale = 1.0 / (e ** 0.5)          # torch: energy / embed_size ** 0.5
    eye = jnp.eye(heads, dtype=jnp.float32)
    bd = lambda w: jnp.kron(eye, w)   # (dh,dh) -> block-diagonal (E,E)
    st = lambda xs: jnp.stack(xs, axis=0)
    bf = lambda xs: jnp.stack(xs, axis=0).astype(jnp.bfloat16)

    def pack_tblock(tbs):
        return {
            "wq": bf([bd(t["attn"]["wq"]) * scale for t in tbs]),
            "wk": bf([bd(t["attn"]["wk"]) for t in tbs]),
            "wv": bf([bd(t["attn"]["wv"]) for t in tbs]),
            "wo": bf([t["attn"]["wo"] for t in tbs]),
            "bo": st([t["attn"]["bo"] for t in tbs]),
            "ln1_g": st([t["ln1_g"] for t in tbs]), "ln1_b": st([t["ln1_b"] for t in tbs]),
            "ff_w1": bf([t["ff_w1"] for t in tbs]), "ff_b1": st([t["ff_b1"] for t in tbs]),
            "ff_w2": bf([t["ff_w2"] for t in tbs]), "ff_b2": st([t["ff_b2"] for t in tbs]),
            "ln2_g": st([t["ln2_g"] for t in tbs]), "ln2_b": st([t["ln2_b"] for t in tbs]),
        }

    enc = params["encoder"]
    packed_enc = {"word_emb": enc["word_emb"], "pos_emb": enc["pos_emb"],
                  **pack_tblock(enc["layers"])}

    dec = params["decoder"]
    dls = dec["layers"]
    packed_dec = {
        "word_emb": dec["word_emb"], "pos_emb": dec["pos_emb"],
        "s_wq": bf([bd(d["attn"]["wq"]) * scale for d in dls]),
        "s_wk": bf([bd(d["attn"]["wk"]) for d in dls]),
        "s_wv": bf([bd(d["attn"]["wv"]) for d in dls]),
        "s_wo": bf([d["attn"]["wo"] for d in dls]),
        "s_bo": st([d["attn"]["bo"] for d in dls]),
        "s_ln_g": st([d["ln_g"] for d in dls]),
        "s_ln_b": st([d["ln_b"] for d in dls]),
        **{("c_" + k): v for k, v in pack_tblock([d["tblock"] for d in dls]).items()},
    }
    v = dec["fc_w"].shape[1]
    vpad = ((v + 127) // 128) * 128
    fc_w = jnp.zeros((e, vpad), jnp.float32).at[:, :v].set(dec["fc_w"])
    fc_b = jnp.zeros((1, vpad), jnp.float32).at[:, :v].set(dec["fc_b"])
    packed_dec["fc_w"] = fc_w.astype(jnp.bfloat16)
    packed_dec["fc_b"] = fc_b
    return {"encoder": packed_enc, "decoder": packed_dec}


# ----------------------------- main -----------------------------

if __name__ == "__main__":
    SRC_VOCAB, TRG_VOCAB = 50, 50
    EMBED, HEADS, FWD_EXP = 32, 4, 4
    NUM_LAYERS, MAX_LEN = 2, 100
    SRC_PAD_IDX = 0
    N, SRC_LEN, TRG_LEN = 2, 8, 8

    key = jax.random.PRNGKey(0)
    pkey, skey, tkey = jax.random.split(key, 3)

    params = init_transformer(pkey, SRC_VOCAB, TRG_VOCAB, EMBED, HEADS,
                              FWD_EXP, NUM_LAYERS, MAX_LEN)
    packed = pack_params(params, HEADS, EMBED)   # one-time weight packing

    src = jax.random.randint(skey, (N, SRC_LEN), 1, SRC_VOCAB, dtype=jnp.int32)
    src = src.at[0, -1].set(SRC_PAD_IDX)  # include a pad token to exercise src masking
    trg = jax.random.randint(tkey, (N, TRG_LEN), 1, TRG_VOCAB, dtype=jnp.int32)

    fwd = jax.jit(functools.partial(transformer_fwd, src_pad_idx=SRC_PAD_IDX,
                                    heads=HEADS, e=EMBED, trg_vocab=TRG_VOCAB))
    out = jax.block_until_ready(fwd(packed, src, trg))

    assert out.shape == (N, TRG_LEN, TRG_VOCAB)
    assert bool(jnp.all(jnp.isfinite(out)))
    print("KERNEL_OK")
</pallas_src>

<mosaic_0001>
module attributes {stable_mosaic.version = 11 : i64} {
  func.func @encoder_layer_kernel(%arg0: i32, %arg1: memref<2x8x32xf32, #tpu.memory_space<vmem>>, %arg2: memref<2x8xf32, #tpu.memory_space<vmem>>, %arg3: memref<1x32x32xbf16, #tpu.memory_space<vmem>>, %arg4: memref<1x32x32xbf16, #tpu.memory_space<vmem>>, %arg5: memref<1x32x32xbf16, #tpu.memory_space<vmem>>, %arg6: memref<1x32x32xbf16, #tpu.memory_space<vmem>>, %arg7: memref<1x1x32xf32, #tpu.memory_space<vmem>>, %arg8: memref<1x1x32xf32, #tpu.memory_space<vmem>>, %arg9: memref<1x1x32xf32, #tpu.memory_space<vmem>>, %arg10: memref<1x32x128xbf16, #tpu.memory_space<vmem>>, %arg11: memref<1x1x128xf32, #tpu.memory_space<vmem>>, %arg12: memref<1x128x32xbf16, #tpu.memory_space<vmem>>, %arg13: memref<1x1x32xf32, #tpu.memory_space<vmem>>, %arg14: memref<1x1x32xf32, #tpu.memory_space<vmem>>, %arg15: memref<1x1x32xf32, #tpu.memory_space<vmem>>, %arg16: memref<2x8x32xf32, #tpu.memory_space<vmem>>) attributes {dimension_semantics = [#tpu.dimension_semantics<arbitrary>], iteration_bounds = array<i64: 2>, scalar_prefetch = 0 : i64, scratch_operands = 0 : i64, tpu.core_type = #tpu.core_type<tc>, window_params = [{pipeline_mode = #tpu.pipeline_mode<synchronous>, transform_indices = @transform_0, window_bounds = array<i64: 2, 8, 32>}, {pipeline_mode = #tpu.pipeline_mode<synchronous>, transform_indices = @transform_1, window_bounds = array<i64: 2, 8>}, {transform_indices = @transform_2, window_bounds = array<i64: 1, 32, 32>}, {transform_indices = @transform_3, window_bounds = array<i64: 1, 32, 32>}, {transform_indices = @transform_4, window_bounds = array<i64: 1, 32, 32>}, {transform_indices = @transform_5, window_bounds = array<i64: 1, 32, 32>}, {transform_indices = @transform_6, window_bounds = array<i64: 1, 1, 32>}, {transform_indices = @transform_7, window_bounds = array<i64: 1, 1, 32>}, {transform_indices = @transform_8, window_bounds = array<i64: 1, 1, 32>}, {transform_indices = @transform_9, window_bounds = array<i64: 1, 32, 128>}, {transform_indices = @transform_10, window_bounds = array<i64: 1, 1, 128>}, {transform_indices = @transform_11, window_bounds = array<i64: 1, 128, 32>}, {transform_indices = @transform_12, window_bounds = array<i64: 1, 1, 32>}, {transform_indices = @transform_13, window_bounds = array<i64: 1, 1, 32>}, {transform_indices = @transform_14, window_bounds = array<i64: 1, 1, 32>}, {pipeline_mode = #tpu.pipeline_mode<synchronous>, transform_indices = @transform_15, window_bounds = array<i64: 2, 8, 32>}]} {
    %c0_i32 = arith.constant 0 : i32
    %0 = arith.cmpi eq, %arg0, %c0_i32 : i32
    %1 = arith.extui %0 : i1 to i32
    %c0_i32_0 = arith.constant 0 : i32
    %2 = arith.cmpi ne, %1, %c0_i32_0 : i32
    scf.if %2 {
      %c0_69 = arith.constant 0 : index
      %c0_70 = arith.constant 0 : index
      %c0_71 = arith.constant 0 : index
      %154 = vector.load %arg1[%c0_69, %c0_70, %c0_71] : memref<2x8x32xf32, #tpu.memory_space<vmem>>, vector<2x8x32xf32>
      %c0_72 = arith.constant 0 : index
      %c0_73 = arith.constant 0 : index
      %c0_74 = arith.constant 0 : index
      %155 = vector.load %arg16[%c0_72, %c0_73, %c0_74] : memref<2x8x32xf32, #tpu.memory_space<vmem>>, vector<2x8x32xf32>
      tpu.vector_store %arg16[%c0_72, %c0_73, %c0_74], %154 {strides = array<i32>} : memref<2x8x32xf32, #tpu.memory_space<vmem>>, vector<2x8x32xf32>,
    } else {
    }
    %c0 = arith.constant 0 : index
    %c0_1 = arith.constant 0 : index
    %c0_2 = arith.constant 0 : index
    %3 = vector.load %arg16[%c0, %c0_1, %c0_2] : memref<2x8x32xf32, #tpu.memory_space<vmem>>, vector<2x8x32xf32>
    %c0_3 = arith.constant 0 : index
    %c0_4 = arith.constant 0 : index
    %4 = vector.load %arg2[%c0_3, %c0_4] : memref<2x8xf32, #tpu.memory_space<vmem>>, vector<2x8xf32>
    %cst = arith.constant 1.000000e+00 : f32
    %5 = vector.broadcast %cst : f32 to vector<2x8xf32>
    %6 = arith.subf %4, %5 : vector<2x8xf32>
    %cst_5 = arith.constant 1.000000e+20 : f32
    %7 = vector.broadcast %cst_5 : f32 to vector<2x8xf32>
    %8 = arith.mulf %6, %7 : vector<2x8xf32>
    %9 = vector.shape_cast %8 : vector<2x8xf32> to vector<2x1x8xf32>
    %c0_6 = arith.constant 0 : index
    %c0_7 = arith.constant 0 : index
    %c0_8 = arith.constant 0 : index
    %10 = vector.load %arg3[%c0_6, %c0_7, %c0_8] : memref<1x32x32xbf16, #tpu.memory_space<vmem>>, vector<1x32x32xbf16>
    %11 = vector.shape_cast %10 : vector<1x32x32xbf16> to vector<32x32xbf16>
    %c0_9 = arith.constant 0 : index
    %c0_10 = arith.constant 0 : index
    %c0_11 = arith.constant 0 : index
    %12 = vector.load %arg4[%c0_9, %c0_10, %c0_11] : memref<1x32x32xbf16, #tpu.memory_space<vmem>>, vector<1x32x32xbf16>
    %13 = vector.shape_cast %12 : vector<1x32x32xbf16> to vector<32x32xbf16>
    %c0_12 = arith.constant 0 : index
    %c0_13 = arith.constant 0 : index
    %c0_14 = arith.constant 0 : index
    %14 = vector.load %arg5[%c0_12, %c0_13, %c0_14] : memref<1x32x32xbf16, #tpu.memory_space<vmem>>, vector<1x32x32xbf16>
    %15 = vector.shape_cast %14 : vector<1x32x32xbf16> to vector<32x32xbf16>
    %c0_15 = arith.constant 0 : index
    %c0_16 = arith.constant 0 : index
    %c0_17 = arith.constant 0 : index
    %16 = vector.load %arg6[%c0_15, %c0_16, %c0_17] : memref<1x32x32xbf16, #tpu.memory_space<vmem>>, vector<1x32x32xbf16>
    %17 = vector.shape_cast %16 : vector<1x32x32xbf16> to vector<32x32xbf16>
    %c0_18 = arith.constant 0 : index
    %c0_19 = arith.constant 0 : index
    %c0_20 = arith.constant 0 : index
    %18 = vector.load %arg7[%c0_18, %c0_19, %c0_20] : memref<1x1x32xf32, #tpu.memory_space<vmem>>, vector<1x1x32xf32>
    %19 = vector.shape_cast %18 : vector<1x1x32xf32> to vector<1x32xf32>
    %20 = vector.shape_cast %3 : vector<2x8x32xf32> to vector<16x32xf32>
    %21 = arith.truncf %20 : vector<16x32xf32> to vector<16x32xbf16>
    %22 = vector.shape_cast %3 : vector<2x8x32xf32> to vector<16x32xf32>
    %23 = arith.truncf %22 : vector<16x32xf32> to vector<16x32xbf16>
    %cst_21 = arith.constant dense<0.000000e+00> : vector<16x32xf32>
    %24 = tpu.matmul %21, %11, %cst_21 {dimension_numbers = #tpu.dot_dimension_numbers<[1], [0], [0], [1], [0, 0, 1, 1], [], []>} : vector<16x32xbf16>, vector<32x32xbf16>, vector<16x32xf32> -> vector<16x32xf32>
    %25 = vector.shape_cast %24 : vector<16x32xf32> to vector<2x8x32xf32>
    %cst_22 = arith.constant dense<0.000000e+00> : vector<16x32xf32>
    %26 = tpu.matmul %23, %13, %cst_22 {dimension_numbers = #tpu.dot_dimension_numbers<[1], [0], [0], [1], [0, 0, 1, 1], [], []>} : vector<16x32xbf16>, vector<32x32xbf16>, vector<16x32xf32> -> vector<16x32xf32>
    %27 = vector.shape_cast %26 : vector<16x32xf32> to vector<2x8x32xf32>
    %cst_23 = arith.constant dense<0.000000e+00> : vector<16x32xf32>
    %28 = tpu.matmul %23, %15, %cst_23 {dimension_numbers = #tpu.dot_dimension_numbers<[1], [0], [0], [1], [0, 0, 1, 1], [], []>} : vector<16x32xbf16>, vector<32x32xbf16>, vector<16x32xf32> -> vector<16x32xf32>
    %29 = vector.shape_cast %28 : vector<16x32xf32> to vector<2x8x32xf32>
    %30 = vector.extract_strided_slice %25 {offsets = [0, 0, 0], sizes = [2, 8, 8], strides = [1, 1, 1]} : vector<2x8x32xf32> to vector<2x8x8xf32>
    %31 = vector.extract_strided_slice %25 {offsets = [0, 0, 8], sizes = [2, 8, 8], strides = [1, 1, 1]} : vector<2x8x32xf32> to vector<2x8x8xf32>
    %32 = vector.extract_strided_slice %25 {offsets = [0, 0, 16], sizes = [2, 8, 8], strides = [1, 1, 1]} : vector<2x8x32xf32> to vector<2x8x8xf32>
    %33 = vector.extract_strided_slice %25 {offsets = [0, 0, 24], sizes = [2, 8, 8], strides = [1, 1, 1]} : vector<2x8x32xf32> to vector<2x8x8xf32>
    %34 = tpu.concatenate %30, %31, %32, %33 in 0 : vector<2x8x8xf32>, vector<2x8x8xf32>, vector<2x8x8xf32>, vector<2x8x8xf32> -> vector<8x8x8xf32>
    %35 = arith.truncf %34 : vector<8x8x8xf32> to vector<8x8x8xbf16>
    %36 = vector.extract_strided_slice %27 {offsets = [0, 0, 0], sizes = [2, 8, 8], strides = [1, 1, 1]} : vector<2x8x32xf32> to vector<2x8x8xf32>
    %37 = vector.extract_strided_slice %27 {offsets = [0, 0, 8], sizes = [2, 8, 8], strides = [1, 1, 1]} : vector<2x8x32xf32> to vector<2x8x8xf32>
    %38 = vector.extract_strided_slice %27 {offsets = [0, 0, 16], sizes = [2, 8, 8], strides = [1, 1, 1]} : vector<2x8x32xf32> to vector<2x8x8xf32>
    %39 = vector.extract_strided_slice %27 {offsets = [0, 0, 24], sizes = [2, 8, 8], strides = [1, 1, 1]} : vector<2x8x32xf32> to vector<2x8x8xf32>
    %40 = tpu.concatenate %36, %37, %38, %39 in 0 : vector<2x8x8xf32>, vector<2x8x8xf32>, vector<2x8x8xf32>, vector<2x8x8xf32> -> vector<8x8x8xf32>
    %41 = arith.truncf %40 : vector<8x8x8xf32> to vector<8x8x8xbf16>
    %42 = vector.extract_strided_slice %29 {offsets = [0, 0, 0], sizes = [2, 8, 8], strides = [1, 1, 1]} : vector<2x8x32xf32> to vector<2x8x8xf32>
    %43 = vector.extract_strided_slice %29 {offsets = [0, 0, 8], sizes = [2, 8, 8], strides = [1, 1, 1]} : vector<2x8x32xf32> to vector<2x8x8xf32>
    %44 = vector.extract_strided_slice %29 {offsets = [0, 0, 16], sizes = [2, 8, 8], strides = [1, 1, 1]} : vector<2x8x32xf32> to vector<2x8x8xf32>
    %45 = vector.extract_strided_slice %29 {offsets = [0, 0, 24], sizes = [2, 8, 8], strides = [1, 1, 1]} : vector<2x8x32xf32> to vector<2x8x8xf32>
    %46 = tpu.concatenate %42, %43, %44, %45 in 0 : vector<2x8x8xf32>, vector<2x8x8xf32>, vector<2x8x8xf32>, vector<2x8x8xf32> -> vector<8x8x8xf32>
    %47 = arith.truncf %46 : vector<8x8x8xf32> to vector<8x8x8xbf16>
    "tpu.trace_start"() <{level = 10 : i32, message = "bqd,bkd->bqk"}> : () -> ()
    %cst_24 = arith.constant dense<0.000000e+00> : vector<8x8x8xf32>
    %48 = tpu.matmul %35, %41, %cst_24 {dimension_numbers = #tpu.dot_dimension_numbers<[2], [2], [1], [1], [0, 0, 0, 1, 1, 1], [0], [0]>} : vector<8x8x8xbf16>, vector<8x8x8xbf16>, vector<8x8x8xf32> -> vector<8x8x8xf32>
    "tpu.trace_stop"() : () -> ()
    %49 = tpu.concatenate %9, %9, %9, %9 in 0 : vector<2x1x8xf32>, vector<2x1x8xf32>, vector<2x1x8xf32>, vector<2x1x8xf32> -> vector<8x1x8xf32>
    %50 = vector.broadcast %49 : vector<8x1x8xf32> to vector<8x8x8xf32>
    %51 = arith.addf %48, %50 : vector<8x8x8xf32>
    %cst_25 = arith.constant dense<0xFF800000> : vector<8x8xf32>
    %52 = vector.multi_reduction <maximumf>, %51, %cst_25 [2] : vector<8x8x8xf32> to vector<8x8xf32>
    %53 = vector.shape_cast %52 : vector<8x8xf32> to vector<8x8x1xf32>
    %54 = vector.broadcast %53 : vector<8x8x1xf32> to vector<8x8x8xf32>
    %55 = arith.subf %51, %54 : vector<8x8x8xf32>
    %56 = math.exp %55 : vector<8x8x8xf32>
    %cst_26 = arith.constant dense<0.000000e+00> : vector<8x8xf32>
    %57 = vector.multi_reduction <add>, %56, %cst_26 [2] : vector<8x8x8xf32> to vector<8x8xf32>
    %58 = vector.shape_cast %57 : vector<8x8xf32> to vector<8x8x1xf32>
    %59 = tpu.reciprocal %58 {approx = true} : vector<8x8x1xf32> -> vector<8x8x1xf32>
    %60 = vector.broadcast %59 : vector<8x8x1xf32> to vector<8x8x8xf32>
    %61 = arith.mulf %56, %60 : vector<8x8x8xf32>
    %62 = arith.truncf %61 : vector<8x8x8xf32> to vector<8x8x8xbf16>
    "tpu.trace_start"() <{level = 10 : i32, message = "bqk,bkd->bqd"}> : () -> ()
    %cst_27 = arith.constant dense<0.000000e+00> : vector<8x8x8xf32>
    %63 = tpu.matmul %62, %47, %cst_27 {dimension_numbers = #tpu.dot_dimension_numbers<[2], [1], [1], [2], [0, 0, 0, 1, 1, 2], [0], [0]>} : vector<8x8x8xbf16>, vector<8x8x8xbf16>, vector<8x8x8xf32> -> vector<8x8x8xf32>
    "tpu.trace_stop"() : () -> ()
    %64 = vector.extract_strided_slice %63 {offsets = [0, 0, 0], sizes = [2, 8, 8], strides = [1, 1, 1]} : vector<8x8x8xf32> to vector<2x8x8xf32>
    %65 = vector.extract_strided_slice %63 {offsets = [2, 0, 0], sizes = [2, 8, 8], strides = [1, 1, 1]} : vector<8x8x8xf32> to vector<2x8x8xf32>
    %66 = vector.extract_strided_slice %63 {offsets = [4, 0, 0], sizes = [2, 8, 8], strides = [1, 1, 1]} : vector<8x8x8xf32> to vector<2x8x8xf32>
    %67 = vector.extract_strided_slice %63 {offsets = [6, 0, 0], sizes = [2, 8, 8], strides = [1, 1, 1]} : vector<8x8x8xf32> to vector<2x8x8xf32>
    %68 = tpu.concatenate %64, %65, %66, %67 in 2 : vector<2x8x8xf32>, vector<2x8x8xf32>, vector<2x8x8xf32>, vector<2x8x8xf32> -> vector<2x8x32xf32>
    %69 = vector.shape_cast %68 : vector<2x8x32xf32> to vector<16x32xf32>
    %70 = arith.truncf %69 : vector<16x32xf32> to vector<16x32xbf16>
    %cst_28 = arith.constant dense<0.000000e+00> : vector<16x32xf32>
    %71 = tpu.matmul %70, %17, %cst_28 {dimension_numbers = #tpu.dot_dimension_numbers<[1], [0], [0], [1], [0, 0, 1, 1], [], []>} : vector<16x32xbf16>, vector<32x32xbf16>, vector<16x32xf32> -> vector<16x32xf32>
    %72 = vector.broadcast %19 : vector<1x32xf32> to vector<16x32xf32>
    %73 = arith.addf %71, %72 : vector<16x32xf32>
    %74 = vector.shape_cast %73 : vector<16x32xf32> to vector<2x8x32xf32>
    %75 = arith.addf %74, %3 : vector<2x8x32xf32>
    %c0_29 = arith.constant 0 : index
    %c0_30 = arith.constant 0 : index
    %c0_31 = arith.constant 0 : index
    %76 = vector.load %arg8[%c0_29, %c0_30, %c0_31] : memref<1x1x32xf32, #tpu.memory_space<vmem>>, vector<1x1x32xf32>
    %77 = vector.shape_cast %76 : vector<1x1x32xf32> to vector<1x32xf32>
    %c0_32 = arith.constant 0 : index
    %c0_33 = arith.constant 0 : index
    %c0_34 = arith.constant 0 : index
    %78 = vector.load %arg9[%c0_32, %c0_33, %c0_34] : memref<1x1x32xf32, #tpu.memory_space<vmem>>, vector<1x1x32xf32>
    %79 = vector.shape_cast %78 : vector<1x1x32xf32> to vector<1x32xf32>
    %cst_35 = arith.constant dense<0.000000e+00> : vector<2x8xf32>
    %80 = vector.multi_reduction <add>, %75, %cst_35 [2] : vector<2x8x32xf32> to vector<2x8xf32>
    %81 = vector.shape_cast %80 : vector<2x8xf32> to vector<2x8x1xf32>
    %cst_36 = arith.constant 3.200000e+01 : f32
    %82 = vector.broadcast %cst_36 : f32 to vector<2x8x1xf32>
    %83 = arith.divf %81, %82 : vector<2x8x1xf32>
    %84 = vector.broadcast %83 : vector<2x8x1xf32> to vector<2x8x32xf32>
    %85 = arith.subf %75, %84 : vector<2x8x32xf32>
    %86 = arith.mulf %85, %85 : vector<2x8x32xf32>
    %cst_37 = arith.constant dense<0.000000e+00> : vector<2x8xf32>
    %87 = vector.multi_reduction <add>, %86, %cst_37 [2] : vector<2x8x32xf32> to vector<2x8xf32>
    %88 = vector.shape_cast %87 : vector<2x8xf32> to vector<2x8x1xf32>
    %cst_38 = arith.constant 3.200000e+01 : f32
    %89 = vector.broadcast %cst_38 : f32 to vector<2x8x1xf32>
    %90 = arith.divf %88, %89 : vector<2x8x1xf32>
    %91 = vector.broadcast %83 : vector<2x8x1xf32> to vector<2x8x32xf32>
    %92 = arith.subf %75, %91 : vector<2x8x32xf32>
    %cst_39 = arith.constant 9.99999974E-6 : f32
    %93 = vector.broadcast %cst_39 : f32 to vector<2x8x1xf32>
    %94 = arith.addf %90, %93 : vector<2x8x1xf32>
    %95 = math.rsqrt %94 : vector<2x8x1xf32>
    %96 = vector.broadcast %95 : vector<2x8x1xf32> to vector<2x8x32xf32>
    %97 = arith.mulf %92, %96 : vector<2x8x32xf32>
    %98 = vector.shape_cast %77 : vector<1x32xf32> to vector<1x1x32xf32>
    %99 = vector.broadcast %98 : vector<1x1x32xf32> to vector<2x8x32xf32>
    %100 = arith.mulf %97, %99 : vector<2x8x32xf32>
    %101 = vector.shape_cast %79 : vector<1x32xf32> to vector<1x1x32xf32>
    %102 = vector.broadcast %101 : vector<1x1x32xf32> to vector<2x8x32xf32>
    %103 = arith.addf %100, %102 : vector<2x8x32xf32>
    %c0_40 = arith.constant 0 : index
    %c0_41 = arith.constant 0 : index
    %c0_42 = arith.constant 0 : index
    %104 = vector.load %arg10[%c0_40, %c0_41, %c0_42] : memref<1x32x128xbf16, #tpu.memory_space<vmem>>, vector<1x32x128xbf16>
    %105 = vector.shape_cast %104 : vector<1x32x128xbf16> to vector<32x128xbf16>
    %c0_43 = arith.constant 0 : index
    %c0_44 = arith.constant 0 : index
    %c0_45 = arith.constant 0 : index
    %106 = vector.load %arg11[%c0_43, %c0_44, %c0_45] : memref<1x1x128xf32, #tpu.memory_space<vmem>>, vector<1x1x128xf32>
    %107 = vector.shape_cast %106 : vector<1x1x128xf32> to vector<1x128xf32>
    %c0_46 = arith.constant 0 : index
    %c0_47 = arith.constant 0 : index
    %c0_48 = arith.constant 0 : index
    %108 = vector.load %arg12[%c0_46, %c0_47, %c0_48] : memref<1x128x32xbf16, #tpu.memory_space<vmem>>, vector<1x128x32xbf16>
    %109 = vector.shape_cast %108 : vector<1x128x32xbf16> to vector<128x32xbf16>
    %c0_49 = arith.constant 0 : index
    %c0_50 = arith.constant 0 : index
    %c0_51 = arith.constant 0 : index
    %110 = vector.load %arg13[%c0_49, %c0_50, %c0_51] : memref<1x1x32xf32, #tpu.memory_space<vmem>>, vector<1x1x32xf32>
    %111 = vector.shape_cast %110 : vector<1x1x32xf32> to vector<1x32xf32>
    %112 = vector.shape_cast %103 : vector<2x8x32xf32> to vector<16x32xf32>
    %113 = arith.truncf %112 : vector<16x32xf32> to vector<16x32xbf16>
    %cst_52 = arith.constant dense<0.000000e+00> : vector<16x128xf32>
    %114 = tpu.matmul %113, %105, %cst_52 {dimension_numbers = #tpu.dot_dimension_numbers<[1], [0], [0], [1], [0, 0, 1, 1], [], []>} : vector<16x32xbf16>, vector<32x128xbf16>, vector<16x128xf32> -> vector<16x128xf32>
    %115 = vector.broadcast %107 : vector<1x128xf32> to vector<16x128xf32>
    %116 = arith.addf %114, %115 : vector<16x128xf32>
    %cst_53 = arith.constant 0.000000e+00 : f32
    %117 = vector.broadcast %cst_53 : f32 to vector<16x128xf32>
    %118 = arith.maximumf %116, %117 : vector<16x128xf32>
    %119 = arith.truncf %118 : vector<16x128xf32> to vector<16x128xbf16>
    %cst_54 = arith.constant dense<0.000000e+00> : vector<16x32xf32>
    %120 = tpu.matmul %119, %109, %cst_54 {dimension_numbers = #tpu.dot_dimension_numbers<[1], [0], [0], [1], [0, 0, 1, 1], [], []>} : vector<16x128xbf16>, vector<128x32xbf16>, vector<16x32xf32> -> vector<16x32xf32>
    %121 = vector.broadcast %111 : vector<1x32xf32> to vector<16x32xf32>
    %122 = arith.addf %120, %121 : vector<16x32xf32>
    %123 = vector.shape_cast %122 : vector<16x32xf32> to vector<2x8x32xf32>
    %124 = arith.addf %123, %103 : vector<2x8x32xf32>
    %c0_55 = arith.constant 0 : index
    %c0_56 = arith.constant 0 : index
    %c0_57 = arith.constant 0 : index
    %125 = vector.load %arg14[%c0_55, %c0_56, %c0_57] : memref<1x1x32xf32, #tpu.memory_space<vmem>>, vector<1x1x32xf32>
    %126 = vector.shape_cast %125 : vector<1x1x32xf32> to vector<1x32xf32>
    %c0_58 = arith.constant 0 : index
    %c0_59 = arith.constant 0 : index
    %c0_60 = arith.constant 0 : index
    %127 = vector.load %arg15[%c0_58, %c0_59, %c0_60] : memref<1x1x32xf32, #tpu.memory_space<vmem>>, vector<1x1x32xf32>
    %128 = vector.shape_cast %127 : vector<1x1x32xf32> to vector<1x32xf32>
    %cst_61 = arith.constant dense<0.000000e+00> : vector<2x8xf32>
    %129 = vector.multi_reduction <add>, %124, %cst_61 [2] : vector<2x8x32xf32> to vector<2x8xf32>
    %130 = vector.shape_cast %129 : vector<2x8xf32> to vector<2x8x1xf32>
    %cst_62 = arith.constant 3.200000e+01 : f32
    %131 = vector.broadcast %cst_62 : f32 to vector<2x8x1xf32>
    %132 = arith.divf %130, %131 : vector<2x8x1xf32>
    %133 = vector.broadcast %132 : vector<2x8x1xf32> to vector<2x8x32xf32>
    %134 = arith.subf %124, %133 : vector<2x8x32xf32>
    %135 = arith.mulf %134, %134 : vector<2x8x32xf32>
    %cst_63 = arith.constant dense<0.000000e+00> : vector<2x8xf32>
    %136 = vector.multi_reduction <add>, %135, %cst_63 [2] : vector<2x8x32xf32> to vector<2x8xf32>
    %137 = vector.shape_cast %136 : vector<2x8xf32> to vector<2x8x1xf32>
    %cst_64 = arith.constant 3.200000e+01 : f32
    %138 = vector.broadcast %cst_64 : f32 to vector<2x8x1xf32>
    %139 = arith.divf %137, %138 : vector<2x8x1xf32>
    %140 = vector.broadcast %132 : vector<2x8x1xf32> to vector<2x8x32xf32>
    %141 = arith.subf %124, %140 : vector<2x8x32xf32>
    %cst_65 = arith.constant 9.99999974E-6 : f32
    %142 = vector.broadcast %cst_65 : f32 to vector<2x8x1xf32>
    %143 = arith.addf %139, %142 : vector<2x8x1xf32>
    %144 = math.rsqrt %143 : vector<2x8x1xf32>
    %145 = vector.broadcast %144 : vector<2x8x1xf32> to vector<2x8x32xf32>
    %146 = arith.mulf %141, %145 : vector<2x8x32xf32>
    %147 = vector.shape_cast %126 : vector<1x32xf32> to vector<1x1x32xf32>
    %148 = vector.broadcast %147 : vector<1x1x32xf32> to vector<2x8x32xf32>
    %149 = arith.mulf %146, %148 : vector<2x8x32xf32>
    %150 = vector.shape_cast %128 : vector<1x32xf32> to vector<1x1x32xf32>
    %151 = vector.broadcast %150 : vector<1x1x32xf32> to vector<2x8x32xf32>
    %152 = arith.addf %149, %151 : vector<2x8x32xf32>
    %c0_66 = arith.constant 0 : index
    %c0_67 = arith.constant 0 : index
    %c0_68 = arith.constant 0 : index
    %153 = vector.load %arg16[%c0_66, %c0_67, %c0_68] : memref<2x8x32xf32, #tpu.memory_space<vmem>>, vector<2x8x32xf32>
    tpu.vector_store %arg16[%c0_66, %c0_67, %c0_68], %152 {strides = array<i32>} : memref<2x8x32xf32, #tpu.memory_space<vmem>>, vector<2x8x32xf32>,
    return
  }
  func.func @transform_0(%arg0: i32) -> (i32, i32, i32) {
    %c0_i32 = arith.constant 0 : i32
    %c0_i32_0 = arith.constant 0 : i32
    %c0_i32_1 = arith.constant 0 : i32
    %c0_i32_2 = arith.constant 0 : i32
    return %c0_i32, %c0_i32_0, %c0_i32_1 : i32, i32, i32
  }
  func.func @transform_1(%arg0: i32) -> (i32, i32) {
    %c0_i32 = arith.constant 0 : i32
    %c0_i32_0 = arith.constant 0 : i32
    %c0_i32_1 = arith.constant 0 : i32
    return %c0_i32, %c0_i32_0 : i32, i32
  }
  func.func @transform_2(%arg0: i32) -> (i32, i32, i32) {
    %c0_i32 = arith.constant 0 : i32
    %c0_i32_0 = arith.constant 0 : i32
    %c0_i32_1 = arith.constant 0 : i32
    return %arg0, %c0_i32, %c0_i32_0 : i32, i32, i32
  }
  func.func @transform_3(%arg0: i32) -> (i32, i32, i32) {
    %c0_i32 = arith.constant 0 : i32
    %c0_i32_0 = arith.constant 0 : i32
    %c0_i32_1 = arith.constant 0 : i32
    return %arg0, %c0_i32, %c0_i32_0 : i32, i32, i32
  }
  func.func @transform_4(%arg0: i32) -> (i32, i32, i32) {
    %c0_i32 = arith.constant 0 : i32
    %c0_i32_0 = arith.constant 0 : i32
    %c0_i32_1 = arith.constant 0 : i32
    return %arg0, %c0_i32, %c0_i32_0 : i32, i32, i32
  }
  func.func @transform_5(%arg0: i32) -> (i32, i32, i32) {
    %c0_i32 = arith.constant 0 : i32
    %c0_i32_0 = arith.constant 0 : i32
    %c0_i32_1 = arith.constant 0 : i32
    return %arg0, %c0_i32, %c0_i32_0 : i32, i32, i32
  }
  func.func @transform_6(%arg0: i32) -> (i32, i32, i32) {
    %c0_i32 = arith.constant 0 : i32
    %c0_i32_0 = arith.constant 0 : i32
    %c0_i32_1 = arith.constant 0 : i32
    return %arg0, %c0_i32, %c0_i32_0 : i32, i32, i32
  }
  func.func @transform_7(%arg0: i32) -> (i32, i32, i32) {
    %c0_i32 = arith.constant 0 : i32
    %c0_i32_0 = arith.constant 0 : i32
    %c0_i32_1 = arith.constant 0 : i32
    return %arg0, %c0_i32, %c0_i32_0 : i32, i32, i32
  }
  func.func @transform_8(%arg0: i32) -> (i32, i32, i32) {
    %c0_i32 = arith.constant 0 : i32
    %c0_i32_0 = arith.constant 0 : i32
    %c0_i32_1 = arith.constant 0 : i32
    return %arg0, %c0_i32, %c0_i32_0 : i32, i32, i32
  }
  func.func @transform_9(%arg0: i32) -> (i32, i32, i32) {
    %c0_i32 = arith.constant 0 : i32
    %c0_i32_0 = arith.constant 0 : i32
    %c0_i32_1 = arith.constant 0 : i32
    return %arg0, %c0_i32, %c0_i32_0 : i32, i32, i32
  }
  func.func @transform_10(%arg0: i32) -> (i32, i32, i32) {
    %c0_i32 = arith.constant 0 : i32
    %c0_i32_0 = arith.constant 0 : i32
    %c0_i32_1 = arith.constant 0 : i32
    return %arg0, %c0_i32, %c0_i32_0 : i32, i32, i32
  }
  func.func @transform_11(%arg0: i32) -> (i32, i32, i32) {
    %c0_i32 = arith.constant 0 : i32
    %c0_i32_0 = arith.constant 0 : i32
    %c0_i32_1 = arith.constant 0 : i32
    return %arg0, %c0_i32, %c0_i32_0 : i32, i32, i32
  }
  func.func @transform_12(%arg0: i32) -> (i32, i32, i32) {
    %c0_i32 = arith.constant 0 : i32
    %c0_i32_0 = arith.constant 0 : i32
    %c0_i32_1 = arith.constant 0 : i32
    return %arg0, %c0_i32, %c0_i32_0 : i32, i32, i32
  }
  func.func @transform_13(%arg0: i32) -> (i32, i32, i32) {
    %c0_i32 = arith.constant 0 : i32
    %c0_i32_0 = arith.constant 0 : i32
    %c0_i32_1 = arith.constant 0 : i32
    return %arg0, %c0_i32, %c0_i32_0 : i32, i32, i32
  }
  func.func @transform_14(%arg0: i32) -> (i32, i32, i32) {
    %c0_i32 = arith.constant 0 : i32
    %c0_i32_0 = arith.constant 0 : i32
    %c0_i32_1 = arith.constant 0 : i32
    return %arg0, %c0_i32, %c0_i32_0 : i32, i32, i32
  }
  func.func @transform_15(%arg0: i32) -> (i32, i32, i32) {
    %c0_i32 = arith.constant 0 : i32
    %c0_i32_0 = arith.constant 0 : i32
    %c0_i32_1 = arith.constant 0 : i32
    %c0_i32_2 = arith.constant 0 : i32
    return %c0_i32, %c0_i32_0, %c0_i32_1 : i32, i32, i32
  }
}

module attributes {stable_mosaic.version = 11 : i64} {
  func.func @decoder_layer_kernel(%arg0: i32, %arg1: memref<2x8x32xf32, #tpu.memory_space<vmem>>, %arg2: memref<2x8x32xf32, #tpu.memory_space<vmem>>, %arg3: memref<2x8xf32, #tpu.memory_space<vmem>>, %arg4: memref<1x32x32xbf16, #tpu.memory_space<vmem>>, %arg5: memref<1x32x32xbf16, #tpu.memory_space<vmem>>, %arg6: memref<1x32x32xbf16, #tpu.memory_space<vmem>>, %arg7: memref<1x32x32xbf16, #tpu.memory_space<vmem>>, %arg8: memref<1x1x32xf32, #tpu.memory_space<vmem>>, %arg9: memref<1x1x32xf32, #tpu.memory_space<vmem>>, %arg10: memref<1x1x32xf32, #tpu.memory_space<vmem>>, %arg11: memref<1x32x32xbf16, #tpu.memory_space<vmem>>, %arg12: memref<1x32x32xbf16, #tpu.memory_space<vmem>>, %arg13: memref<1x32x32xbf16, #tpu.memory_space<vmem>>, %arg14: memref<1x32x32xbf16, #tpu.memory_space<vmem>>, %arg15: memref<1x1x32xf32, #tpu.memory_space<vmem>>, %arg16: memref<1x1x32xf32, #tpu.memory_space<vmem>>, %arg17: memref<1x1x32xf32, #tpu.memory_space<vmem>>, %arg18: memref<1x32x128xbf16, #tpu.memory_space<vmem>>, %arg19: memref<1x1x128xf32, #tpu.memory_space<vmem>>, %arg20: memref<1x128x32xbf16, #tpu.memory_space<vmem>>, %arg21: memref<1x1x32xf32, #tpu.memory_space<vmem>>, %arg22: memref<1x1x32xf32, #tpu.memory_space<vmem>>, %arg23: memref<1x1x32xf32, #tpu.memory_space<vmem>>, %arg24: memref<32x128xbf16, #tpu.memory_space<vmem>>, %arg25: memref<1x128xf32, #tpu.memory_space<vmem>>, %arg26: memref<2x8x128xf32, #tpu.memory_space<vmem>>, %arg27: memref<2x8x32xf32, #tpu.memory_space<vmem>>) attributes {dimension_semantics = [#tpu.dimension_semantics<arbitrary>], iteration_bounds = array<i64: 2>, scalar_prefetch = 0 : i64, scratch_operands = 1 : i64, tpu.core_type = #tpu.core_type<tc>, window_params = [{pipeline_mode = #tpu.pipeline_mode<synchronous>, transform_indices = @transform_0, window_bounds = array<i64: 2, 8, 32>}, {pipeline_mode = #tpu.pipeline_mode<synchronous>, transform_indices = @transform_1, window_bounds = array<i64: 2, 8, 32>}, {pipeline_mode = #tpu.pipeline_mode<synchronous>, transform_indices = @transform_2, window_bounds = array<i64: 2, 8>}, {transform_indices = @transform_3, window_bounds = array<i64: 1, 32, 32>}, {transform_indices = @transform_4, window_bounds = array<i64: 1, 32, 32>}, {transform_indices = @transform_5, window_bounds = array<i64: 1, 32, 32>}, {transform_indices = @transform_6, window_bounds = array<i64: 1, 32, 32>}, {transform_indices = @transform_7, window_bounds = array<i64: 1, 1, 32>}, {transform_indices = @transform_8, window_bounds = array<i64: 1, 1, 32>}, {transform_indices = @transform_9, window_bounds = array<i64: 1, 1, 32>}, {transform_indices = @transform_10, window_bounds = array<i64: 1, 32, 32>}, {transform_indices = @transform_11, window_bounds = array<i64: 1, 32, 32>}, {transform_indices = @transform_12, window_bounds = array<i64: 1, 32, 32>}, {transform_indices = @transform_13, window_bounds = array<i64: 1, 32, 32>}, {transform_indices = @transform_14, window_bounds = array<i64: 1, 1, 32>}, {transform_indices = @transform_15, window_bounds = array<i64: 1, 1, 32>}, {transform_indices = @transform_16, window_bounds = array<i64: 1, 1, 32>}, {transform_indices = @transform_17, window_bounds = array<i64: 1, 32, 128>}, {transform_indices = @transform_18, window_bounds = array<i64: 1, 1, 128>}, {transform_indices = @transform_19, window_bounds = array<i64: 1, 128, 32>}, {transform_indices = @transform_20, window_bounds = array<i64: 1, 1, 32>}, {transform_indices = @transform_21, window_bounds = array<i64: 1, 1, 32>}, {transform_indices = @transform_22, window_bounds = array<i64: 1, 1, 32>}, {pipeline_mode = #tpu.pipeline_mode<synchronous>, transform_indices = @transform_23, window_bounds = array<i64: 32, 128>}, {pipeline_mode = #tpu.pipeline_mode<synchronous>, transform_indices = @transform_24, window_bounds = array<i64: 1, 128>}, {pipeline_mode = #tpu.pipeline_mode<synchronous>, transform_indices = @transform_25, window_bounds = array<i64: 2, 8, 128>}]} {
    %c0_i32 = arith.constant 0 : i32
    %0 = arith.cmpi eq, %arg0, %c0_i32 : i32
    %1 = arith.extui %0 : i1 to i32
    %c0_i32_0 = arith.constant 0 : i32
    %2 = arith.cmpi ne, %1, %c0_i32_0 : i32
    scf.if %2 {
      %c0_109 = arith.constant 0 : index
      %c0_110 = arith.constant 0 : index
      %c0_111 = arith.constant 0 : index
      %258 = vector.load %arg1[%c0_109, %c0_110, %c0_111] : memref<2x8x32xf32, #tpu.memory_space<vmem>>, vector<2x8x32xf32>
      %c0_112 = arith.constant 0 : index
      %c0_113 = arith.constant 0 : index
      %c0_114 = arith.constant 0 : index
      %259 = vector.load %arg27[%c0_112, %c0_113, %c0_114] : memref<2x8x32xf32, #tpu.memory_space<vmem>>, vector<2x8x32xf32>
      tpu.vector_store %arg27[%c0_112, %c0_113, %c0_114], %258 {strides = array<i32>} : memref<2x8x32xf32, #tpu.memory_space<vmem>>, vector<2x8x32xf32>,
    } else {
    }
    %c0 = arith.constant 0 : index
    %c0_1 = arith.constant 0 : index
    %c0_2 = arith.constant 0 : index
    %3 = vector.load %arg27[%c0, %c0_1, %c0_2] : memref<2x8x32xf32, #tpu.memory_space<vmem>>, vector<2x8x32xf32>
    %4 = tpu.iota {dimensions = array<i32: 0>} : vector<8x8xi32>
    %5 = tpu.iota {dimensions = array<i32: 1>} : vector<8x8xi32>
    %6 = arith.cmpi sge, %4, %5 : vector<8x8xi32>
    %cst = arith.constant 0.000000e+00 : f32
    %cst_3 = arith.constant -1.000000e+20 : f32
    %7 = vector.broadcast %cst : f32 to vector<8x8xf32>
    %8 = vector.broadcast %cst_3 : f32 to vector<8x8xf32>
    %9 = arith.select %6, %7, %8 : vector<8x8xi1>, vector<8x8xf32>
    %10 = vector.shape_cast %9 : vector<8x8xf32> to vector<1x8x8xf32>
    %c0_4 = arith.constant 0 : index
    %c0_5 = arith.constant 0 : index
    %c0_6 = arith.constant 0 : index
    %11 = vector.load %arg4[%c0_4, %c0_5, %c0_6] : memref<1x32x32xbf16, #tpu.memory_space<vmem>>, vector<1x32x32xbf16>
    %12 = vector.shape_cast %11 : vector<1x32x32xbf16> to vector<32x32xbf16>
    %c0_7 = arith.constant 0 : index
    %c0_8 = arith.constant 0 : index
    %c0_9 = arith.constant 0 : index
    %13 = vector.load %arg5[%c0_7, %c0_8, %c0_9] : memref<1x32x32xbf16, #tpu.memory_space<vmem>>, vector<1x32x32xbf16>
    %14 = vector.shape_cast %13 : vector<1x32x32xbf16> to vector<32x32xbf16>
    %c0_10 = arith.constant 0 : index
    %c0_11 = arith.constant 0 : index
    %c0_12 = arith.constant 0 : index
    %15 = vector.load %arg6[%c0_10, %c0_11, %c0_12] : memref<1x32x32xbf16, #tpu.memory_space<vmem>>, vector<1x32x32xbf16>
    %16 = vector.shape_cast %15 : vector<1x32x32xbf16> to vector<32x32xbf16>
    %c0_13 = arith.constant 0 : index
    %c0_14 = arith.constant 0 : index
    %c0_15 = arith.constant 0 : index
    %17 = vector.load %arg7[%c0_13, %c0_14, %c0_15] : memref<1x32x32xbf16, #tpu.memory_space<vmem>>, vector<1x32x32xbf16>
    %18 = vector.shape_cast %17 : vector<1x32x32xbf16> to vector<32x32xbf16>
    %c0_16 = arith.constant 0 : index
    %c0_17 = arith.constant 0 : index
    %c0_18 = arith.constant 0 : index
    %19 = vector.load %arg8[%c0_16, %c0_17, %c0_18] : memref<1x1x32xf32, #tpu.memory_space<vmem>>, vector<1x1x32xf32>
    %20 = vector.shape_cast %19 : vector<1x1x32xf32> to vector<1x32xf32>
    %21 = vector.shape_cast %3 : vector<2x8x32xf32> to vector<16x32xf32>
    %22 = arith.truncf %21 : vector<16x32xf32> to vector<16x32xbf16>
    %23 = vector.shape_cast %3 : vector<2x8x32xf32> to vector<16x32xf32>
    %24 = arith.truncf %23 : vector<16x32xf32> to vector<16x32xbf16>
    %cst_19 = arith.constant dense<0.000000e+00> : vector<16x32xf32>
    %25 = tpu.matmul %22, %12, %cst_19 {dimension_numbers = #tpu.dot_dimension_numbers<[1], [0], [0], [1], [0, 0, 1, 1], [], []>} : vector<16x32xbf16>, vector<32x32xbf16>, vector<16x32xf32> -> vector<16x32xf32>
    %26 = vector.shape_cast %25 : vector<16x32xf32> to vector<2x8x32xf32>
    %cst_20 = arith.constant dense<0.000000e+00> : vector<16x32xf32>
    %27 = tpu.matmul %24, %14, %cst_20 {dimension_numbers = #tpu.dot_dimension_numbers<[1], [0], [0], [1], [0, 0, 1, 1], [], []>} : vector<16x32xbf16>, vector<32x32xbf16>, vector<16x32xf32> -> vector<16x32xf32>
    %28 = vector.shape_cast %27 : vector<16x32xf32> to vector<2x8x32xf32>
    %cst_21 = arith.constant dense<0.000000e+00> : vector<16x32xf32>
    %29 = tpu.matmul %24, %16, %cst_21 {dimension_numbers = #tpu.dot_dimension_numbers<[1], [0], [0], [1], [0, 0, 1, 1], [], []>} : vector<16x32xbf16>, vector<32x32xbf16>, vector<16x32xf32> -> vector<16x32xf32>
    %30 = vector.shape_cast %29 : vector<16x32xf32> to vector<2x8x32xf32>
    %31 = vector.extract_strided_slice %26 {offsets = [0, 0, 0], sizes = [2, 8, 8], strides = [1, 1, 1]} : vector<2x8x32xf32> to vector<2x8x8xf32>
    %32 = vector.extract_strided_slice %26 {offsets = [0, 0, 8], sizes = [2, 8, 8], strides = [1, 1, 1]} : vector<2x8x32xf32> to vector<2x8x8xf32>
    %33 = vector.extract_strided_slice %26 {offsets = [0, 0, 16], sizes = [2, 8, 8], strides = [1, 1, 1]} : vector<2x8x32xf32> to vector<2x8x8xf32>
    %34 = vector.extract_strided_slice %26 {offsets = [0, 0, 24], sizes = [2, 8, 8], strides = [1, 1, 1]} : vector<2x8x32xf32> to vector<2x8x8xf32>
    %35 = tpu.concatenate %31, %32, %33, %34 in 0 : vector<2x8x8xf32>, vector<2x8x8xf32>, vector<2x8x8xf32>, vector<2x8x8xf32> -> vector<8x8x8xf32>
    %36 = arith.truncf %35 : vector<8x8x8xf32> to vector<8x8x8xbf16>
    %37 = vector.extract_strided_slice %28 {offsets = [0, 0, 0], sizes = [2, 8, 8], strides = [1, 1, 1]} : vector<2x8x32xf32> to vector<2x8x8xf32>
    %38 = vector.extract_strided_slice %28 {offsets = [0, 0, 8], sizes = [2, 8, 8], strides = [1, 1, 1]} : vector<2x8x32xf32> to vector<2x8x8xf32>
    %39 = vector.extract_strided_slice %28 {offsets = [0, 0, 16], sizes = [2, 8, 8], strides = [1, 1, 1]} : vector<2x8x32xf32> to vector<2x8x8xf32>
    %40 = vector.extract_strided_slice %28 {offsets = [0, 0, 24], sizes = [2, 8, 8], strides = [1, 1, 1]} : vector<2x8x32xf32> to vector<2x8x8xf32>
    %41 = tpu.concatenate %37, %38, %39, %40 in 0 : vector<2x8x8xf32>, vector<2x8x8xf32>, vector<2x8x8xf32>, vector<2x8x8xf32> -> vector<8x8x8xf32>
    %42 = arith.truncf %41 : vector<8x8x8xf32> to vector<8x8x8xbf16>
    %43 = vector.extract_strided_slice %30 {offsets = [0, 0, 0], sizes = [2, 8, 8], strides = [1, 1, 1]} : vector<2x8x32xf32> to vector<2x8x8xf32>
    %44 = vector.extract_strided_slice %30 {offsets = [0, 0, 8], sizes = [2, 8, 8], strides = [1, 1, 1]} : vector<2x8x32xf32> to vector<2x8x8xf32>
    %45 = vector.extract_strided_slice %30 {offsets = [0, 0, 16], sizes = [2, 8, 8], strides = [1, 1, 1]} : vector<2x8x32xf32> to vector<2x8x8xf32>
    %46 = vector.extract_strided_slice %30 {offsets = [0, 0, 24], sizes = [2, 8, 8], strides = [1, 1, 1]} : vector<2x8x32xf32> to vector<2x8x8xf32>
    %47 = tpu.concatenate %43, %44, %45, %46 in 0 : vector<2x8x8xf32>, vector<2x8x8xf32>, vector<2x8x8xf32>, vector<2x8x8xf32> -> vector<8x8x8xf32>
    %48 = arith.truncf %47 : vector<8x8x8xf32> to vector<8x8x8xbf16>
    "tpu.trace_start"() <{level = 10 : i32, message = "bqd,bkd->bqk"}> : () -> ()
    %cst_22 = arith.constant dense<0.000000e+00> : vector<8x8x8xf32>
    %49 = tpu.matmul %36, %42, %cst_22 {dimension_numbers = #tpu.dot_dimension_numbers<[2], [2], [1], [1], [0, 0, 0, 1, 1, 1], [0], [0]>} : vector<8x8x8xbf16>, vector<8x8x8xbf16>, vector<8x8x8xf32> -> vector<8x8x8xf32>
    "tpu.trace_stop"() : () -> ()
    %50 = vector.broadcast %10 : vector<1x8x8xf32> to vector<8x8x8xf32>
    %51 = arith.addf %49, %50 : vector<8x8x8xf32>
    %cst_23 = arith.constant dense<0xFF800000> : vector<8x8xf32>
    %52 = vector.multi_reduction <maximumf>, %51, %cst_23 [2] : vector<8x8x8xf32> to vector<8x8xf32>
    %53 = vector.shape_cast %52 : vector<8x8xf32> to vector<8x8x1xf32>
    %54 = vector.broadcast %53 : vector<8x8x1xf32> to vector<8x8x8xf32>
    %55 = arith.subf %51, %54 : vector<8x8x8xf32>
    %56 = math.exp %55 : vector<8x8x8xf32>
    %cst_24 = arith.constant dense<0.000000e+00> : vector<8x8xf32>
    %57 = vector.multi_reduction <add>, %56, %cst_24 [2] : vector<8x8x8xf32> to vector<8x8xf32>
    %58 = vector.shape_cast %57 : vector<8x8xf32> to vector<8x8x1xf32>
    %59 = tpu.reciprocal %58 {approx = true} : vector<8x8x1xf32> -> vector<8x8x1xf32>
    %60 = vector.broadcast %59 : vector<8x8x1xf32> to vector<8x8x8xf32>
    %61 = arith.mulf %56, %60 : vector<8x8x8xf32>
    %62 = arith.truncf %61 : vector<8x8x8xf32> to vector<8x8x8xbf16>
    "tpu.trace_start"() <{level = 10 : i32, message = "bqk,bkd->bqd"}> : () -> ()
    %cst_25 = arith.constant dense<0.000000e+00> : vector<8x8x8xf32>
    %63 = tpu.matmul %62, %48, %cst_25 {dimension_numbers = #tpu.dot_dimension_numbers<[2], [1], [1], [2], [0, 0, 0, 1, 1, 2], [0], [0]>} : vector<8x8x8xbf16>, vector<8x8x8xbf16>, vector<8x8x8xf32> -> vector<8x8x8xf32>
    "tpu.trace_stop"() : () -> ()
    %64 = vector.extract_strided_slice %63 {offsets = [0, 0, 0], sizes = [2, 8, 8], strides = [1, 1, 1]} : vector<8x8x8xf32> to vector<2x8x8xf32>
    %65 = vector.extract_strided_slice %63 {offsets = [2, 0, 0], sizes = [2, 8, 8], strides = [1, 1, 1]} : vector<8x8x8xf32> to vector<2x8x8xf32>
    %66 = vector.extract_strided_slice %63 {offsets = [4, 0, 0], sizes = [2, 8, 8], strides = [1, 1, 1]} : vector<8x8x8xf32> to vector<2x8x8xf32>
    %67 = vector.extract_strided_slice %63 {offsets = [6, 0, 0], sizes = [2, 8, 8], strides = [1, 1, 1]} : vector<8x8x8xf32> to vector<2x8x8xf32>
    %68 = tpu.concatenate %64, %65, %66, %67 in 2 : vector<2x8x8xf32>, vector<2x8x8xf32>, vector<2x8x8xf32>, vector<2x8x8xf32> -> vector<2x8x32xf32>
    %69 = vector.shape_cast %68 : vector<2x8x32xf32> to vector<16x32xf32>
    %70 = arith.truncf %69 : vector<16x32xf32> to vector<16x32xbf16>
    %cst_26 = arith.constant dense<0.000000e+00> : vector<16x32xf32>
    %71 = tpu.matmul %70, %18, %cst_26 {dimension_numbers = #tpu.dot_dimension_numbers<[1], [0], [0], [1], [0, 0, 1, 1], [], []>} : vector<16x32xbf16>, vector<32x32xbf16>, vector<16x32xf32> -> vector<16x32xf32>
    %72 = vector.broadcast %20 : vector<1x32xf32> to vector<16x32xf32>
    %73 = arith.addf %71, %72 : vector<16x32xf32>
    %74 = vector.shape_cast %73 : vector<16x32xf32> to vector<2x8x32xf32>
    %75 = arith.addf %74, %3 : vector<2x8x32xf32>
    %c0_27 = arith.constant 0 : index
    %c0_28 = arith.constant 0 : index
    %c0_29 = arith.constant 0 : index
    %76 = vector.load %arg9[%c0_27, %c0_28, %c0_29] : memref<1x1x32xf32, #tpu.memory_space<vmem>>, vector<1x1x32xf32>
    %77 = vector.shape_cast %76 : vector<1x1x32xf32> to vector<1x32xf32>
    %c0_30 = arith.constant 0 : index
    %c0_31 = arith.constant 0 : index
    %c0_32 = arith.constant 0 : index
    %78 = vector.load %arg10[%c0_30, %c0_31, %c0_32] : memref<1x1x32xf32, #tpu.memory_space<vmem>>, vector<1x1x32xf32>
    %79 = vector.shape_cast %78 : vector<1x1x32xf32> to vector<1x32xf32>
    %cst_33 = arith.constant dense<0.000000e+00> : vector<2x8xf32>
    %80 = vector.multi_reduction <add>, %75, %cst_33 [2] : vector<2x8x32xf32> to vector<2x8xf32>
    %81 = vector.shape_cast %80 : vector<2x8xf32> to vector<2x8x1xf32>
    %cst_34 = arith.constant 3.200000e+01 : f32
    %82 = vector.broadcast %cst_34 : f32 to vector<2x8x1xf32>
    %83 = arith.divf %81, %82 : vector<2x8x1xf32>
    %84 = vector.broadcast %83 : vector<2x8x1xf32> to vector<2x8x32xf32>
    %85 = arith.subf %75, %84 : vector<2x8x32xf32>
    %86 = arith.mulf %85, %85 : vector<2x8x32xf32>
    %cst_35 = arith.constant dense<0.000000e+00> : vector<2x8xf32>
    %87 = vector.multi_reduction <add>, %86, %cst_35 [2] : vector<2x8x32xf32> to vector<2x8xf32>
    %88 = vector.shape_cast %87 : vector<2x8xf32> to vector<2x8x1xf32>
    %cst_36 = arith.constant 3.200000e+01 : f32
    %89 = vector.broadcast %cst_36 : f32 to vector<2x8x1xf32>
    %90 = arith.divf %88, %89 : vector<2x8x1xf32>
    %91 = vector.broadcast %83 : vector<2x8x1xf32> to vector<2x8x32xf32>
    %92 = arith.subf %75, %91 : vector<2x8x32xf32>
    %cst_37 = arith.constant 9.99999974E-6 : f32
    %93 = vector.broadcast %cst_37 : f32 to vector<2x8x1xf32>
    %94 = arith.addf %90, %93 : vector<2x8x1xf32>
    %95 = math.rsqrt %94 : vector<2x8x1xf32>
    %96 = vector.broadcast %95 : vector<2x8x1xf32> to vector<2x8x32xf32>
    %97 = arith.mulf %92, %96 : vector<2x8x32xf32>
    %98 = vector.shape_cast %77 : vector<1x32xf32> to vector<1x1x32xf32>
    %99 = vector.broadcast %98 : vector<1x1x32xf32> to vector<2x8x32xf32>
    %100 = arith.mulf %97, %99 : vector<2x8x32xf32>
    %101 = vector.shape_cast %79 : vector<1x32xf32> to vector<1x1x32xf32>
    %102 = vector.broadcast %101 : vector<1x1x32xf32> to vector<2x8x32xf32>
    %103 = arith.addf %100, %102 : vector<2x8x32xf32>
    %c0_38 = arith.constant 0 : index
    %c0_39 = arith.constant 0 : index
    %c0_40 = arith.constant 0 : index
    %104 = vector.load %arg2[%c0_38, %c0_39, %c0_40] : memref<2x8x32xf32, #tpu.memory_space<vmem>>, vector<2x8x32xf32>
    %c0_41 = arith.constant 0 : index
    %c0_42 = arith.constant 0 : index
    %105 = vector.load %arg3[%c0_41, %c0_42] : memref<2x8xf32, #tpu.memory_space<vmem>>, vector<2x8xf32>
    %cst_43 = arith.constant 1.000000e+00 : f32
    %106 = vector.broadcast %cst_43 : f32 to vector<2x8xf32>
    %107 = arith.subf %105, %106 : vector<2x8xf32>
    %cst_44 = arith.constant 1.000000e+20 : f32
    %108 = vector.broadcast %cst_44 : f32 to vector<2x8xf32>
    %109 = arith.mulf %107, %108 : vector<2x8xf32>
    %110 = vector.shape_cast %109 : vector<2x8xf32> to vector<2x1x8xf32>
    %c0_45 = arith.constant 0 : index
    %c0_46 = arith.constant 0 : index
    %c0_47 = arith.constant 0 : index
    %111 = vector.load %arg11[%c0_45, %c0_46, %c0_47] : memref<1x32x32xbf16, #tpu.memory_space<vmem>>, vector<1x32x32xbf16>
    %112 = vector.shape_cast %111 : vector<1x32x32xbf16> to vector<32x32xbf16>
    %c0_48 = arith.constant 0 : index
    %c0_49 = arith.constant 0 : index
    %c0_50 = arith.constant 0 : index
    %113 = vector.load %arg12[%c0_48, %c0_49, %c0_50] : memref<1x32x32xbf16, #tpu.memory_space<vmem>>, vector<1x32x32xbf16>
    %114 = vector.shape_cast %113 : vector<1x32x32xbf16> to vector<32x32xbf16>
    %c0_51 = arith.constant 0 : index
    %c0_52 = arith.constant 0 : index
    %c0_53 = arith.constant 0 : index
    %115 = vector.load %arg13[%c0_51, %c0_52, %c0_53] : memref<1x32x32xbf16, #tpu.memory_space<vmem>>, vector<1x32x32xbf16>
    %116 = vector.shape_cast %115 : vector<1x32x32xbf16> to vector<32x32xbf16>
    %c0_54 = arith.constant 0 : index
    %c0_55 = arith.constant 0 : index
    %c0_56 = arith.constant 0 : index
    %117 = vector.load %arg14[%c0_54, %c0_55, %c0_56] : memref<1x32x32xbf16, #tpu.memory_space<vmem>>, vector<1x32x32xbf16>
    %118 = vector.shape_cast %117 : vector<1x32x32xbf16> to vector<32x32xbf16>
    %c0_57 = arith.constant 0 : index
    %c0_58 = arith.constant 0 : index
    %c0_59 = arith.constant 0 : index
    %119 = vector.load %arg15[%c0_57, %c0_58, %c0_59] : memref<1x1x32xf32, #tpu.memory_space<vmem>>, vector<1x1x32xf32>
    %120 = vector.shape_cast %119 : vector<1x1x32xf32> to vector<1x32xf32>
    %121 = vector.shape_cast %103 : vector<2x8x32xf32> to vector<16x32xf32>
    %122 = arith.truncf %121 : vector<16x32xf32> to vector<16x32xbf16>
    %123 = vector.shape_cast %104 : vector<2x8x32xf32> to vector<16x32xf32>
    %124 = arith.truncf %123 : vector<16x32xf32> to vector<16x32xbf16>
    %cst_60 = arith.constant dense<0.000000e+00> : vector<16x32xf32>
    %125 = tpu.matmul %122, %112, %cst_60 {dimension_numbers = #tpu.dot_dimension_numbers<[1], [0], [0], [1], [0, 0, 1, 1], [], []>} : vector<16x32xbf16>, vector<32x32xbf16>, vector<16x32xf32> -> vector<16x32xf32>
    %126 = vector.shape_cast %125 : vector<16x32xf32> to vector<2x8x32xf32>
    %cst_61 = arith.constant dense<0.000000e+00> : vector<16x32xf32>
    %127 = tpu.matmul %124, %114, %cst_61 {dimension_numbers = #tpu.dot_dimension_numbers<[1], [0], [0], [1], [0, 0, 1, 1], [], []>} : vector<16x32xbf16>, vector<32x32xbf16>, vector<16x32xf32> -> vector<16x32xf32>
    %128 = vector.shape_cast %127 : vector<16x32xf32> to vector<2x8x32xf32>
    %cst_62 = arith.constant dense<0.000000e+00> : vector<16x32xf32>
    %129 = tpu.matmul %124, %116, %cst_62 {dimension_numbers = #tpu.dot_dimension_numbers<[1], [0], [0], [1], [0, 0, 1, 1], [], []>} : vector<16x32xbf16>, vector<32x32xbf16>, vector<16x32xf32> -> vector<16x32xf32>
    %130 = vector.shape_cast %129 : vector<16x32xf32> to vector<2x8x32xf32>
    %131 = vector.extract_strided_slice %126 {offsets = [0, 0, 0], sizes = [2, 8, 8], strides = [1, 1, 1]} : vector<2x8x32xf32> to vector<2x8x8xf32>
    %132 = vector.extract_strided_slice %126 {offsets = [0, 0, 8], sizes = [2, 8, 8], strides = [1, 1, 1]} : vector<2x8x32xf32> to vector<2x8x8xf32>
    %133 = vector.extract_strided_slice %126 {offsets = [0, 0, 16], sizes = [2, 8, 8], strides = [1, 1, 1]} : vector<2x8x32xf32> to vector<2x8x8xf32>
    %134 = vector.extract_strided_slice %126 {offsets = [0, 0, 24], sizes = [2, 8, 8], strides = [1, 1, 1]} : vector<2x8x32xf32> to vector<2x8x8xf32>
    %135 = tpu.concatenate %131, %132, %133, %134 in 0 : vector<2x8x8xf32>, vector<2x8x8xf32>, vector<2x8x8xf32>, vector<2x8x8xf32> -> vector<8x8x8xf32>
    %136 = arith.truncf %135 : vector<8x8x8xf32> to vector<8x8x8xbf16>
    %137 = vector.extract_strided_slice %128 {offsets = [0, 0, 0], sizes = [2, 8, 8], strides = [1, 1, 1]} : vector<2x8x32xf32> to vector<2x8x8xf32>
    %138 = vector.extract_strided_slice %128 {offsets = [0, 0, 8], sizes = [2, 8, 8], strides = [1, 1, 1]} : vector<2x8x32xf32> to vector<2x8x8xf32>
    %139 = vector.extract_strided_slice %128 {offsets = [0, 0, 16], sizes = [2, 8, 8], strides = [1, 1, 1]} : vector<2x8x32xf32> to vector<2x8x8xf32>
    %140 = vector.extract_strided_slice %128 {offsets = [0, 0, 24], sizes = [2, 8, 8], strides = [1, 1, 1]} : vector<2x8x32xf32> to vector<2x8x8xf32>
    %141 = tpu.concatenate %137, %138, %139, %140 in 0 : vector<2x8x8xf32>, vector<2x8x8xf32>, vector<2x8x8xf32>, vector<2x8x8xf32> -> vector<8x8x8xf32>
    %142 = arith.truncf %141 : vector<8x8x8xf32> to vector<8x8x8xbf16>
    %143 = vector.extract_strided_slice %130 {offsets = [0, 0, 0], sizes = [2, 8, 8], strides = [1, 1, 1]} : vector<2x8x32xf32> to vector<2x8x8xf32>
    %144 = vector.extract_strided_slice %130 {offsets = [0, 0, 8], sizes = [2, 8, 8], strides = [1, 1, 1]} : vector<2x8x32xf32> to vector<2x8x8xf32>
    %145 = vector.extract_strided_slice %130 {offsets = [0, 0, 16], sizes = [2, 8, 8], strides = [1, 1, 1]} : vector<2x8x32xf32> to vector<2x8x8xf32>
    %146 = vector.extract_strided_slice %130 {offsets = [0, 0, 24], sizes = [2, 8, 8], strides = [1, 1, 1]} : vector<2x8x32xf32> to vector<2x8x8xf32>
    %147 = tpu.concatenate %143, %144, %145, %146 in 0 : vector<2x8x8xf32>, vector<2x8x8xf32>, vector<2x8x8xf32>, vector<2x8x8xf32> -> vector<8x8x8xf32>
    %148 = arith.truncf %147 : vector<8x8x8xf32> to vector<8x8x8xbf16>
    "tpu.trace_start"() <{level = 10 : i32, message = "bqd,bkd->bqk"}> : () -> ()
    %cst_63 = arith.constant dense<0.000000e+00> : vector<8x8x8xf32>
    %149 = tpu.matmul %136, %142, %cst_63 {dimension_numbers = #tpu.dot_dimension_numbers<[2], [2], [1], [1], [0, 0, 0, 1, 1, 1], [0], [0]>} : vector<8x8x8xbf16>, vector<8x8x8xbf16>, vector<8x8x8xf32> -> vector<8x8x8xf32>
    "tpu.trace_stop"() : () -> ()
    %150 = tpu.concatenate %110, %110, %110, %110 in 0 : vector<2x1x8xf32>, vector<2x1x8xf32>, vector<2x1x8xf32>, vector<2x1x8xf32> -> vector<8x1x8xf32>
    %151 = vector.broadcast %150 : vector<8x1x8xf32> to vector<8x8x8xf32>
    %152 = arith.addf %149, %151 : vector<8x8x8xf32>
    %cst_64 = arith.constant dense<0xFF800000> : vector<8x8xf32>
    %153 = vector.multi_reduction <maximumf>, %152, %cst_64 [2] : vector<8x8x8xf32> to vector<8x8xf32>
    %154 = vector.shape_cast %153 : vector<8x8xf32> to vector<8x8x1xf32>
    %155 = vector.broadcast %154 : vector<8x8x1xf32> to vector<8x8x8xf32>
    %156 = arith.subf %152, %155 : vector<8x8x8xf32>
    %157 = math.exp %156 : vector<8x8x8xf32>
    %cst_65 = arith.constant dense<0.000000e+00> : vector<8x8xf32>
    %158 = vector.multi_reduction <add>, %157, %cst_65 [2] : vector<8x8x8xf32> to vector<8x8xf32>
    %159 = vector.shape_cast %158 : vector<8x8xf32> to vector<8x8x1xf32>
    %160 = tpu.reciprocal %159 {approx = true} : vector<8x8x1xf32> -> vector<8x8x1xf32>
    %161 = vector.broadcast %160 : vector<8x8x1xf32> to vector<8x8x8xf32>
    %162 = arith.mulf %157, %161 : vector<8x8x8xf32>
    %163 = arith.truncf %162 : vector<8x8x8xf32> to vector<8x8x8xbf16>
    "tpu.trace_start"() <{level = 10 : i32, message = "bqk,bkd->bqd"}> : () -> ()
    %cst_66 = arith.constant dense<0.000000e+00> : vector<8x8x8xf32>
    %164 = tpu.matmul %163, %148, %cst_66 {dimension_numbers = #tpu.dot_dimension_numbers<[2], [1], [1], [2], [0, 0, 0, 1, 1, 2], [0], [0]>} : vector<8x8x8xbf16>, vector<8x8x8xbf16>, vector<8x8x8xf32> -> vector<8x8x8xf32>
    "tpu.trace_stop"() : () -> ()
    %165 = vector.extract_strided_slice %164 {offsets = [0, 0, 0], sizes = [2, 8, 8], strides = [1, 1, 1]} : vector<8x8x8xf32> to vector<2x8x8xf32>
    %166 = vector.extract_strided_slice %164 {offsets = [2, 0, 0], sizes = [2, 8, 8], strides = [1, 1, 1]} : vector<8x8x8xf32> to vector<2x8x8xf32>
    %167 = vector.extract_strided_slice %164 {offsets = [4, 0, 0], sizes = [2, 8, 8], strides = [1, 1, 1]} : vector<8x8x8xf32> to vector<2x8x8xf32>
    %168 = vector.extract_strided_slice %164 {offsets = [6, 0, 0], sizes = [2, 8, 8], strides = [1, 1, 1]} : vector<8x8x8xf32> to vector<2x8x8xf32>
    %169 = tpu.concatenate %165, %166, %167, %168 in 2 : vector<2x8x8xf32>, vector<2x8x8xf32>, vector<2x8x8xf32>, vector<2x8x8xf32> -> vector<2x8x32xf32>
    %170 = vector.shape_cast %169 : vector<2x8x32xf32> to vector<16x32xf32>
    %171 = arith.truncf %170 : vector<16x32xf32> to vector<16x32xbf16>
    %cst_67 = arith.constant dense<0.000000e+00> : vector<16x32xf32>
    %172 = tpu.matmul %171, %118, %cst_67 {dimension_numbers = #tpu.dot_dimension_numbers<[1], [0], [0], [1], [0, 0, 1, 1], [], []>} : vector<16x32xbf16>, vector<32x32xbf16>, vector<16x32xf32> -> vector<16x32xf32>
    %173 = vector.broadcast %120 : vector<1x32xf32> to vector<16x32xf32>
    %174 = arith.addf %172, %173 : vector<16x32xf32>
    %175 = vector.shape_cast %174 : vector<16x32xf32> to vector<2x8x32xf32>
    %176 = arith.addf %175, %103 : vector<2x8x32xf32>
    %c0_68 = arith.constant 0 : index
    %c0_69 = arith.constant 0 : index
    %c0_70 = arith.constant 0 : index
    %177 = vector.load %arg16[%c0_68, %c0_69, %c0_70] : memref<1x1x32xf32, #tpu.memory_space<vmem>>, vector<1x1x32xf32>
    %178 = vector.shape_cast %177 : vector<1x1x32xf32> to vector<1x32xf32>
    %c0_71 = arith.constant 0 : index
    %c0_72 = arith.constant 0 : index
    %c0_73 = arith.constant 0 : index
    %179 = vector.load %arg17[%c0_71, %c0_72, %c0_73] : memref<1x1x32xf32, #tpu.memory_space<vmem>>, vector<1x1x32xf32>
    %180 = vector.shape_cast %179 : vector<1x1x32xf32> to vector<1x32xf32>
    %cst_74 = arith.constant dense<0.000000e+00> : vector<2x8xf32>
    %181 = vector.multi_reduction <add>, %176, %cst_74 [2] : vector<2x8x32xf32> to vector<2x8xf32>
    %182 = vector.shape_cast %181 : vector<2x8xf32> to vector<2x8x1xf32>
    %cst_75 = arith.constant 3.200000e+01 : f32
    %183 = vector.broadcast %cst_75 : f32 to vector<2x8x1xf32>
    %184 = arith.divf %182, %183 : vector<2x8x1xf32>
    %185 = vector.broadcast %184 : vector<2x8x1xf32> to vector<2x8x32xf32>
    %186 = arith.subf %176, %185 : vector<2x8x32xf32>
    %187 = arith.mulf %186, %186 : vector<2x8x32xf32>
    %cst_76 = arith.constant dense<0.000000e+00> : vector<2x8xf32>
    %188 = vector.multi_reduction <add>, %187, %cst_76 [2] : vector<2x8x32xf32> to vector<2x8xf32>
    %189 = vector.shape_cast %188 : vector<2x8xf32> to vector<2x8x1xf32>
    %cst_77 = arith.constant 3.200000e+01 : f32
    %190 = vector.broadcast %cst_77 : f32 to vector<2x8x1xf32>
    %191 = arith.divf %189, %190 : vector<2x8x1xf32>
    %192 = vector.broadcast %184 : vector<2x8x1xf32> to vector<2x8x32xf32>
    %193 = arith.subf %176, %192 : vector<2x8x32xf32>
    %cst_78 = arith.constant 9.99999974E-6 : f32
    %194 = vector.broadcast %cst_78 : f32 to vector<2x8x1xf32>
    %195 = arith.addf %191, %194 : vector<2x8x1xf32>
    %196 = math.rsqrt %195 : vector<2x8x1xf32>
    %197 = vector.broadcast %196 : vector<2x8x1xf32> to vector<2x8x32xf32>
    %198 = arith.mulf %193, %197 : vector<2x8x32xf32>
    %199 = vector.shape_cast %178 : vector<1x32xf32> to vector<1x1x32xf32>
    %200 = vector.broadcast %199 : vector<1x1x32xf32> to vector<2x8x32xf32>
    %201 = arith.mulf %198, %200 : vector<2x8x32xf32>
    %202 = vector.shape_cast %180 : vector<1x32xf32> to vector<1x1x32xf32>
    %203 = vector.broadcast %202 : vector<1x1x32xf32> to vector<2x8x32xf32>
    %204 = arith.addf %201, %203 : vector<2x8x32xf32>
    %c0_79 = arith.constant 0 : index
    %c0_80 = arith.constant 0 : index
    %c0_81 = arith.constant 0 : index
    %205 = vector.load %arg18[%c0_79, %c0_80, %c0_81] : memref<1x32x128xbf16, #tpu.memory_space<vmem>>, vector<1x32x128xbf16>
    %206 = vector.shape_cast %205 : vector<1x32x128xbf16> to vector<32x128xbf16>
    %c0_82 = arith.constant 0 : index
    %c0_83 = arith.constant 0 : index
    %c0_84 = arith.constant 0 : index
    %207 = vector.load %arg19[%c0_82, %c0_83, %c0_84] : memref<1x1x128xf32, #tpu.memory_space<vmem>>, vector<1x1x128xf32>
    %208 = vector.shape_cast %207 : vector<1x1x128xf32> to vector<1x128xf32>
    %c0_85 = arith.constant 0 : index
    %c0_86 = arith.constant 0 : index
    %c0_87 = arith.constant 0 : index
    %209 = vector.load %arg20[%c0_85, %c0_86, %c0_87] : memref<1x128x32xbf16, #tpu.memory_space<vmem>>, vector<1x128x32xbf16>
    %210 = vector.shape_cast %209 : vector<1x128x32xbf16> to vector<128x32xbf16>
    %c0_88 = arith.constant 0 : index
    %c0_89 = arith.constant 0 : index
    %c0_90 = arith.constant 0 : index
    %211 = vector.load %arg21[%c0_88, %c0_89, %c0_90] : memref<1x1x32xf32, #tpu.memory_space<vmem>>, vector<1x1x32xf32>
    %212 = vector.shape_cast %211 : vector<1x1x32xf32> to vector<1x32xf32>
    %213 = vector.shape_cast %204 : vector<2x8x32xf32> to vector<16x32xf32>
    %214 = arith.truncf %213 : vector<16x32xf32> to vector<16x32xbf16>
    %cst_91 = arith.constant dense<0.000000e+00> : vector<16x128xf32>
    %215 = tpu.matmul %214, %206, %cst_91 {dimension_numbers = #tpu.dot_dimension_numbers<[1], [0], [0], [1], [0, 0, 1, 1], [], []>} : vector<16x32xbf16>, vector<32x128xbf16>, vector<16x128xf32> -> vector<16x128xf32>
    %216 = vector.broadcast %208 : vector<1x128xf32> to vector<16x128xf32>
    %217 = arith.addf %215, %216 : vector<16x128xf32>
    %cst_92 = arith.constant 0.000000e+00 : f32
    %218 = vector.broadcast %cst_92 : f32 to vector<16x128xf32>
    %219 = arith.maximumf %217, %218 : vector<16x128xf32>
    %220 = arith.truncf %219 : vector<16x128xf32> to vector<16x128xbf16>
    %cst_93 = arith.constant dense<0.000000e+00> : vector<16x32xf32>
    %221 = tpu.matmul %220, %210, %cst_93 {dimension_numbers = #tpu.dot_dimension_numbers<[1], [0], [0], [1], [0, 0, 1, 1], [], []>} : vector<16x128xbf16>, vector<128x32xbf16>, vector<16x32xf32> -> vector<16x32xf32>
    %222 = vector.broadcast %212 : vector<1x32xf32> to vector<16x32xf32>
    %223 = arith.addf %221, %222 : vector<16x32xf32>
    %224 = vector.shape_cast %223 : vector<16x32xf32> to vector<2x8x32xf32>
    %225 = arith.addf %224, %204 : vector<2x8x32xf32>
    %c0_94 = arith.constant 0 : index
    %c0_95 = arith.constant 0 : index
    %c0_96 = arith.constant 0 : index
    %226 = vector.load %arg22[%c0_94, %c0_95, %c0_96] : memref<1x1x32xf32, #tpu.memory_space<vmem>>, vector<1x1x32xf32>
    %227 = vector.shape_cast %226 : vector<1x1x32xf32> to vector<1x32xf32>
    %c0_97 = arith.constant 0 : index
    %c0_98 = arith.constant 0 : index
    %c0_99 = arith.constant 0 : index
    %228 = vector.load %arg23[%c0_97, %c0_98, %c0_99] : memref<1x1x32xf32, #tpu.memory_space<vmem>>, vector<1x1x32xf32>
    %229 = vector.shape_cast %228 : vector<1x1x32xf32> to vector<1x32xf32>
    %cst_100 = arith.constant dense<0.000000e+00> : vector<2x8xf32>
    %230 = vector.multi_reduction <add>, %225, %cst_100 [2] : vector<2x8x32xf32> to vector<2x8xf32>
    %231 = vector.shape_cast %230 : vector<2x8xf32> to vector<2x8x1xf32>
    %cst_101 = arith.constant 3.200000e+01 : f32
    %232 = vector.broadcast %cst_101 : f32 to vector<2x8x1xf32>
    %233 = arith.divf %231, %232 : vector<2x8x1xf32>
    %234 = vector.broadcast %233 : vector<2x8x1xf32> to vector<2x8x32xf32>
    %235 = arith.subf %225, %234 : vector<2x8x32xf32>
    %236 = arith.mulf %235, %235 : vector<2x8x32xf32>
    %cst_102 = arith.constant dense<0.000000e+00> : vector<2x8xf32>
    %237 = vector.multi_reduction <add>, %236, %cst_102 [2] : vector<2x8x32xf32> to vector<2x8xf32>
    %238 = vector.shape_cast %237 : vector<2x8xf32> to vector<2x8x1xf32>
    %cst_103 = arith.constant 3.200000e+01 : f32
    %239 = vector.broadcast %cst_103 : f32 to vector<2x8x1xf32>
    %240 = arith.divf %238, %239 : vector<2x8x1xf32>
    %241 = vector.broadcast %233 : vector<2x8x1xf32> to vector<2x8x32xf32>
    %242 = arith.subf %225, %241 : vector<2x8x32xf32>
    %cst_104 = arith.constant 9.99999974E-6 : f32
    %243 = vector.broadcast %cst_104 : f32 to vector<2x8x1xf32>
    %244 = arith.addf %240, %243 : vector<2x8x1xf32>
    %245 = math.rsqrt %244 : vector<2x8x1xf32>
    %246 = vector.broadcast %245 : vector<2x8x1xf32> to vector<2x8x32xf32>
    %247 = arith.mulf %242, %246 : vector<2x8x32xf32>
    %248 = vector.shape_cast %227 : vector<1x32xf32> to vector<1x1x32xf32>
    %249 = vector.broadcast %248 : vector<1x1x32xf32> to vector<2x8x32xf32>
    %250 = arith.mulf %247, %249 : vector<2x8x32xf32>
    %251 = vector.shape_cast %229 : vector<1x32xf32> to vector<1x1x32xf32>
    %252 = vector.broadcast %251 : vector<1x1x32xf32> to vector<2x8x32xf32>
    %253 = arith.addf %250, %252 : vector<2x8x32xf32>
    %c0_105 = arith.constant 0 : index
    %c0_106 = arith.constant 0 : index
    %c0_107 = arith.constant 0 : index
    %254 = vector.load %arg27[%c0_105, %c0_106, %c0_107] : memref<2x8x32xf32, #tpu.memory_space<vmem>>, vector<2x8x32xf32>
    tpu.vector_store %arg27[%c0_105, %c0_106, %c0_107], %253 {strides = array<i32>} : memref<2x8x32xf32, #tpu.memory_space<vmem>>, vector<2x8x32xf32>,
    %c1_i32 = arith.constant 1 : i32
    %255 = arith.cmpi eq, %arg0, %c1_i32 : i32
    %256 = arith.extui %255 : i1 to i32
    %c0_i32_108 = arith.constant 0 : i32
    %257 = arith.cmpi ne, %256, %c0_i32_108 : i32
    scf.if %257 {
      %258 = vector.shape_cast %253 : vector<2x8x32xf32> to vector<16x32xf32>
      %259 = arith.truncf %258 : vector<16x32xf32> to vector<16x32xbf16>
      %c0_109 = arith.constant 0 : index
      %c0_110 = arith.constant 0 : index
      %260 = vector.load %arg24[%c0_109, %c0_110] : memref<32x128xbf16, #tpu.memory_space<vmem>>, vector<32x128xbf16>
      %cst_111 = arith.constant dense<0.000000e+00> : vector<16x128xf32>
      %261 = tpu.matmul %259, %260, %cst_111 {dimension_numbers = #tpu.dot_dimension_numbers<[1], [0], [0], [1], [0, 0, 1, 1], [], []>} : vector<16x32xbf16>, vector<32x128xbf16>, vector<16x128xf32> -> vector<16x128xf32>
      %c0_112 = arith.constant 0 : index
      %c0_113 = arith.constant 0 : index
      %262 = vector.load %arg25[%c0_112, %c0_113] : memref<1x128xf32, #tpu.memory_space<vmem>>, vector<1x128xf32>
      %263 = vector.broadcast %262 : vector<1x128xf32> to vector<16x128xf32>
      %264 = arith.addf %261, %263 : vector<16x128xf32>
      %265 = vector.shape_cast %264 : vector<16x128xf32> to vector<2x8x128xf32>
      %c0_114 = arith.constant 0 : index
      %c0_115 = arith.constant 0 : index
      %c0_116 = arith.constant 0 : index
      %266 = vector.load %arg26[%c0_114, %c0_115, %c0_116] : memref<2x8x128xf32, #tpu.memory_space<vmem>>, vector<2x8x128xf32>
      tpu.vector_store %arg26[%c0_114, %c0_115, %c0_116], %265 {strides = array<i32>} : memref<2x8x128xf32, #tpu.memory_space<vmem>>, vector<2x8x128xf32>,
    } else {
    }
    return
  }
  func.func @transform_0(%arg0: i32) -> (i32, i32, i32) {
    %c0_i32 = arith.constant 0 : i32
    %c0_i32_0 = arith.constant 0 : i32
    %c0_i32_1 = arith.constant 0 : i32
    %c0_i32_2 = arith.constant 0 : i32
    return %c0_i32, %c0_i32_0, %c0_i32_1 : i32, i32, i32
  }
  func.func @transform_1(%arg0: i32) -> (i32, i32, i32) {
    %c0_i32 = arith.constant 0 : i32
    %c0_i32_0 = arith.constant 0 : i32
    %c0_i32_1 = arith.constant 0 : i32
    %c0_i32_2 = arith.constant 0 : i32
    return %c0_i32, %c0_i32_0, %c0_i32_1 : i32, i32, i32
  }
  func.func @transform_2(%arg0: i32) -> (i32, i32) {
    %c0_i32 = arith.constant 0 : i32
    %c0_i32_0 = arith.constant 0 : i32
    %c0_i32_1 = arith.constant 0 : i32
    return %c0_i32, %c0_i32_0 : i32, i32
  }
  func.func @transform_3(%arg0: i32) -> (i32, i32, i32) {
    %c0_i32 = arith.constant 0 : i32
    %c0_i32_0 = arith.constant 0 : i32
    %c0_i32_1 = arith.constant 0 : i32
    return %arg0, %c0_i32, %c0_i32_0 : i32, i32, i32
  }
  func.func @transform_4(%arg0: i32) -> (i32, i32, i32) {
    %c0_i32 = arith.constant 0 : i32
    %c0_i32_0 = arith.constant 0 : i32
    %c0_i32_1 = arith.constant 0 : i32
    return %arg0, %c0_i32, %c0_i32_0 : i32, i32, i32
  }
  func.func @transform_5(%arg0: i32) -> (i32, i32, i32) {
    %c0_i32 = arith.constant 0 : i32
    %c0_i32_0 = arith.constant 0 : i32
    %c0_i32_1 = arith.constant 0 : i32
    return %arg0, %c0_i32, %c0_i32_0 : i32, i32, i32
  }
  func.func @transform_6(%arg0: i32) -> (i32, i32, i32) {
    %c0_i32 = arith.constant 0 : i32
    %c0_i32_0 = arith.constant 0 : i32
    %c0_i32_1 = arith.constant 0 : i32
    return %arg0, %c0_i32, %c0_i32_0 : i32, i32, i32
  }
  func.func @transform_7(%arg0: i32) -> (i32, i32, i32) {
    %c0_i32 = arith.constant 0 : i32
    %c0_i32_0 = arith.constant 0 : i32
    %c0_i32_1 = arith.constant 0 : i32
    return %arg0, %c0_i32, %c0_i32_0 : i32, i32, i32
  }
  func.func @transform_8(%arg0: i32) -> (i32, i32, i32) {
    %c0_i32 = arith.constant 0 : i32
    %c0_i32_0 = arith.constant 0 : i32
    %c0_i32_1 = arith.constant 0 : i32
    return %arg0, %c0_i32, %c0_i32_0 : i32, i32, i32
  }
  func.func @transform_9(%arg0: i32) -> (i32, i32, i32) {
    %c0_i32 = arith.constant 0 : i32
    %c0_i32_0 = arith.constant 0 : i32
    %c0_i32_1 = arith.constant 0 : i32
    return %arg0, %c0_i32, %c0_i32_0 : i32, i32, i32
  }
  func.func @transform_10(%arg0: i32) -> (i32, i32, i32) {
    %c0_i32 = arith.constant 0 : i32
    %c0_i32_0 = arith.constant 0 : i32
    %c0_i32_1 = arith.constant 0 : i32
    return %arg0, %c0_i32, %c0_i32_0 : i32, i32, i32
  }
  func.func @transform_11(%arg0: i32) -> (i32, i32, i32) {
    %c0_i32 = arith.constant 0 : i32
    %c0_i32_0 = arith.constant 0 : i32
    %c0_i32_1 = arith.constant 0 : i32
    return %arg0, %c0_i32, %c0_i32_0 : i32, i32, i32
  }
  func.func @transform_12(%arg0: i32) -> (i32, i32, i32) {
    %c0_i32 = arith.constant 0 : i32
    %c0_i32_0 = arith.constant 0 : i32
    %c0_i32_1 = arith.constant 0 : i32
    return %arg0, %c0_i32, %c0_i32_0 : i32, i32, i32
  }
  func.func @transform_13(%arg0: i32) -> (i32, i32, i32) {
    %c0_i32 = arith.constant 0 : i32
    %c0_i32_0 = arith.constant 0 : i32
    %c0_i32_1 = arith.constant 0 : i32
    return %arg0, %c0_i32, %c0_i32_0 : i32, i32, i32
  }
  func.func @transform_14(%arg0: i32) -> (i32, i32, i32) {
    %c0_i32 = arith.constant 0 : i32
    %c0_i32_0 = arith.constant 0 : i32
    %c0_i32_1 = arith.constant 0 : i32
    return %arg0, %c0_i32, %c0_i32_0 : i32, i32, i32
  }
  func.func @transform_15(%arg0: i32) -> (i32, i32, i32) {
    %c0_i32 = arith.constant 0 : i32
    %c0_i32_0 = arith.constant 0 : i32
    %c0_i32_1 = arith.constant 0 : i32
    return %arg0, %c0_i32, %c0_i32_0 : i32, i32, i32
  }
  func.func @transform_16(%arg0: i32) -> (i32, i32, i32) {
    %c0_i32 = arith.constant 0 : i32
    %c0_i32_0 = arith.constant 0 : i32
    %c0_i32_1 = arith.constant 0 : i32
    return %arg0, %c0_i32, %c0_i32_0 : i32, i32, i32
  }
  func.func @transform_17(%arg0: i32) -> (i32, i32, i32) {
    %c0_i32 = arith.constant 0 : i32
    %c0_i32_0 = arith.constant 0 : i32
    %c0_i32_1 = arith.constant 0 : i32
    return %arg0, %c0_i32, %c0_i32_0 : i32, i32, i32
  }
  func.func @transform_18(%arg0: i32) -> (i32, i32, i32) {
    %c0_i32 = arith.constant 0 : i32
    %c0_i32_0 = arith.constant 0 : i32
    %c0_i32_1 = arith.constant 0 : i32
    return %arg0, %c0_i32, %c0_i32_0 : i32, i32, i32
  }
  func.func @transform_19(%arg0: i32) -> (i32, i32, i32) {
    %c0_i32 = arith.constant 0 : i32
    %c0_i32_0 = arith.constant 0 : i32
    %c0_i32_1 = arith.constant 0 : i32
    return %arg0, %c0_i32, %c0_i32_0 : i32, i32, i32
  }
  func.func @transform_20(%arg0: i32) -> (i32, i32, i32) {
    %c0_i32 = arith.constant 0 : i32
    %c0_i32_0 = arith.constant 0 : i32
    %c0_i32_1 = arith.constant 0 : i32
    return %arg0, %c0_i32, %c0_i32_0 : i32, i32, i32
  }
  func.func @transform_21(%arg0: i32) -> (i32, i32, i32) {
    %c0_i32 = arith.constant 0 : i32
    %c0_i32_0 = arith.constant 0 : i32
    %c0_i32_1 = arith.constant 0 : i32
    return %arg0, %c0_i32, %c0_i32_0 : i32, i32, i32
  }
  func.func @transform_22(%arg0: i32) -> (i32, i32, i32) {
    %c0_i32 = arith.constant 0 : i32
    %c0_i32_0 = arith.constant 0 : i32
    %c0_i32_1 = arith.constant 0 : i32
    return %arg0, %c0_i32, %c0_i32_0 : i32, i32, i32
  }
  func.func @transform_23(%arg0: i32) -> (i32, i32) {
    %c0_i32 = arith.constant 0 : i32
    %c0_i32_0 = arith.constant 0 : i32
    %c0_i32_1 = arith.constant 0 : i32
    return %c0_i32, %c0_i32_0 : i32, i32
  }
  func.func @transform_24(%arg0: i32) -> (i32, i32) {
    %c0_i32 = arith.constant 0 : i32
    %c0_i32_0 = arith.constant 0 : i32
    %c0_i32_1 = arith.constant 0 : i32
    return %c0_i32, %c0_i32_0 : i32, i32
  }
  func.func @transform_25(%arg0: i32) -> (i32, i32, i32) {
    %c0_i32 = arith.constant 0 : i32
    %c0_i32_0 = arith.constant 0 : i32
    %c0_i32_1 = arith.constant 0 : i32
    %c0_i32_2 = arith.constant 0 : i32
    return %c0_i32, %c0_i32_0, %c0_i32_1 : i32, i32, i32
  }
}

</mosaic_0001>

<bundles_post_ra>
// kernel: transformer_fwd.2
= control target key start
LH: loop header
LB: loop body
LE: loop exit
PB: predicated region body
PF: predicated region fallthrough
CT: control target
= control target key end

     0   :  { %s2865_s18 = smov 0   ;;  %s3213_s0 = inlined_call_operand.vmem [shape: f32[2,8,32], index: 0, kind: input, shape index: {}]   ;;  %s3214_s1 = inlined_call_operand.vmem [shape: f32[2,8], index: 1, kind: input, shape index: {}]   ;;  %s3215_s2 = inlined_call_operand.vmem [shape: bf16[2,32,32], index: 2, kind: input, shape index: {}]   ;;  %s3216_s3 = inlined_call_operand.vmem [shape: bf16[2,32,32], index: 3, kind: input, shape index: {}]   ;;  %s3217_s4 = inlined_call_operand.vmem [shape: bf16[2,32,32], index: 4, kind: input, shape index: {}]   ;;  %s3218_s5 = inlined_call_operand.vmem [shape: bf16[2,32,32], index: 5, kind: input, shape index: {}]   ;;  %s3219_s6 = inlined_call_operand.vmem [shape: f32[2,1,32], index: 6, kind: input, shape index: {}]   ;;  %s3220_s7 = inlined_call_operand.vmem [shape: f32[2,1,32], index: 7, kind: input, shape index: {}]   ;;  %s3221_s8 = inlined_call_operand.vmem [shape: f32[2,1,32], index: 8, kind: input, shape index: {}]   ;;  %s3222_s9 = inlined_call_operand.vmem [shape: bf16[2,32,128], index: 9, kind: input, shape index: {}]   ;;  %s3223_s10 = inlined_call_operand.vmem [shape: f32[2,1,128], index: 10, kind: input, shape index: {}]   ;;  %s3224_s11 = inlined_call_operand.vmem [shape: bf16[2,128,32], index: 11, kind: input, shape index: {}]   ;;  %s3225_s12 = inlined_call_operand.vmem [shape: f32[2,1,32], index: 12, kind: input, shape index: {}]   ;;  %s3226_s13 = inlined_call_operand.vmem [shape: f32[2,1,32], index: 13, kind: input, shape index: {}]   ;;  %s3227_s14 = inlined_call_operand.vmem [shape: f32[2,1,32], index: 14, kind: input, shape index: {}]   ;;  %s3228_s15 = inlined_call_operand.vmem [shape: f32[2,8,32], index: 15, kind: output, shape index: {}]  }
   0x1   :  { %3233 = sst [smem:[#allocation3_spill]] %s3213_s0 }
   0x2   :  { %3234 = sst [smem:[#allocation4_spill]] %s3214_s1 }
   0x3   :  { %3235 = sst [smem:[#allocation5_spill]] %s3215_s2 }
   0x4   :  { %3236 = sst [smem:[#allocation6_spill]] %s3216_s3 }
   0x5   :  { %3237 = sst [smem:[#allocation7_spill]] %s3217_s4 }
   0x6   :  { %3238 = sst [smem:[#allocation8_spill]] %s3218_s5 }
   0x7   :  { %3239 = sst [smem:[#allocation9_spill]] %s3219_s6 }
   0x8   :  { %3240 = sst [smem:[#allocation10_spill]] %s3228_s15 }
   0x9 LB: > { %3241 = sst [smem:[#allocation2_spill]] %s2774_s18  ;;  %s2349_s19 = sadd.s32 4294967295, %s2774_s18   ;;  %s2774_s18 = sphi %s2865_s18, %s25_s18  }
   0xa   : > { %p2352_p0 = scmp.ge.s32.totalorder %s2774_s18, 1  ;;  %p538_p1 = scmp.lt.s32.totalorder %s2774_s18, 3 }
   0xc   : > { %p539_p2 = pnand %p2352_p0, %p538_p1 }
   0xd   : > { %p627_p3 = scmp.lt.s32.totalorder (!%p539_p2), %s2349_s19, 1  ;;  %s3243_s2 = sld [smem:[#allocation5_spill]] (!%p539_p2) }
   0xe   : > { %542 = sbr.rel (%p539_p2) target bundleno = 2446 (0x98e), region = 80  ;;  %s3244_s3 = sld [smem:[#allocation6_spill]] (!%p539_p2) }
   0xf   : > { %s3245_s4 = sld [smem:[#allocation7_spill]] (!%p539_p2)  ;;  %p2365_p4 = scmp.ne.s32.totalorder (!%p539_p2), %s2349_s19, 0 }
  0x10   : > { %s3246_s5 = sld [smem:[#allocation8_spill]] (!%p539_p2) }
  0x13   : > { %s2873_s20 = scalar_select %p627_p3, %s2349_s19, 1 }
  0x14   : > { %s3248_s23 = sld [smem:[#allocation10_spill]] (!%p2365_p4) }
  0x15   : > { %s2415_s21 = sshll.u32 %s2873_s20, 4  ;;  %s2420_s1 = sshll.u32 %s2873_s20, 6 }
  0x16   : > { %s631_s27 = scalar_lea.vmem %s3243_s2, %s2415_s21  ;;  %s2886_s30 = scalar_lea.vmem %s3244_s3, %s2415_s21 }
  0x17   : > { %s2891_s18 = scalar_lea.vmem %s3245_s4, %s2415_s21  ;;  %s2896_s0 = scalar_lea.vmem %s3246_s5, %s2415_s21 }
  0x18   : > { %s2909_s3 = scalar_lea.vmem %s3222_s9, %s2415_s21  ;;  %s671_s6 = scalar_lea.vmem %s3225_s12, %s2873_s20 }
  0x19   : > { %s2923_s25 = scalar_lea.vmem %s3224_s11, %s2420_s1  ;;  %s674_s2 = scalar_lea.vmem %s3226_s13, %s2873_s20 }
  0x1a   : > { %s677_s28 = scalar_lea.vmem %s3227_s14, %s2873_s20  ;;  %682 = sbr.rel (%p2365_p4) target bundleno = 35 (0x23), region = 84 }
  0x1b   : > { %s3247_s4 = sld [smem:[#allocation3_spill]] (!%p2365_p4) }
  0x1f   : > { %vm685_vm0 = vcmask 261120  }
  0x21   : > { %v683_v0 = vld [vmem:[%s3247_s4] sm:$0xff]  ;;  %v684_v1 = vld [vmem:[%s3247_s4 + $0x8] sm:$0xff] }
  0x22   : > { %686 = vst.msk [vmem:[%s3248_s23] sm:$0xff] %vm685_vm0, %v683_v0  ;;  %687 = vst.msk [vmem:[%s3248_s23 + $0x8] sm:$0xff] %vm685_vm0, %v684_v1 }
  0x23 PF: > { %v2710_v2 = vld [vmem:[%s631_s27 + $0x8] sm:$0xff]   ;;  %v2776_v3 = vmov 0.0   ;;  %v2711_v4 = vld [vmem:[%s631_s27] sm:$0xff]   ;;  %vm2777_vm1 = vmmov 0   ;;  %s3249_s29 = sld [smem:[#allocation10_spill]]  ;;  %vm746_vm2 = vcmask 261120   ;;  %s3253_s17 = scalar_lea.vmem %s3220_s7, %s2873_s20 }
  0x24   : > { %2477 = vmatprep.subr.bf16.mxu0 %v2776_v3  ;;  %2501 = vmatprep.subr.bf16.mxu1 %v2776_v3  ;;  %v2712_v7 = vld [vmem:[%s2886_s30 + $0x8] sm:$0xff]   ;;  %v2713_v9 = vld [vmem:[%s2886_s30] sm:$0xff]   ;;  %vm991_vm3 = vcmask 64512   ;;  %s2779_s27 = smov 120   ;;  %s2780_s30 = smov 104   ;;  %vm1459_vm4 = vcmask 1043456  }
  0x25   : > { %2478 = vmatpush3.bf16.msra.mxu0 %v2710_v2  ;;  %2481 = vmatprep.mubr.msk.bf16.mxu0 %vm2777_vm1, %v2776_v3  ;;  %v2714_v10 = vld [vmem:[%s2891_s18 + $0x8] sm:$0xff]   ;;  %v2715_v11 = vld [vmem:[%s2891_s18] sm:$0xff]   ;;  %s2778_s18 = smov 112   ;;  %s3250_s1 = sld [smem:[#allocation4_spill]]  ;;  %vm1851_vm5 = vcmask 130048   ;;  %vm1854_vm6 = vcmask 195584  }
  0x26   : > { %2479 = vmatprep.subr.bf16.mxu0 %v2776_v3  ;;  %2503 = vmatprep.mubr.msk.bf16.mxu1 %vm2777_vm1, %v2776_v3  ;;  %s2782_s22 = smov 8   ;;  %s2783_s23 = smov 16  }
  0x27   : > { %s3251_s19 = sld [smem:[#allocation9_spill]] }
  0x29   : > { %v2952_v5 = vld [vmem:[%s3249_s29] sm:$0xff]  ;;  %v2957_v6 = vld [vmem:[%s3249_s29 + $0x8] sm:$0xff]  ;;  %2480 = vmatpush3.bf16.msra.mxu0 %v2711_v4 }
  0x2a   : > { %v733_v8 = vpack.c.bf16 %v2957_v6, %v2952_v5  ;;  %2485 = vmatprep.subr.bf16.mxu0 %v2776_v3 }
  0x2c   : > { %2482 = vmatmul.mubr.msk.bf16.vlgmr.msra.gmra.mxu0 %vm746_vm2, %v733_v8 }
  0x2d   : > { %2486 = vmatpush3.bf16.msra.mxu0 %v2712_v7  ;;  %2489 = vmatprep.mubr.msk.bf16.mxu0 %vm2777_vm1, %v2776_v3  ;;  %s3252_s21 = scalar_lea.vmem %s3251_s19, %s2873_s20 }
  0x2e   : > { %2487 = vmatprep.subr.bf16.mxu0 %v2776_v3 }
  0x31   : > { %2488 = vmatpush3.bf16.msra.mxu0 %v2713_v9 }
  0x32   : > { %2493 = vmatprep.subr.bf16.mxu0 %v2776_v3 }
  0x34   : > { %2490 = vmatmul.mubr.msk.bf16.vlgmr.msra.gmra.mxu0 %vm746_vm2, %v733_v8 }
  0x35   : > { %2497 = vmatprep.mubr.msk.bf16.mxu0 %vm2777_vm1, %v2776_v3  ;;  %2494 = vmatpush3.bf16.msra.mxu0 %v2714_v10 }
  0x36   : > { %2495 = vmatprep.subr.bf16.mxu0 %v2776_v3 }
  0x39   : > { %2496 = vmatpush3.bf16.msra.mxu0 %v2715_v11  ;;  %v2781_v11 = vmov 1966171168  }
  0x3a   : > { %2507 = vmatprep.subr.bf16.mxu0 %v2776_v3 }
  0x3c   : > { %2498 = vmatmul.mubr.msk.bf16.vlgmr.msra.gmra.mxu0 %vm746_vm2, %v733_v8 }
  0x3d   : > { %2509 = vmatprep.mubr.msk.bf16.mxu0 %vm2777_vm1, %v2776_v3 }
  0xec   : > { %v784_v12 = vpop.f32.mrf.mxu0 }
  0xed   : > { %v917_v25 = vpack.c.bf16 %v784_v12, %v784_v12 }
  0xee   : > { %v2483_v13 = vpop.f32.mrf.mxu0 }
  0xef   : > { %v697_v13 = vlaneseq }
  0xf0   : > { %v787_v14 = vpop.f32.mrf.mxu0 }
  0xf1   : > { %v2665_v26 = vpack.i.bf16 %v787_v14, %v784_v12  ;;  %v918_v27 = vpack.c.bf16 %v787_v14, %v787_v14  ;;  %v695_v12 = vunpack.c.l.s4 %v2781_v11  ;;  %v690_v14 = vld [vmem:[%s3250_s1] sm:$0x3]  ;;  %s3255_s1 = scalar_lea.vmem %s3223_s10, %s2873_s20 }
  0xf2   : > { %v2484_v15 = vpop.f32.mrf.mxu0 }
  0xf3   : > { %v2366_v15 = vadd.f32 -1.0, %v690_v14 }
  0xf4   : > { %v837_v16 = vpop.f32.mrf.mxu0 }
  0xf5   : > { %v945_v17 = vpack.c.bf16 %v837_v16, %v837_v16 }
  0xf6   : > { %v2491_v18 = vpop.f32.mrf.mxu0 }
  0xf7   : > { %v996_v19 = vsel %vm991_vm3, %v945_v17, 0  ;;  %v698_v17 = vshrl.u32 %v697_v13, 7  ;;  %v692_v18 = vmul.f32 1e+20, %v2366_v15 }
  0xf8   : > { %v840_v20 = vpop.f32.mrf.mxu0  ;;  %2502 = vmatpush3.bf16.xpose.msra.mxu1 %v996_v19 }
  0xf9   : > { %v2660_v21 = vpack.i.bf16 %v840_v20, %v837_v16  ;;  %v946_v22 = vpack.c.bf16 %v840_v20, %v840_v20  ;;  %2513 = vmatprep.subr.bf16.mxu1 %v2776_v3  ;;  %v696_v16 = vunpack.c.0.s8 %v695_v12 }
  0xfa   : > { %v2492_v23 = vpop.f32.mrf.mxu0 }
  0xfb   : > { %2661 = vrot.lane.b32.xlu1 %v2660_v21, %s2778_s18  ;;  %2651 = vrot.lane.b32.xlu0 %v2660_v21, %s2779_s27  ;;  %v1042_v24 = vsel %vm991_vm3, %v946_v22, 0  ;;  %v699_v19 = vsub.s32 %v696_v16, %v698_v17  ;;  %v983_v22 = vsub.s32 0, %v698_v17 }
  0xfc   : > { %2508 = vmatpush3.bf16.xpose.msra.mxu0 %v1042_v24  ;;  %v2998_v28 = vpop.f32.mrf.mxu0 }
  0xfd   : > { %2519 = vmatprep.subr.bf16.mxu0 %v2776_v3  ;;  %v973_v2 = vpack.c.bf16 %v2998_v28, %v2998_v28  ;;  %v700_v20 = vrot.slane %v692_v18, %v699_v19 }
  0xfe   : > { %v2499_v29 = vpop.f32.mrf.mxu0 }
  0xff   : > { %2504 = vmatmul.mubr.msk.bf16.vlgmr.msra.gmra.mxu1 %vm991_vm3, %v917_v25  ;;  %2666 = vrot.lane.b32.xlu1 %v2665_v26, %s2778_s18  ;;  %v1461_v9 = vsel %vm1459_vm4, %v973_v2, 0  ;;  %v701_v23 = vcombine.high %v700_v20, %v700_v20 }
 0x100   : > { %2656 = vrot.lane.b32.xlu0 %v2665_v26, %s2779_s27  ;;  %2515 = vmatprep.mubr.msk.bf16.mxu1 %vm2777_vm1, %v2776_v3  ;;  %v3000_v30 = vpop.f32.mrf.mxu0 }
 0x101   : > { %v974_v4 = vpack.c.bf16 %v3000_v30, %v3000_v30  ;;  %v715_v25 = vrot.slane %v701_v23, %v699_v19 }
 0x102   : > { %v2500_v31 = vpop.f32.mrf.mxu0 }
 0x103   : > { %2676 = vrot.lane.b32.xlu1 %v2665_v26, %s2780_s30  ;;  %2510 = vmatmul.mubr.msk.bf16.vlgmr.msra.gmra.mxu0 %vm991_vm3, %v918_v27  ;;  %v1507_v10 = vsel %vm1459_vm4, %v974_v4, 0  ;;  %v988_v29 = vrot.slane %v715_v25, %v983_v22 }
 0x104   : > { %2671 = vrot.lane.b32.xlu0 %v2660_v21, %s2780_s30  ;;  %2521 = vmatprep.mubr.msk.bf16.mxu0 %vm2777_vm1, %v2776_v3  ;;  %v708_v21 = vrot.slane %v700_v20, %v699_v19  ;;  %v3056_v19 = vpack.i.bf16 %v3000_v30, %v2998_v28 }
 0x106   : > { %v984_v24 = vrot.slane %v708_v21, %v983_v22 }
 0x16d   : > { %v2652_v32 = vpop.permute.xlu0 %2651  ;;  %v2662_v35 = vpop.permute.xlu1 %2661 }
 0x16e   : > { %v2654_v33 = vunpack.i.h.bf16 %v2652_v32  ;;  %v2653_v34 = vunpack.i.l.bf16 %v2652_v32  ;;  %v2664_v38 = vunpack.i.h.bf16 %v2662_v35  ;;  %v2663_v39 = vunpack.i.l.bf16 %v2662_v35 }
 0x170   : > { %v948_v36 = vpack.c.bf16 %v2654_v33, %v2654_v33  ;;  %v947_v37 = vpack.c.bf16 %v2653_v34, %v2653_v34  ;;  %v950_v45 = vpack.c.bf16 %v2664_v38, %v2664_v38  ;;  %v949_v46 = vpack.c.bf16 %v2663_v39, %v2663_v39 }
 0x171   : > { %v2667_v50 = vpop.permute.xlu1 %2666 }
 0x172   : > { %v2657_v40 = vpop.permute.xlu0 %2656  ;;  %v1088_v41 = vsel %vm991_vm3, %v947_v37, 0  ;;  %v1134_v42 = vsel %vm991_vm3, %v948_v36, 0  ;;  %v1180_v53 = vsel %vm991_vm3, %v949_v46, 0  ;;  %v1226_v54 = vsel %vm991_vm3, %v950_v45, 0 }
 0x173   : > { %2514 = vmatpush3.bf16.xpose.msra.mxu1 %v1088_v41  ;;  %2520 = vmatpush3.bf16.xpose.msra.mxu0 %v1134_v42  ;;  %v2659_v43 = vunpack.i.h.bf16 %v2657_v40  ;;  %v2658_v44 = vunpack.i.l.bf16 %v2657_v40  ;;  %v2669_v55 = vunpack.i.h.bf16 %v2667_v50  ;;  %v2668_v56 = vunpack.i.l.bf16 %v2667_v50 }
 0x174   : > { %2525 = vmatprep.subr.bf16.mxu1 %v2776_v3  ;;  %2531 = vmatprep.subr.bf16.mxu0 %v2776_v3 }
 0x175   : > { %v920_v48 = vpack.c.bf16 %v2659_v43, %v2659_v43  ;;  %v919_v49 = vpack.c.bf16 %v2658_v44, %v2658_v44  ;;  %v922_v59 = vpack.c.bf16 %v2669_v55, %v2669_v55  ;;  %v921_v60 = vpack.c.bf16 %v2668_v56, %v2668_v56  ;;  %v2677_v61 = vpop.permute.xlu1 %2676 }
 0x176   : > { %v2672_v47 = vpop.permute.xlu0 %2671  ;;  %v2679_v0 = vunpack.i.h.bf16 %v2677_v61  ;;  %v2678_v1 = vunpack.i.l.bf16 %v2677_v61 }
 0x177   : > { %v2674_v51 = vunpack.i.h.bf16 %v2672_v47  ;;  %v2673_v52 = vunpack.i.l.bf16 %v2672_v47 }
 0x178   : > { %v924_v7 = vpack.c.bf16 %v2679_v0, %v2679_v0  ;;  %v923_v8 = vpack.c.bf16 %v2678_v1, %v2678_v1 }
 0x179   : > { %v952_v57 = vpack.c.bf16 %v2674_v51, %v2674_v51  ;;  %v951_v58 = vpack.c.bf16 %v2673_v52, %v2673_v52 }
 0x17a   : > { %2516 = vmatmul.mubr.msk.bf16.vlgmr.msra.gmra.mxu1 %vm991_vm3, %v919_v49  ;;  %2522 = vmatmul.mubr.msk.bf16.vlgmr.msra.gmra.mxu0 %vm991_vm3, %v920_v48 }
 0x17b   : > { %2526 = vmatpush3.bf16.xpose.msra.mxu1 %v1180_v53  ;;  %2532 = vmatpush3.bf16.xpose.msra.mxu0 %v1226_v54  ;;  %v1272_v62 = vsel %vm991_vm3, %v951_v58, 0  ;;  %v1318_v63 = vsel %vm991_vm3, %v952_v57, 0 }
 0x17c   : > { %2527 = vmatprep.mubr.msk.bf16.mxu1 %vm2777_vm1, %v2776_v3  ;;  %2533 = vmatprep.mubr.msk.bf16.mxu0 %vm2777_vm1, %v2776_v3 }
 0x17d   : > { %2537 = vmatprep.subr.bf16.mxu1 %v2776_v3  ;;  %2543 = vmatprep.subr.bf16.mxu0 %v2776_v3 }
 0x182   : > { %2528 = vmatmul.mubr.msk.bf16.vlgmr.msra.gmra.mxu1 %vm991_vm3, %v921_v60  ;;  %2534 = vmatmul.mubr.msk.bf16.vlgmr.msra.gmra.mxu0 %vm991_vm3, %v922_v59 }
 0x183   : > { %2538 = vmatpush3.bf16.xpose.msra.mxu1 %v1272_v62  ;;  %2544 = vmatpush3.bf16.xpose.msra.mxu0 %v1318_v63 }
 0x184   : > { %2539 = vmatprep.mubr.msk.bf16.mxu1 %vm2777_vm1, %v2776_v3  ;;  %2545 = vmatprep.mubr.msk.bf16.mxu0 %vm2777_vm1, %v2776_v3 }
 0x185   : > { %2549 = vmatprep.subr.bf16.mxu1 %v2776_v3  ;;  %2555 = vmatprep.subr.bf16.mxu0 %v2776_v3 }
 0x18a   : > { %2540 = vmatmul.mubr.msk.bf16.vlgmr.msra.gmra.mxu1 %vm991_vm3, %v923_v8  ;;  %2546 = vmatmul.mubr.msk.bf16.vlgmr.msra.gmra.mxu0 %vm991_vm3, %v924_v7 }
 0x18b   : > { %2550 = vmatpush3.bf16.msra.mxu1 %v1461_v9  ;;  %2556 = vmatpush3.bf16.msra.mxu0 %v1507_v10 }
 0x18c   : > { %2557 = vmatprep.mubr.msk.bf16.mxu0 %vm2777_vm1, %v2776_v3  ;;  %2567 = vmatprep.subr.bf16.mxu0 %v2776_v3 }
 0x18d   : > { %2551 = vmatprep.mubr.msk.bf16.mxu1 %vm2777_vm1, %v2776_v3  ;;  %2561 = vmatprep.subr.bf16.mxu1 %v2776_v3 }
 0x1bf   : > { %v1032_v26 = vpop.f32.mrf.mxu1 }
 0x1c0   : > { %v3043_v27 = vadd.f32 %v1032_v26, %v984_v24 }
 0x1c1   : > { %v2505_v31 = vpop.f32.mrf.mxu1 }
 0x1c2   : > { %v1360_v32 = vsel %vm991_vm3, %v3043_v27, -inf }
 0x1c3   : > { %v1035_v33 = vpop.f32.mrf.mxu1  ;;  %1361 = vmax.xlane.f32.xlu0 %v1360_v32  ;;  %v1078_v34 = vpop.f32.mrf.mxu0 }
 0x1c4   : > { %v1079_v35 = vadd.f32 %v1078_v34, %v988_v29 }
 0x1c5   : > { %v2506_v36 = vpop.f32.mrf.mxu1  ;;  %v2511_v37 = vpop.f32.mrf.mxu0 }
 0x1c6   : > { %v1363_v38 = vsel %vm991_vm3, %v1079_v35, -inf }
 0x1c7   : > { %1364 = vmax.xlane.f32.xlu1 %v1363_v38  ;;  %v1081_v39 = vpop.f32.mrf.mxu0 }
 0x1c9   : > { %v2512_v40 = vpop.f32.mrf.mxu0 }
 0x23a   : > { %v1124_v41 = vpop.f32.mrf.mxu1  ;;  %v1170_v42 = vpop.f32.mrf.mxu0 }
 0x23b   : > { %v1125_v43 = vadd.f32 %v1124_v41, %v984_v24  ;;  %v1171_v46 = vadd.f32 %v1170_v42, %v988_v29 }
 0x23c   : > { %v2517_v44 = vpop.f32.mrf.mxu1  ;;  %v2523_v45 = vpop.f32.mrf.mxu0 }
 0x23d   : > { %v1366_v47 = vsel %vm991_vm3, %v1125_v43, -inf  ;;  %v1369_v52 = vsel %vm991_vm3, %v1171_v46, -inf }
 0x23e   : > { %1367 = vmax.xlane.f32.xlu0 %v1366_v47  ;;  %v1127_v48 = vpop.f32.mrf.mxu1  ;;  %v1173_v49 = vpop.f32.mrf.mxu0 }
 0x240   : > { %v2518_v50 = vpop.f32.mrf.mxu1  ;;  %v2524_v51 = vpop.f32.mrf.mxu0 }
 0x242   : > { %v1216_v53 = vpop.f32.mrf.mxu1  ;;  %1370 = vmax.xlane.f32.xlu0 %v1369_v52  ;;  %v1262_v54 = vpop.f32.mrf.mxu0 }
 0x243   : > { %v1217_v55 = vadd.f32 %v1216_v53, %v984_v24  ;;  %v1263_v56 = vadd.f32 %v1262_v54, %v988_v29 }
 0x244   : > { %v2529_v57 = vpop.f32.mrf.mxu1  ;;  %v2535_v58 = vpop.f32.mrf.mxu0 }
 0x245   : > { %v1372_v59 = vsel %vm991_vm3, %v1217_v55, -inf  ;;  %v1375_v60 = vsel %vm991_vm3, %v1263_v56, -inf }
 0x246   : > { %v1219_v61 = vpop.f32.mrf.mxu1  ;;  %1373 = vmax.xlane.f32.xlu1 %v1372_v59  ;;  %1376 = vmax.xlane.f32.xlu0 %v1375_v60  ;;  %v1265_v62 = vpop.f32.mrf.mxu0 }
 0x248   : > { %v2530_v63 = vpop.f32.mrf.mxu1  ;;  %v2536_v0 = vpop.f32.mrf.mxu0 }
 0x24a   : > { %v1308_v1 = vpop.f32.mrf.mxu1  ;;  %v1354_v2 = vpop.f32.mrf.mxu0 }
 0x24b   : > { %v1309_v4 = vadd.f32 %v1308_v1, %v984_v24  ;;  %v1355_v7 = vadd.f32 %v1354_v2, %v988_v29 }
 0x24c   : > { %v2541_v8 = vpop.f32.mrf.mxu1  ;;  %v2547_v9 = vpop.f32.mrf.mxu0 }
 0x24d   : > { %v1378_v10 = vsel %vm991_vm3, %v1309_v4, -inf  ;;  %v1381_v11 = vsel %vm991_vm3, %v1355_v7, -inf  ;;  %v1362_v22 = vpop.xlane.xlu0 %1361 }
 0x24e   : > { %v1311_v12 = vpop.f32.mrf.mxu1  ;;  %1379 = vmax.xlane.f32.xlu1 %v1378_v10  ;;  %1382 = vmax.xlane.f32.xlu0 %v1381_v11  ;;  %v1357_v13 = vpop.f32.mrf.mxu0  ;;  %v1384_v23 = vsub.f32 %v3043_v27, %v1362_v22 }
 0x250   : > { %v2542_v14 = vpop.f32.mrf.mxu1  ;;  %v1365_v15 = vpop.xlane.xlu1 %1364  ;;  %v1392_v24 = vmul.f32 1.442695, %v1384_v23 }
 0x251   : > { %v1385_v16 = vsub.f32 %v1079_v35, %v1365_v15  ;;  %v2548_v17 = vpop.f32.mrf.mxu0 }
 0x253   : > { %v1394_v18 = vmul.f32 1.442695, %v1385_v16 }
 0x255   : > { %2728 = vpow2.f32 %v1394_v18 }
 0x256   : > { %2730 = vpow2.f32 %v1392_v24 }
 0x25f   : > { %2681 = vrot.lane.b32.xlu1 %v3056_v19, %s2779_s27 }
 0x262   : > { %v2729_v20 = vpop.eup %2728 }
 0x263   : > { %v1411_v21 = vsel %vm991_vm3, %v2729_v20, 0.0  ;;  %v3062_v25 = vpop.eup %2730 }
 0x264   : > { %1412 = vadd.xlane.f32.xlu0 %v1411_v21  ;;  %v1408_v26 = vsel %vm991_vm3, %v3062_v25, 0.0 }
 0x283   : > { %1409 = vadd.xlane.f32.xlu1 %v1408_v26 }
 0x2c7   : > { %v1368_v28 = vpop.xlane.xlu0 %1367 }
 0x2c8   : > { %v1386_v30 = vsub.f32 %v1125_v43, %v1368_v28 }
 0x2ca   : > { %v1396_v29 = vmul.f32 1.442695, %v1386_v30 }
 0x2cb   : > { %v1371_v31 = vpop.xlane.xlu0 %1370 }
 0x2cc   : > { %2732 = vpow2.f32 %v1396_v29  ;;  %v1387_v32 = vsub.f32 %v1171_v46, %v1371_v31 }
 0x2ce   : > { %v1398_v33 = vmul.f32 1.442695, %v1387_v32 }
 0x2cf   : > { %v1374_v34 = vpop.xlane.xlu1 %1373  ;;  %v1377_v35 = vpop.xlane.xlu0 %1376 }
 0x2d0   : > { %2734 = vpow2.f32 %v1398_v33  ;;  %v1388_v36 = vsub.f32 %v1217_v55, %v1374_v34  ;;  %v1389_v27 = vsub.f32 %v1263_v56, %v1377_v35 }
 0x2d2   : > { %v1400_v37 = vmul.f32 1.442695, %v1388_v36  ;;  %v1402_v38 = vmul.f32 1.442695, %v1389_v27 }
 0x2d4   : > { %2736 = vpow2.f32 %v1400_v37 }
 0x2d5   : > { %2738 = vpow2.f32 %v1402_v38 }
 0x2d7   : > { %v1380_v39 = vpop.xlane.xlu1 %1379  ;;  %v1383_v40 = vpop.xlane.xlu0 %1382 }
 0x2d8   : > { %v1390_v41 = vsub.f32 %v1309_v4, %v1380_v39  ;;  %v1391_v42 = vsub.f32 %v1355_v7, %v1383_v40 }
 0x2d9   : > { %v2733_v44 = vpop.eup %2732 }
 0x2da   : > { %v1404_v43 = vmul.f32 1.442695, %v1390_v41  ;;  %v1406_v45 = vmul.f32 1.442695, %v1391_v42  ;;  %v1414_v47 = vsel %vm991_vm3, %v2733_v44, 0.0 }
 0x2db   : > { %1415 = vadd.xlane.f32.xlu1 %v1414_v47  ;;  %v2682_v58 = vpop.permute.xlu1 %2681 }
 0x2dc   : > { %2740 = vpow2.f32 %v1404_v43  ;;  %v2684_v59 = vunpack.i.h.bf16 %v2682_v58  ;;  %v2683_v2 = vunpack.i.l.bf16 %v2682_v58 }
 0x2dd   : > { %v2735_v46 = vpop.eup %2734  ;;  %2742 = vpow2.f32 %v1406_v45 }
 0x2de   : > { %v1417_v48 = vsel %vm991_vm3, %v2735_v46, 0.0  ;;  %v976_v61 = vpack.c.bf16 %v2684_v59, %v2684_v59  ;;  %v975_v7 = vpack.c.bf16 %v2683_v2, %v2683_v2 }
 0x2df   : > { %1418 = vadd.xlane.f32.xlu0 %v1417_v48 }
 0x2e0   : > { %v1599_v0 = vsel %vm1459_vm4, %v976_v61, 0  ;;  %v1553_v10 = vsel %vm1459_vm4, %v975_v7, 0  ;;  %v2716_v61 = vld [vmem:[%s2896_s0 + $0x8] sm:$0xff]   ;;  %v2717_v7 = vld [vmem:[%s2896_s0] sm:$0xff]   ;;  %s2784_s0 = smov 24  }
 0x2e1   : > { %v3068_v49 = vpop.eup %2736 }
 0x2e2   : > { %v3070_v50 = vpop.eup %2738  ;;  %v1420_v51 = vsel %vm991_vm3, %v3068_v49, 0.0 }
 0x2e3   : > { %1421 = vadd.xlane.f32.xlu1 %v1420_v51  ;;  %v1423_v52 = vsel %vm991_vm3, %v3070_v50, 0.0 }
 0x2e4   : > { %1424 = vadd.xlane.f32.xlu0 %v1423_v52 }
 0x2e9   : > { %v3076_v53 = vpop.eup %2740 }
 0x2ea   : > { %v3078_v54 = vpop.eup %2742  ;;  %v1426_v55 = vsel %vm991_vm3, %v3076_v53, 0.0 }
 0x2eb   : > { %1427 = vadd.xlane.f32.xlu1 %v1426_v55  ;;  %v1429_v56 = vsel %vm991_vm3, %v3078_v54, 0.0 }
 0x2ec   : > { %1430 = vadd.xlane.f32.xlu0 %v1429_v56 }
 0x2ed   : > { %v1413_v57 = vpop.xlane.xlu0 %1412 }
 0x2ee   : > { %2744 = vrcp.f32 %v1413_v57 }
 0x2fb   : > { %v2745_v60 = vpop.eup %2744 }
 0x2fc   : > { %2691 = vrot.lane.b32.xlu1 %v3056_v19, %s2780_s30  ;;  %v1441_v62 = vmul.f32 %v2745_v60, %v2729_v20  ;;  %s3254_s30 = scalar_lea.vmem %s3221_s8, %s2873_s20 }
 0x2fe   : > { %v1449_v63 = vpack.c.bf16 %v1441_v62, %v1441_v62 }
 0x300   : > { %2558 = vmatmul.mubr.msk.bf16.vlgmr.msra.gmra.mxu0 %vm991_vm3, %v1449_v63 }
 0x301   : > { %2568 = vmatpush3.bf16.msra.mxu0 %v1599_v0  ;;  %2569 = vmatprep.mubr.msk.bf16.mxu0 %vm2777_vm1, %v2776_v3 }
 0x302   : > { %2686 = vrot.lane.b32.xlu0 %v3056_v19, %s2778_s18  ;;  %2579 = vmatprep.subr.bf16.mxu0 %v2776_v3 }
 0x30c   : > { %v1410_v1 = vpop.xlane.xlu1 %1409 }
 0x30d   : > { %2746 = vrcp.f32 %v1410_v1 }
 0x31a   : > { %v2747_v4 = vpop.eup %2746 }
 0x31b   : > { %v1440_v8 = vmul.f32 %v2747_v4, %v3062_v25 }
 0x31d   : > { %v1448_v9 = vpack.c.bf16 %v1440_v8, %v1440_v8 }
 0x31f   : > { %2552 = vmatmul.mubr.msk.bf16.vlgmr.msra.gmra.mxu1 %vm991_vm3, %v1448_v9 }
 0x320   : > { %2562 = vmatpush3.bf16.msra.mxu1 %v1553_v10  ;;  %2563 = vmatprep.mubr.msk.bf16.mxu1 %vm2777_vm1, %v2776_v3 }
 0x321   : > { %2573 = vmatprep.subr.bf16.mxu1 %v2776_v3 }
 0x364   : > { %v1416_v11 = vpop.xlane.xlu1 %1415 }
 0x365   : > { %2748 = vrcp.f32 %v1416_v11 }
 0x368   : > { %v1419_v12 = vpop.xlane.xlu0 %1418 }
 0x369   : > { %2750 = vrcp.f32 %v1419_v12 }
 0x36c   : > { %v1422_v13 = vpop.xlane.xlu1 %1421 }
 0x36d   : > { %2752 = vrcp.f32 %v1422_v13  ;;  %v1425_v14 = vpop.xlane.xlu0 %1424 }
 0x36e   : > { %2754 = vrcp.f32 %v1425_v14 }
 0x372   : > { %v2749_v15 = vpop.eup %2748 }
 0x373   : > { %v1442_v16 = vmul.f32 %v2749_v15, %v2733_v44 }
 0x374   : > { %v1428_v17 = vpop.xlane.xlu1 %1427 }
 0x375   : > { %2756 = vrcp.f32 %v1428_v17  ;;  %v1431_v18 = vpop.xlane.xlu0 %1430  ;;  %v1450_v19 = vpack.c.bf16 %v1442_v16, %v1442_v16 }
 0x376   : > { %v2751_v20 = vpop.eup %2750  ;;  %2758 = vrcp.f32 %v1431_v18 }
 0x377   : > { %2564 = vmatmul.mubr.msk.bf16.vlgmr.msra.gmra.mxu1 %vm991_vm3, %v1450_v19  ;;  %v1443_v21 = vmul.f32 %v2751_v20, %v2735_v46 }
 0x378   : > { %v2692_v22 = vpop.permute.xlu1 %2691  ;;  %2575 = vmatprep.mubr.msk.bf16.mxu1 %vm2777_vm1, %v2776_v3 }
 0x379   : > { %v2687_v23 = vpop.permute.xlu0 %2686  ;;  %v1451_v24 = vpack.c.bf16 %v1443_v21, %v1443_v21  ;;  %v2693_v26 = vunpack.i.l.bf16 %v2692_v22  ;;  %v2694_v31 = vunpack.i.h.bf16 %v2692_v22 }
 0x37a   : > { %v2753_v25 = vpop.eup %2752  ;;  %v2689_v28 = vunpack.i.h.bf16 %v2687_v23  ;;  %v2688_v30 = vunpack.i.l.bf16 %v2687_v23 }
 0x37b   : > { %v2755_v29 = vpop.eup %2754  ;;  %2570 = vmatmul.mubr.msk.bf16.vlgmr.msra.gmra.mxu0 %vm991_vm3, %v1451_v24  ;;  %v1444_v34 = vmul.f32 %v2753_v25, %v3068_v49  ;;  %v979_v36 = vpack.c.bf16 %v2693_v26, %v2693_v26  ;;  %v980_v38 = vpack.c.bf16 %v2694_v31, %v2694_v31 }
 0x37c   : > { %v978_v32 = vpack.c.bf16 %v2689_v28, %v2689_v28  ;;  %v977_v33 = vpack.c.bf16 %v2688_v30, %v2688_v30  ;;  %2581 = vmatprep.mubr.msk.bf16.mxu0 %vm2777_vm1, %v2776_v3  ;;  %v1445_v35 = vmul.f32 %v2755_v29, %v3070_v50 }
 0x37d   : > { %v1452_v39 = vpack.c.bf16 %v1444_v34, %v1444_v34  ;;  %v1737_v42 = vsel %vm1459_vm4, %v979_v36, 0  ;;  %v1783_v43 = vsel %vm1459_vm4, %v980_v38, 0 }
 0x37e   : > { %v1645_v27 = vsel %vm1459_vm4, %v977_v33, 0  ;;  %v1691_v37 = vsel %vm1459_vm4, %v978_v32, 0  ;;  %v1453_v40 = vpack.c.bf16 %v1445_v35, %v1445_v35 }
 0x37f   : > { %2574 = vmatpush3.bf16.msra.mxu1 %v1645_v27  ;;  %2580 = vmatpush3.bf16.msra.mxu0 %v1691_v37 }
 0x380   : > { %2585 = vmatprep.subr.bf16.mxu1 %v2776_v3  ;;  %2591 = vmatprep.subr.bf16.mxu0 %v2776_v3 }
 0x382   : > { %v2757_v41 = vpop.eup %2756  ;;  %2576 = vmatmul.mubr.msk.bf16.vlgmr.msra.gmra.mxu1 %vm991_vm3, %v1452_v39 }
 0x383   : > { %v2759_v44 = vpop.eup %2758  ;;  %2586 = vmatpush3.bf16.msra.mxu1 %v1737_v42  ;;  %2582 = vmatmul.mubr.msk.bf16.vlgmr.msra.gmra.mxu0 %vm991_vm3, %v1453_v40  ;;  %v1446_v45 = vmul.f32 %v2757_v41, %v3076_v53  ;;  %v2392_v41 = vld [vmem:[%s3252_s21] ss:$0 sm:$0xff] }
 0x384   : > { %2592 = vmatpush3.bf16.msra.mxu0 %v1783_v43  ;;  %2587 = vmatprep.mubr.msk.bf16.mxu1 %vm2777_vm1, %v2776_v3  ;;  %v1447_v47 = vmul.f32 %v2759_v44, %v3078_v54 }
 0x385   : > { %2593 = vmatprep.mubr.msk.bf16.mxu0 %vm2777_vm1, %v2776_v3  ;;  %2597 = vmatprep.subr.bf16.mxu1 %v2776_v3  ;;  %v1454_v46 = vpack.c.bf16 %v1446_v45, %v1446_v45 }
 0x386   : > { %2605 = vmatprep.subr.bf16.mxu0 %v2776_v3  ;;  %v1455_v48 = vpack.c.bf16 %v1447_v47, %v1447_v47 }
 0x38a   : > { %2588 = vmatmul.mubr.msk.bf16.vlgmr.msra.gmra.mxu1 %vm991_vm3, %v1454_v46 }
 0x38b   : > { %2594 = vmatmul.mubr.msk.bf16.vlgmr.msra.gmra.mxu0 %vm991_vm3, %v1455_v48  ;;  %2601 = vmatprep.mubr.msk.bf16.mxu1 %vm2777_vm1, %v2776_v3 }
 0x38c   : > { %2609 = vmatprep.mubr.msk.bf16.mxu0 %vm2777_vm1, %v2776_v3  ;;  %2598 = vmatpush3.bf16.msra.mxu1 %v2716_v61  ;;  %v2719_v61 = vld [vmem:[%s2909_s3] sm:$0xff]  }
 0x38d   : > { %2599 = vmatprep.subr.bf16.mxu1 %v2776_v3 }
 0x390   : > { %2600 = vmatpush3.bf16.msra.mxu1 %v2717_v7 }
 0x391   : > { %2613 = vmatprep.subr.bf16.mxu1 %v2776_v3 }
 0x3c0   : > { %v1543_v49 = vpop.f32.mrf.mxu0 }
 0x3c2   : > { %v2559_v50 = vpop.f32.mrf.mxu0 }
 0x3c4   : > { %v1546_v51 = vpop.f32.mrf.mxu0 }
 0x3c6   : > { %v2560_v52 = vpop.f32.mrf.mxu0 }
 0x3df   : > { %v1497_v53 = vpop.f32.mrf.mxu1 }
 0x3e1   : > { %v2553_v54 = vpop.f32.mrf.mxu1 }
 0x3e3   : > { %v1500_v55 = vpop.f32.mrf.mxu1 }
 0x3e5   : > { %v2554_v56 = vpop.f32.mrf.mxu1 }
 0x437   : > { %v1589_v57 = vpop.f32.mrf.mxu1 }
 0x439   : > { %v2565_v58 = vpop.f32.mrf.mxu1 }
 0x43b   : > { %v1592_v59 = vpop.f32.mrf.mxu1  ;;  %v1635_v60 = vpop.f32.mrf.mxu0 }
 0x43c   : > { %v2695_v62 = vpack.i.bf16 %v1635_v60, %v1589_v57  ;;  %v2718_v60 = vld [vmem:[%s2909_s3 + $0x8] sm:$0xff]  }
 0x43d   : > { %v2566_v63 = vpop.f32.mrf.mxu1  ;;  %v2571_v0 = vpop.f32.mrf.mxu0  ;;  %2606 = vmatpush3.bf16.msra.mxu0 %v2718_v60 }
 0x43e   : > { %2696 = vrot.lane.b32.xlu1 %v2695_v62, %s2782_s22  ;;  %2607 = vmatprep.subr.bf16.mxu0 %v2776_v3  ;;  %v2720_v62 = vld [vmem:[%s2923_s25 + $0x38] sm:$0xff]   ;;  %v2721_v63 = vld [vmem:[%s2923_s25 + $0x30] sm:$0xff]   ;;  %v2722_v0 = vld [vmem:[%s2923_s25 + $0x28] sm:$0xff]  }
 0x43f   : > { %v1638_v1 = vpop.f32.mrf.mxu0 }
 0x440   : > { %v2723_v1 = vld [vmem:[%s2923_s25 + $0x20] sm:$0xff]  }
 0x441   : > { %v2572_v2 = vpop.f32.mrf.mxu0  ;;  %2608 = vmatpush3.bf16.msra.mxu0 %v2719_v61  ;;  %v2411_v61 = vld [vmem:[%s674_s2] ss:$0 sm:$0xff] }
 0x442   : > { %v1681_v4 = vpop.f32.mrf.mxu1  ;;  %v2724_v2 = vld [vmem:[%s2923_s25 + $0x18] sm:$0xff]  }
 0x443   : > { %v1727_v8 = vpop.f32.mrf.mxu0 }
 0x444   : > { %v2577_v9 = vpop.f32.mrf.mxu1  ;;  %v2700_v10 = vpack.i.bf16 %v1727_v8, %v1681_v4 }
 0x445   : > { %v2583_v11 = vpop.f32.mrf.mxu0 }
 0x446   : > { %v1684_v12 = vpop.f32.mrf.mxu1  ;;  %2701 = vrot.lane.b32.xlu0 %v2700_v10, %s2783_s23 }
 0x447   : > { %v1730_v13 = vpop.f32.mrf.mxu0 }
 0x448   : > { %v2578_v14 = vpop.f32.mrf.mxu1 }
 0x449   : > { %v2584_v15 = vpop.f32.mrf.mxu0  ;;  %v2396_v14 = vld [vmem:[%s3253_s17] ss:$0 sm:$0xff] }
 0x44a   : > { %v1773_v16 = vpop.f32.mrf.mxu1 }
 0x44b   : > { %v1819_v17 = vpop.f32.mrf.mxu0 }
 0x44c   : > { %v2589_v18 = vpop.f32.mrf.mxu1  ;;  %v2705_v19 = vpack.i.bf16 %v1819_v17, %v1773_v16 }
 0x44d   : > { %v2595_v20 = vpop.f32.mrf.mxu0  ;;  %v2397_v18 = vld [vmem:[%s3254_s30] ss:$0 sm:$0xff] }
 0x44e   : > { %v1776_v21 = vpop.f32.mrf.mxu1  ;;  %2706 = vrot.lane.b32.xlu1 %v2705_v19, %s2784_s0 }
 0x44f   : > { %v1822_v22 = vpop.f32.mrf.mxu0 }
 0x450   : > { %v2590_v23 = vpop.f32.mrf.mxu1 }
 0x451   : > { %v2596_v24 = vpop.f32.mrf.mxu0  ;;  %v2725_v23 = vld [vmem:[%s2923_s25 + $0x10] sm:$0xff]  }
 0x452   : > { %v2726_v24 = vld [vmem:[%s2923_s25 + $0x8] sm:$0xff]  }
 0x4b0   : > { %v2697_v25 = vpop.permute.xlu1 %2696 }
 0x4b1   : > { %v2699_v28 = vunpack.i.h.bf16 %v2697_v25  ;;  %v2698_v30 = vunpack.i.l.bf16 %v2697_v25  ;;  %v2727_v25 = vld [vmem:[%s2923_s25] sm:$0xff]  }
 0x4b3   : > { %v1850_v33 = vsel %vm991_vm3, %v1543_v49, %v2699_v28  ;;  %v1849_v34 = vsel %vm991_vm3, %v1497_v53, %v2698_v30 }
 0x4b8   : > { %v2702_v26 = vpop.permute.xlu0 %2701 }
 0x4b9   : > { %v2704_v29 = vunpack.i.h.bf16 %v2702_v26  ;;  %v2703_v31 = vunpack.i.l.bf16 %v2702_v26  ;;  %v2398_v26 = vld [vmem:[%s3255_s1] ss:$0 sm:$0xff] }
 0x4bb   : > { %v1853_v27 = vsel %vm1851_vm5, %v1850_v33, %v2704_v29  ;;  %v1852_v37 = vsel %vm1851_vm5, %v1849_v34, %v2703_v31 }
 0x4c0   : > { %v2707_v32 = vpop.permute.xlu1 %2706 }
 0x4c1   : > { %v2709_v35 = vunpack.i.h.bf16 %v2707_v32  ;;  %v2708_v36 = vunpack.i.l.bf16 %v2707_v32 }
 0x4c3   : > { %v1856_v38 = vsel %vm1854_vm6, %v1853_v27, %v2709_v35  ;;  %v1855_v39 = vsel %vm1854_vm6, %v1852_v37, %v2708_v36 }
 0x4c4   : > { %v1857_v40 = vpack.c.bf16 %v1856_v38, %v1855_v39 }
 0x4c6   : > { %2602 = vmatmul.mubr.msk.bf16.vlgmr.msra.gmra.mxu1 %vm746_vm2, %v1857_v40 }
 0x4c7   : > { %2629 = vmatprep.mubr.msk.bf16.mxu1 %vm2777_vm1, %v2776_v3  ;;  %2614 = vmatpush3.bf16.msra.mxu1 %v2720_v62 }
 0x4c8   : > { %2615 = vmatprep.subr.bf16.mxu1 %v2776_v3 }
 0x4cb   : > { %2616 = vmatpush3.bf16.msra.mxu1 %v2721_v63  ;;  %v2412_v63 = vld [vmem:[%s677_s28] ss:$0 sm:$0xff] }
 0x4cc   : > { %2617 = vmatprep.subr.bf16.mxu1 %v2776_v3 }
 0x4cf   : > { %2618 = vmatpush3.bf16.msra.mxu1 %v2722_v0 }
 0x4d0   : > { %2619 = vmatprep.subr.bf16.mxu1 %v2776_v3 }
 0x4d3   : > { %2620 = vmatpush3.bf16.msra.mxu1 %v2723_v1 }
 0x4d4   : > { %2621 = vmatprep.subr.bf16.mxu1 %v2776_v3 }
 0x4d7   : > { %2622 = vmatpush3.bf16.msra.mxu1 %v2724_v2 }
 0x4d8   : > { %2623 = vmatprep.subr.bf16.mxu1 %v2776_v3 }
 0x4db   : > { %2624 = vmatpush3.bf16.msra.mxu1 %v2725_v23 }
 0x4dc   : > { %2625 = vmatprep.subr.bf16.mxu1 %v2776_v3 }
 0x4df   : > { %2626 = vmatpush3.bf16.msra.mxu1 %v2726_v24 }
 0x4e0   : > { %2627 = vmatprep.subr.bf16.mxu1 %v2776_v3  ;;  %v2402_v3 = vld [vmem:[%s671_s6] ss:$0 sm:$0xff] }
 0x4e3   : > { %2628 = vmatpush3.bf16.msra.mxu1 %v2727_v25 }
 0x586   : > { %v1913_v42 = vpop.f32.mrf.mxu1 }
 0x587   : > { %v1914_v44 = vadd.f32 %v2392_v41, %v1913_v42 }
 0x588   : > { %v2603_v43 = vpop.f32.mrf.mxu1 }
 0x589   : > { %v1920_v45 = vadd.f32 %v1914_v44, %v2952_v5 }
 0x58a   : > { %v1916_v47 = vpop.f32.mrf.mxu1 }
 0x58b   : > { %v1917_v46 = vadd.f32 %v2392_v41, %v1916_v47  ;;  %v1924_v48 = vsel %vm746_vm2, %v1920_v45, 0.0 }
 0x58c   : > { %1925 = vadd.xlane.f32.xlu0 %v1924_v48  ;;  %v2604_v49 = vpop.f32.mrf.mxu1 }
 0x58d   : > { %v1921_v50 = vadd.f32 %v1917_v46, %v2957_v6 }
 0x58f   : > { %v1927_v51 = vsel %vm746_vm2, %v1921_v50, 0.0 }
 0x590   : > { %1928 = vadd.xlane.f32.xlu1 %v1927_v51 }
 0x615   : > { %v1926_v52 = vpop.xlane.xlu0 %1925 }
 0x616   : > { %v1931_v53 = vmul.f32 0.03125, %v1926_v52 }
 0x618   : > { %v1933_v54 = vsub.f32 %v1920_v45, %v1931_v53 }
 0x619   : > { %v1929_v55 = vpop.xlane.xlu1 %1928 }
 0x61a   : > { %v1932_v5 = vmul.f32 0.03125, %v1929_v55  ;;  %v1935_v56 = vmul.f32 %v1933_v54, %v1933_v54 }
 0x61c   : > { %v1934_v57 = vsub.f32 %v1921_v50, %v1932_v5  ;;  %v1937_v58 = vsel %vm746_vm2, %v1935_v56, 0.0 }
 0x61d   : > { %1938 = vadd.xlane.f32.xlu0 %v1937_v58 }
 0x61e   : > { %v1936_v59 = vmul.f32 %v1934_v57, %v1934_v57 }
 0x620   : > { %v1940_v6 = vsel %vm746_vm2, %v1936_v59, 0.0 }
 0x621   : > { %1941 = vadd.xlane.f32.xlu0 %v1940_v6 }
 0x6a6   : > { %v1939_v4 = vpop.xlane.xlu0 %1938 }
 0x6a7   : > { %v1943_v7 = vmul.f32 0.03125, %v1939_v4 }
 0x6a9   : > { %v1945_v8 = vadd.f32 1e-05, %v1943_v7 }
 0x6aa   : > { %v1942_v9 = vpop.xlane.xlu0 %1941 }
 0x6ab   : > { %2760 = vrsqrt.f32 %v1945_v8  ;;  %v1944_v10 = vmul.f32 0.03125, %v1942_v9 }
 0x6ad   : > { %v1946_v11 = vadd.f32 1e-05, %v1944_v10 }
 0x6af   : > { %2762 = vrsqrt.f32 %v1946_v11 }
 0x6b8   : > { %v2761_v12 = vpop.eup %2760 }
 0x6b9   : > { %v1949_v13 = vmul.f32 %v2761_v12, %v1933_v54 }
 0x6bb   : > { %v1957_v17 = vmul.f32 %v2396_v14, %v1949_v13 }
 0x6bc   : > { %v2763_v15 = vpop.eup %2762 }
 0x6bd   : > { %v1950_v16 = vmul.f32 %v2763_v15, %v1934_v57  ;;  %v1965_v20 = vadd.f32 %v2397_v18, %v1957_v17 }
 0x6bf   : > { %v1958_v19 = vmul.f32 %v2396_v14, %v1950_v16 }
 0x6c1   : > { %v1966_v21 = vadd.f32 %v2397_v18, %v1958_v19 }
 0x6c3   : > { %v1989_v22 = vpack.c.bf16 %v1966_v21, %v1965_v20 }
 0x6c5   : > { %2610 = vmatmul.mubr.msk.bf16.vlgmr.msra.gmra.mxu0 %vm746_vm2, %v1989_v22 }
 0x785   : > { %v2045_v28 = vpop.f32.mrf.mxu0 }
 0x786   : > { %v2046_v29 = vadd.f32 %v2398_v26, %v2045_v28 }
 0x787   : > { %v2611_v30 = vpop.f32.mrf.mxu0 }
 0x788   : > { %v2052_v34 = vmax.f32 %v2046_v29, 0.0 }
 0x789   : > { %v2048_v31 = vpop.f32.mrf.mxu0 }
 0x78a   : > { %v2049_v32 = vadd.f32 %v2398_v26, %v2048_v31 }
 0x78b   : > { %v2612_v33 = vpop.f32.mrf.mxu0 }
 0x78c   : > { %v2053_v35 = vmax.f32 %v2049_v32, 0.0 }
 0x78e   : > { %v2054_v36 = vpack.c.bf16 %v2053_v35, %v2052_v34 }
 0x790   : > { %2630 = vmatmul.mubr.bf16.vlgmr.msra.gmra.mxu1 %v2054_v36 }
 0x850   : > { %v2143_v27 = vpop.f32.mrf.mxu1 }
 0x851   : > { %v2144_v37 = vadd.f32 %v2402_v3, %v2143_v27 }
 0x852   : > { %v2631_v38 = vpop.f32.mrf.mxu1 }
 0x853   : > { %v2150_v39 = vadd.f32 %v2144_v37, %v1965_v20 }
 0x854   : > { %v2146_v40 = vpop.f32.mrf.mxu1 }
 0x855   : > { %v2147_v41 = vadd.f32 %v2402_v3, %v2146_v40  ;;  %v2154_v42 = vsel %vm746_vm2, %v2150_v39, 0.0 }
 0x856   : > { %2155 = vadd.xlane.f32.xlu1 %v2154_v42  ;;  %v2632_v44 = vpop.f32.mrf.mxu1 }
 0x857   : > { %v2151_v43 = vadd.f32 %v2147_v41, %v1966_v21 }
 0x859   : > { %v2157_v45 = vsel %vm746_vm2, %v2151_v43, 0.0 }
 0x85a   : > { %2158 = vadd.xlane.f32.xlu0 %v2157_v45 }
 0x8df   : > { %v2156_v47 = vpop.xlane.xlu1 %2155 }
 0x8e0   : > { %v2160_v46 = vmul.f32 0.03125, %v2156_v47 }
 0x8e2   : > { %v2162_v48 = vsub.f32 %v2150_v39, %v2160_v46 }
 0x8e3   : > { %v2159_v49 = vpop.xlane.xlu0 %2158 }
 0x8e4   : > { %v2161_v50 = vmul.f32 0.03125, %v2159_v49  ;;  %v2164_v51 = vmul.f32 %v2162_v48, %v2162_v48 }
 0x8e6   : > { %v2163_v52 = vsub.f32 %v2151_v43, %v2161_v50  ;;  %v2166_v53 = vsel %vm746_vm2, %v2164_v51, 0.0 }
 0x8e7   : > { %2167 = vadd.xlane.f32.xlu1 %v2166_v53 }
 0x8e8   : > { %v2165_v54 = vmul.f32 %v2163_v52, %v2163_v52 }
 0x8ea   : > { %v2169_v55 = vsel %vm746_vm2, %v2165_v54, 0.0 }
 0x8eb   : > { %2170 = vadd.xlane.f32.xlu0 %v2169_v55 }
 0x970   : > { %v2168_v5 = vpop.xlane.xlu1 %2167 }
 0x971   : > { %v2172_v56 = vmul.f32 0.03125, %v2168_v5 }
 0x973   : > { %v2174_v57 = vadd.f32 1e-05, %v2172_v56 }
 0x974   : > { %v2171_v58 = vpop.xlane.xlu0 %2170 }
 0x975   : > { %2764 = vrsqrt.f32 %v2174_v57  ;;  %v2173_v59 = vmul.f32 0.03125, %v2171_v58 }
 0x977   : > { %v2175_v6 = vadd.f32 1e-05, %v2173_v59 }
 0x979   : > { %2766 = vrsqrt.f32 %v2175_v6 }
 0x982   : > { %v2765_v60 = vpop.eup %2764 }
 0x983   : > { %v2178_v62 = vmul.f32 %v2765_v60, %v2162_v48 }
 0x985   : > { %v2186_v0 = vmul.f32 %v2411_v61, %v2178_v62 }
 0x986   : > { %v2767_v1 = vpop.eup %2766 }
 0x987   : > { %v2194_v2 = vadd.f32 %v2412_v63, %v2186_v0  ;;  %v2179_v4 = vmul.f32 %v2767_v1, %v2163_v52 }
 0x989   : > { %2196 = vst.msk [vmem:[%s3249_s29] sm:$0xff] %vm746_vm2, %v2194_v2  ;;  %v2187_v7 = vmul.f32 %v2411_v61, %v2179_v4 }
 0x98b   : > { %v2195_v8 = vadd.f32 %v2412_v63, %v2187_v7 }
 0x98d   : > { %2197 = vst.msk [vmem:[%s3249_s29 + $0x8] sm:$0xff] %vm746_vm2, %v2195_v8 }
 0x98e PF: > { %s3256_s3 = sld [smem:[#allocation2_spill]] }
 0x994   : > { %s25_s18 = sadd.s32 1, %s3256_s3  }
 0x995   : > { %p22_p5 = scmp.ge.s32.totalorder %s25_s18, 4  }
 0x997   :  { %24 = sbr.rel (!%p22_p5) target bundleno = 9 (0x9), region = 146 }

// kernel: transformer_fwd.3
= control target key start
LH: loop header
LB: loop body
LE: loop exit
PB: predicated region body
PF: predicated region fallthrough
CT: control target
= control target key end

     0   :  { %s5728_s0 = inlined_call_operand.vmem [shape: f32[2,8,32], index: 0, kind: input, shape index: {}]   ;;  %s5729_s1 = inlined_call_operand.vmem [shape: f32[2,8,32], index: 1, kind: input, shape index: {}]   ;;  %s5730_s2 = inlined_call_operand.vmem [shape: f32[2,8], index: 2, kind: input, shape index: {}]   ;;  %s5731_s3 = inlined_call_operand.vmem [shape: bf16[2,32,32], index: 3, kind: input, shape index: {}]   ;;  %s5732_s4 = inlined_call_operand.vmem [shape: bf16[2,32,32], index: 4, kind: input, shape index: {}]   ;;  %s5733_s5 = inlined_call_operand.vmem [shape: bf16[2,32,32], index: 5, kind: input, shape index: {}]   ;;  %s5734_s6 = inlined_call_operand.vmem [shape: bf16[2,32,32], index: 6, kind: input, shape index: {}]   ;;  %s5735_s7 = inlined_call_operand.vmem [shape: f32[2,1,32], index: 7, kind: input, shape index: {}]   ;;  %s5736_s8 = inlined_call_operand.vmem [shape: f32[2,1,32], index: 8, kind: input, shape index: {}]   ;;  %s5737_s9 = inlined_call_operand.vmem [shape: f32[2,1,32], index: 9, kind: input, shape index: {}]   ;;  %s5738_s10 = inlined_call_operand.vmem [shape: bf16[2,32,32], index: 10, kind: input, shape index: {}]   ;;  %s5739_s11 = inlined_call_operand.vmem [shape: bf16[2,32,32], index: 11, kind: input, shape index: {}]   ;;  %s5740_s12 = inlined_call_operand.vmem [shape: bf16[2,32,32], index: 12, kind: input, shape index: {}]   ;;  %s5741_s13 = inlined_call_operand.vmem [shape: bf16[2,32,32], index: 13, kind: input, shape index: {}]   ;;  %s5742_s14 = inlined_call_operand.vmem [shape: f32[2,1,32], index: 14, kind: input, shape index: {}]   ;;  %s5743_s15 = inlined_call_operand.vmem [shape: f32[2,1,32], index: 15, kind: input, shape index: {}]   ;;  %s5744_s16 = inlined_call_operand.vmem [shape: f32[2,1,32], index: 16, kind: input, shape index: {}]   ;;  %s5745_s17 = inlined_call_operand.vmem [shape: bf16[2,32,128], index: 17, kind: input, shape index: {}]   ;;  %s5746_s18 = inlined_call_operand.vmem [shape: f32[2,1,128], index: 18, kind: input, shape index: {}]   ;;  %s5747_s19 = inlined_call_operand.vmem [shape: bf16[2,128,32], index: 19, kind: input, shape index: {}]   ;;  %s5748_s20 = inlined_call_operand.vmem [shape: f32[2,1,32], index: 20, kind: input, shape index: {}]   ;;  %s5749_s21 = inlined_call_operand.vmem [shape: f32[2,1,32], index: 21, kind: input, shape index: {}]   ;;  %s5750_s22 = inlined_call_operand.vmem [shape: f32[2,1,32], index: 22, kind: input, shape index: {}]   ;;  %s5751_s23 = inlined_call_operand.vmem [shape: bf16[32,128], index: 23, kind: input, shape index: {}]   ;;  %s5752_s24 = inlined_call_operand.vmem [shape: f32[1,128], index: 24, kind: input, shape index: {}]   ;;  %s5753_s25 = inlined_call_operand.hbm [shape: f32[2,8,128], index: 25, kind: output, shape index: {}]  }
   0x1   :  { %5763 = sst [smem:[#allocation11_spill]] %s5728_s0 }
   0x2   :  { %5764 = sst [smem:[#allocation12_spill]] %s5729_s1 }
   0x3   :  { %5765 = sst [smem:[#allocation13_spill]] %s5730_s2 }
   0x4   :  { %5766 = sst [smem:[#allocation14_spill]] %s5731_s3 }
   0x5   :  { %5767 = sst [smem:[#allocation15_spill]] %s5732_s4 }
   0x6   :  { %5768 = sst [smem:[#allocation16_spill]] %s5733_s5 }
   0x7   :  { %5769 = sst [smem:[#allocation17_spill]] %s5734_s6 }
   0x8   :  { %5770 = sst [smem:[#allocation18_spill]] %s5735_s7 }
   0x9   :  { %5771 = sst [smem:[#allocation19_spill]] %s5736_s8 }
   0xa   :  { %5772 = sst [smem:[#allocation20_spill]] %s5737_s9 }
   0xb   :  { %5773 = sst [smem:[#allocation21_spill]] %s5738_s10 }
   0xc   :  { %5774 = sst [smem:[#allocation22_spill]] %s5739_s11 }
   0xd   :  { %5775 = sst [smem:[#allocation23_spill]] %s5740_s12 }
   0xe   :  { %5776 = sst [smem:[#allocation24_spill]] %s5741_s13 }
   0xf   :  { %5777 = sst [smem:[#allocation25_spill]] %s5745_s17 }
  0x10   :  { %5778 = sst [smem:[#allocation26_spill]] %s5750_s22 }
  0x11   :  { %5779 = sst [smem:[#allocation27_spill]] %s5751_s23 }
  0x12   :  { %5780 = sst [smem:[#allocation28_spill]] %s5752_s24 }
  0x13   :  { %5781 = sst [smem:[#allocation29_spill]] %s5753_s25 }
  0x14   :  { %30 = vsyncpa [#allocation4], 0  ;;  %s5107_s29 = smov 0  }
  0x15 LB: > { %5782 = sst [smem:[#allocation6_spill]] %s4961_s29  ;;  %s5113_s2 = sadd.s32 4294967295, %s4961_s29   ;;  %s4961_s29 = sphi %s5107_s29, %s36_s29  }
  0x16   : > { %5783 = sst [smem:[#allocation7_spill]] %s5113_s2  ;;  %p4161_p0 = scmp.ge.s32.totalorder %s4961_s29, 1 }
  0x17   : > { %p853_p1 = scmp.lt.s32.totalorder %s4961_s29, 3 }
  0x19   : > { %p854_p2 = pnand %p4161_p0, %p853_p1 }
  0x1b   : > { %857 = sbr.rel (%p854_p2) target bundleno = 4383 (0x111f), region = 120 }
  0x20   : > { %p991_p3 = scmp.lt.s32.totalorder %s5113_s2, 1  ;;  %s5785_s4 = sld [smem:[#allocation14_spill]] }
  0x21   : > { %s5787_s0 = sld [smem:[#allocation15_spill]] }
  0x22   : > { %s5119_s6 = scalar_select %p991_p3, %s5113_s2, 1 }
  0x23   : > { %s5789_s23 = sld [smem:[#allocation16_spill]] }
  0x24   : > { %s4270_s30 = sshll.u32 %s5119_s6, 4  ;;  %s5791_s26 = sld [smem:[#allocation17_spill]] }
  0x25   : > { %s5794_s10 = sld [smem:[#allocation21_spill]]  ;;  %s1067_s3 = scalar_lea.vmem %s5749_s21, %s5119_s6 }
  0x26   : > { %s5129_s28 = scalar_lea.vmem %s5785_s4, %s4270_s30  ;;  %s5795_s11 = sld [smem:[#allocation22_spill]] }
  0x27   : > { %5786 = sst [smem:[#allocation8_spill]] %s5129_s28  ;;  %s5134_s29 = scalar_lea.vmem %s5787_s0, %s4270_s30 }
  0x28   : > { %5788 = sst [smem:[#allocation9_spill]] %s5134_s29  ;;  %s1064_s28 = scalar_lea.vmem %s5748_s20, %s5119_s6 }
  0x29   : > { %s5139_s2 = scalar_lea.vmem %s5789_s23, %s4270_s30  ;;  %s5796_s12 = sld [smem:[#allocation23_spill]] }
  0x2a   : > { %5790 = sst [smem:[#allocation10_spill]] %s5139_s2  ;;  %s5144_s1 = scalar_lea.vmem %s5791_s26, %s4270_s30 }
  0x2b   : > { %s5157_s23 = scalar_lea.vmem %s5794_s10, %s4270_s30  ;;  %s5797_s13 = sld [smem:[#allocation24_spill]] }
  0x2c   : > { %s5162_s7 = scalar_lea.vmem %s5795_s11, %s4270_s30  ;;  %s5798_s17 = sld [smem:[#allocation25_spill]] }
  0x2d   : > { %s5799_s2 = sld [smem:[#allocation26_spill]] }
  0x2e   : > { %s5800_s27 = sld [smem:[#allocation7_spill]] }
  0x2f   : > { %s5167_s8 = scalar_lea.vmem %s5796_s12, %s4270_s30 }
  0x31   : > { %s5172_s9 = scalar_lea.vmem %s5797_s13, %s4270_s30  ;;  %s4279_s13 = sshll.u32 %s5119_s6, 6 }
  0x32   : > { %s5189_s11 = scalar_lea.vmem %s5798_s17, %s4270_s30  ;;  %s5199_s22 = scalar_lea.vmem %s5747_s19, %s4279_s13 }
  0x33   : > { %s1070_s17 = scalar_lea.vmem %s5799_s2, %s5119_s6 }
  0x34   : > { %p4182_p4 = scmp.ne.s32.totalorder %s5800_s27, 0 }
  0x35   : > { %s5801_s5 = sld [smem:[#allocation11_spill]] (!%p4182_p4) }
  0x36   : > { %1075 = sbr.rel (%p4182_p4) target bundleno = 61 (0x3d), region = 124 }
  0x3b   : > { %v1076_v0 = vld [vmem:[%s5801_s5] sm:$0xff]  ;;  %vm1078_vm0 = vcmask 261120   ;;  %v1077_v1 = vld [vmem:[%s5801_s5 + $0x8] sm:$0xff] }
  0x3c   : > { %1079 = vst.msk [vmem:[#allocation2] sm:$0xff] %vm1078_vm0, %v1076_v0  ;;  %1080 = vst.msk [vmem:[#allocation2 + $0x8] sm:$0xff] %vm1078_vm0, %v1077_v1 }
  0x3d PF: > { %s5802_s10 = sld [smem:[#allocation8_spill]]  ;;  %v4963_v3 = vmov 0.0   ;;  %vm4964_vm1 = vmmov 0   ;;  %vm1119_vm2 = vcmask 261120   ;;  %vm1354_vm3 = vcmask 64512   ;;  %s4965_s2 = smov 112  }
  0x3e   : > { %s5803_s29 = sld [smem:[#allocation9_spill]]  ;;  %4383 = vmatprep.subr.bf16.mxu0 %v4963_v3  ;;  %4407 = vmatprep.subr.bf16.mxu1 %v4963_v3  ;;  %s4966_s24 = smov 120   ;;  %vm1822_vm4 = vcmask 1043456   ;;  %vm2214_vm6 = vcmask 130048   ;;  %vm2217_vm7 = vcmask 195584  }
  0x3f   : > { %4387 = vmatprep.mubr.msk.bf16.mxu0 %vm4964_vm1, %v4963_v3  ;;  %s5804_s12 = sld [smem:[#allocation10_spill]]  ;;  %4409 = vmatprep.mubr.msk.bf16.mxu1 %vm4964_vm1, %v4963_v3  ;;  %s4967_s25 = smov 104  }
  0x40   : > { %s4969_s30 = smov 8   ;;  %s4970_s26 = smov 16  }
  0x41   : > { %s5805_s13 = sld [smem:[#allocation18_spill]] }
  0x42   : > { %s5810_s27 = sld [smem:[#allocation20_spill]] }
  0x43   : > { %v4823_v2 = vld [vmem:[%s5802_s10 + $0x8] sm:$0xff]   ;;  %v4824_v4 = vld [vmem:[%s5802_s10] sm:$0xff]  }
  0x44   : > { %4384 = vmatpush3.bf16.msra.mxu0 %v4823_v2  ;;  %v5226_v5 = vld [vmem:[#allocation2] sm:$0xff]  ;;  %v5228_v6 = vld [vmem:[#allocation2 + $0x8] sm:$0xff] }
  0x45   : > { %4385 = vmatprep.subr.bf16.mxu0 %v4963_v3  ;;  %v4825_v7 = vld [vmem:[%s5803_s29 + $0x8] sm:$0xff]   ;;  %v1106_v8 = vpack.c.bf16 %v5228_v6, %v5226_v5  ;;  %v4826_v9 = vld [vmem:[%s5803_s29] sm:$0xff]  }
  0x46   : > { %v4827_v10 = vld [vmem:[%s5804_s12 + $0x8] sm:$0xff]   ;;  %v4828_v11 = vld [vmem:[%s5804_s12] sm:$0xff]   ;;  %s5807_s12 = sld [smem:[#allocation12_spill]] }
  0x47   : > { %s5806_s0 = scalar_lea.vmem %s5805_s13, %s5119_s6  ;;  %s5808_s13 = sld [smem:[#allocation19_spill]] }
  0x48   : > { %4386 = vmatpush3.bf16.msra.mxu0 %v4824_v4  ;;  %s5811_s4 = scalar_lea.vmem %s5810_s27, %s5119_s6  ;;  %s5816_s27 = scalar_lea.vmem %s5746_s18, %s5119_s6 }
  0x49   : > { %4391 = vmatprep.subr.bf16.mxu0 %v4963_v3 }
  0x4b   : > { %4388 = vmatmul.mubr.msk.bf16.vlgmr.msra.gmra.mxu0 %vm1119_vm2, %v1106_v8 }
  0x4c   : > { %4392 = vmatpush3.bf16.msra.mxu0 %v4825_v7  ;;  %4395 = vmatprep.mubr.msk.bf16.mxu0 %vm4964_vm1, %v4963_v3 }
  0x4d   : > { %4393 = vmatprep.subr.bf16.mxu0 %v4963_v3 }
  0x50   : > { %4394 = vmatpush3.bf16.msra.mxu0 %v4826_v9 }
  0x51   : > { %4399 = vmatprep.subr.bf16.mxu0 %v4963_v3 }
  0x53   : > { %4396 = vmatmul.mubr.msk.bf16.vlgmr.msra.gmra.mxu0 %vm1119_vm2, %v1106_v8 }
  0x54   : > { %4403 = vmatprep.mubr.msk.bf16.mxu0 %vm4964_vm1, %v4963_v3  ;;  %4400 = vmatpush3.bf16.msra.mxu0 %v4827_v10 }
  0x55   : > { %4401 = vmatprep.subr.bf16.mxu0 %v4963_v3 }
  0x58   : > { %4402 = vmatpush3.bf16.msra.mxu0 %v4828_v11  ;;  %v1083_v11 = vlaneseq }
  0x59   : > { %4413 = vmatprep.subr.bf16.mxu0 %v4963_v3 }
  0x5b   : > { %4404 = vmatmul.mubr.msk.bf16.vlgmr.msra.gmra.mxu0 %vm1119_vm2, %v1106_v8 }
  0x5c   : > { %4415 = vmatprep.mubr.msk.bf16.mxu0 %vm4964_vm1, %v4963_v3 }
 0x10b   : > { %v1157_v12 = vpop.f32.mrf.mxu0 }
 0x10c   : > { %v1290_v25 = vpack.c.bf16 %v1157_v12, %v1157_v12 }
 0x10d   : > { %v4389_v13 = vpop.f32.mrf.mxu0 }
 0x10e   : > { %v1086_v13 = vand.u32 127, %v1083_v11 }
 0x10f   : > { %v1160_v14 = vpop.f32.mrf.mxu0 }
 0x110   : > { %v4718_v26 = vpack.i.bf16 %v1160_v14, %v1157_v12  ;;  %v1291_v27 = vpack.c.bf16 %v1160_v14, %v1160_v14  ;;  %v5311_v12 = vshrl.u32 %v1083_v11, 7  ;;  %v4968_v14 = vmov -1e+20  }
 0x111   : > { %v4390_v15 = vpop.f32.mrf.mxu0 }
 0x112   : > { %vm1087_vm5 = vcmp.ge.s32.totalorder %v5311_v12, %v1086_v13 }
 0x113   : > { %v1210_v16 = vpop.f32.mrf.mxu0  ;;  %v1088_v15 = vsel %vm1087_vm5, 0.0, %v4968_v14 }
 0x114   : > { %v1318_v17 = vpack.c.bf16 %v1210_v16, %v1210_v16 }
 0x115   : > { %v4397_v18 = vpop.f32.mrf.mxu0 }
 0x116   : > { %v1359_v19 = vsel %vm1354_vm3, %v1318_v17, 0 }
 0x117   : > { %v1213_v20 = vpop.f32.mrf.mxu0  ;;  %4408 = vmatpush3.bf16.xpose.msra.mxu1 %v1359_v19 }
 0x118   : > { %v4713_v21 = vpack.i.bf16 %v1213_v20, %v1210_v16  ;;  %v1319_v22 = vpack.c.bf16 %v1213_v20, %v1213_v20  ;;  %4419 = vmatprep.subr.bf16.mxu1 %v4963_v3 }
 0x119   : > { %v4398_v23 = vpop.f32.mrf.mxu0 }
 0x11a   : > { %4714 = vrot.lane.b32.xlu1 %v4713_v21, %s4965_s2  ;;  %4704 = vrot.lane.b32.xlu0 %v4713_v21, %s4966_s24  ;;  %v1405_v24 = vsel %vm1354_vm3, %v1319_v22, 0 }
 0x11b   : > { %4414 = vmatpush3.bf16.xpose.msra.mxu0 %v1405_v24  ;;  %v5269_v28 = vpop.f32.mrf.mxu0 }
 0x11c   : > { %4425 = vmatprep.subr.bf16.mxu0 %v4963_v3  ;;  %v1346_v2 = vpack.c.bf16 %v5269_v28, %v5269_v28 }
 0x11d   : > { %v4405_v29 = vpop.f32.mrf.mxu0 }
 0x11e   : > { %4410 = vmatmul.mubr.msk.bf16.vlgmr.msra.gmra.mxu1 %vm1354_vm3, %v1290_v25  ;;  %4719 = vrot.lane.b32.xlu1 %v4718_v26, %s4965_s2  ;;  %v1824_v9 = vsel %vm1822_vm4, %v1346_v2, 0 }
 0x11f   : > { %4709 = vrot.lane.b32.xlu0 %v4718_v26, %s4966_s24  ;;  %4421 = vmatprep.mubr.msk.bf16.mxu1 %vm4964_vm1, %v4963_v3  ;;  %v5271_v30 = vpop.f32.mrf.mxu0 }
 0x120   : > { %v1347_v4 = vpack.c.bf16 %v5271_v30, %v5271_v30 }
 0x121   : > { %v4406_v31 = vpop.f32.mrf.mxu0 }
 0x122   : > { %4729 = vrot.lane.b32.xlu1 %v4718_v26, %s4967_s25  ;;  %4416 = vmatmul.mubr.msk.bf16.vlgmr.msra.gmra.mxu0 %vm1354_vm3, %v1291_v27  ;;  %v1870_v10 = vsel %vm1822_vm4, %v1347_v4, 0 }
 0x123   : > { %4724 = vrot.lane.b32.xlu0 %v4713_v21, %s4967_s25  ;;  %4427 = vmatprep.mubr.msk.bf16.mxu0 %vm4964_vm1, %v4963_v3 }
 0x18c   : > { %v4705_v32 = vpop.permute.xlu0 %4704  ;;  %v4715_v35 = vpop.permute.xlu1 %4714 }
 0x18d   : > { %v4707_v33 = vunpack.i.h.bf16 %v4705_v32  ;;  %v4706_v34 = vunpack.i.l.bf16 %v4705_v32  ;;  %v4717_v38 = vunpack.i.h.bf16 %v4715_v35  ;;  %v4716_v39 = vunpack.i.l.bf16 %v4715_v35 }
 0x18f   : > { %v1321_v36 = vpack.c.bf16 %v4707_v33, %v4707_v33  ;;  %v1320_v37 = vpack.c.bf16 %v4706_v34, %v4706_v34  ;;  %v1323_v45 = vpack.c.bf16 %v4717_v38, %v4717_v38  ;;  %v1322_v46 = vpack.c.bf16 %v4716_v39, %v4716_v39 }
 0x190   : > { %v4720_v50 = vpop.permute.xlu1 %4719 }
 0x191   : > { %v4710_v40 = vpop.permute.xlu0 %4709  ;;  %v1451_v41 = vsel %vm1354_vm3, %v1320_v37, 0  ;;  %v1497_v42 = vsel %vm1354_vm3, %v1321_v36, 0  ;;  %v1543_v53 = vsel %vm1354_vm3, %v1322_v46, 0  ;;  %v1589_v54 = vsel %vm1354_vm3, %v1323_v45, 0 }
 0x192   : > { %4420 = vmatpush3.bf16.xpose.msra.mxu1 %v1451_v41  ;;  %4426 = vmatpush3.bf16.xpose.msra.mxu0 %v1497_v42  ;;  %v4712_v43 = vunpack.i.h.bf16 %v4710_v40  ;;  %v4711_v44 = vunpack.i.l.bf16 %v4710_v40  ;;  %v4722_v55 = vunpack.i.h.bf16 %v4720_v50  ;;  %v4721_v56 = vunpack.i.l.bf16 %v4720_v50 }
 0x193   : > { %4431 = vmatprep.subr.bf16.mxu1 %v4963_v3  ;;  %4437 = vmatprep.subr.bf16.mxu0 %v4963_v3 }
 0x194   : > { %v1293_v48 = vpack.c.bf16 %v4712_v43, %v4712_v43  ;;  %v1292_v49 = vpack.c.bf16 %v4711_v44, %v4711_v44  ;;  %v1295_v59 = vpack.c.bf16 %v4722_v55, %v4722_v55  ;;  %v1294_v60 = vpack.c.bf16 %v4721_v56, %v4721_v56  ;;  %v4730_v61 = vpop.permute.xlu1 %4729 }
 0x195   : > { %v4725_v47 = vpop.permute.xlu0 %4724  ;;  %v4732_v0 = vunpack.i.h.bf16 %v4730_v61  ;;  %v4731_v1 = vunpack.i.l.bf16 %v4730_v61 }
 0x196   : > { %v4727_v51 = vunpack.i.h.bf16 %v4725_v47  ;;  %v4726_v52 = vunpack.i.l.bf16 %v4725_v47 }
 0x197   : > { %v1297_v7 = vpack.c.bf16 %v4732_v0, %v4732_v0  ;;  %v1296_v8 = vpack.c.bf16 %v4731_v1, %v4731_v1 }
 0x198   : > { %v1325_v57 = vpack.c.bf16 %v4727_v51, %v4727_v51  ;;  %v1324_v58 = vpack.c.bf16 %v4726_v52, %v4726_v52 }
 0x199   : > { %4422 = vmatmul.mubr.msk.bf16.vlgmr.msra.gmra.mxu1 %vm1354_vm3, %v1292_v49  ;;  %4428 = vmatmul.mubr.msk.bf16.vlgmr.msra.gmra.mxu0 %vm1354_vm3, %v1293_v48 }
 0x19a   : > { %4432 = vmatpush3.bf16.xpose.msra.mxu1 %v1543_v53  ;;  %4438 = vmatpush3.bf16.xpose.msra.mxu0 %v1589_v54  ;;  %v1635_v62 = vsel %vm1354_vm3, %v1324_v58, 0  ;;  %v1681_v63 = vsel %vm1354_vm3, %v1325_v57, 0 }
 0x19b   : > { %4433 = vmatprep.mubr.msk.bf16.mxu1 %vm4964_vm1, %v4963_v3  ;;  %4439 = vmatprep.mubr.msk.bf16.mxu0 %vm4964_vm1, %v4963_v3 }
 0x19c   : > { %4443 = vmatprep.subr.bf16.mxu1 %v4963_v3  ;;  %4449 = vmatprep.subr.bf16.mxu0 %v4963_v3 }
 0x1a1   : > { %4434 = vmatmul.mubr.msk.bf16.vlgmr.msra.gmra.mxu1 %vm1354_vm3, %v1294_v60  ;;  %4440 = vmatmul.mubr.msk.bf16.vlgmr.msra.gmra.mxu0 %vm1354_vm3, %v1295_v59 }
 0x1a2   : > { %4444 = vmatpush3.bf16.xpose.msra.mxu1 %v1635_v62  ;;  %4450 = vmatpush3.bf16.xpose.msra.mxu0 %v1681_v63 }
 0x1a3   : > { %4445 = vmatprep.mubr.msk.bf16.mxu1 %vm4964_vm1, %v4963_v3  ;;  %4451 = vmatprep.mubr.msk.bf16.mxu0 %vm4964_vm1, %v4963_v3 }
 0x1a4   : > { %4455 = vmatprep.subr.bf16.mxu1 %v4963_v3  ;;  %4461 = vmatprep.subr.bf16.mxu0 %v4963_v3 }
 0x1a9   : > { %4446 = vmatmul.mubr.msk.bf16.vlgmr.msra.gmra.mxu1 %vm1354_vm3, %v1296_v8  ;;  %4452 = vmatmul.mubr.msk.bf16.vlgmr.msra.gmra.mxu0 %vm1354_vm3, %v1297_v7  ;;  %v5327_v8 = vpack.i.bf16 %v5271_v30, %v5269_v28 }
 0x1aa   : > { %4456 = vmatpush3.bf16.msra.mxu1 %v1824_v9  ;;  %4462 = vmatpush3.bf16.msra.mxu0 %v1870_v10 }
 0x1ab   : > { %4463 = vmatprep.mubr.msk.bf16.mxu0 %vm4964_vm1, %v4963_v3  ;;  %4473 = vmatprep.subr.bf16.mxu0 %v4963_v3 }
 0x1ac   : > { %4457 = vmatprep.mubr.msk.bf16.mxu1 %vm4964_vm1, %v4963_v3  ;;  %4467 = vmatprep.subr.bf16.mxu1 %v4963_v3 }
 0x1de   : > { %v1395_v16 = vpop.f32.mrf.mxu1 }
 0x1df   : > { %v5314_v17 = vadd.f32 %v1395_v16, %v1088_v15 }
 0x1e0   : > { %v4411_v18 = vpop.f32.mrf.mxu1 }
 0x1e1   : > { %v1723_v19 = vsel %vm1354_vm3, %v5314_v17, -inf }
 0x1e2   : > { %v1398_v20 = vpop.f32.mrf.mxu1  ;;  %1724 = vmax.xlane.f32.xlu0 %v1723_v19  ;;  %v1441_v21 = vpop.f32.mrf.mxu0 }
 0x1e3   : > { %v1442_v22 = vadd.f32 %v1441_v21, %v1088_v15 }
 0x1e4   : > { %v4412_v23 = vpop.f32.mrf.mxu1  ;;  %v4417_v24 = vpop.f32.mrf.mxu0 }
 0x1e5   : > { %v1726_v25 = vsel %vm1354_vm3, %v1442_v22, -inf }
 0x1e6   : > { %1727 = vmax.xlane.f32.xlu1 %v1726_v25  ;;  %v1444_v26 = vpop.f32.mrf.mxu0 }
 0x1e8   : > { %v4418_v27 = vpop.f32.mrf.mxu0 }
 0x259   : > { %v1487_v29 = vpop.f32.mrf.mxu1  ;;  %v1533_v31 = vpop.f32.mrf.mxu0 }
 0x25a   : > { %v1488_v32 = vadd.f32 %v1487_v29, %v1088_v15  ;;  %v1534_v35 = vadd.f32 %v1533_v31, %v1088_v15 }
 0x25b   : > { %v4423_v33 = vpop.f32.mrf.mxu1  ;;  %v4429_v34 = vpop.f32.mrf.mxu0 }
 0x25c   : > { %v1729_v36 = vsel %vm1354_vm3, %v1488_v32, -inf  ;;  %v1732_v41 = vsel %vm1354_vm3, %v1534_v35, -inf }
 0x25d   : > { %1730 = vmax.xlane.f32.xlu0 %v1729_v36  ;;  %v1490_v37 = vpop.f32.mrf.mxu1  ;;  %v1536_v38 = vpop.f32.mrf.mxu0 }
 0x25f   : > { %v4424_v39 = vpop.f32.mrf.mxu1  ;;  %v4430_v40 = vpop.f32.mrf.mxu0 }
 0x261   : > { %v1579_v42 = vpop.f32.mrf.mxu1  ;;  %1733 = vmax.xlane.f32.xlu0 %v1732_v41  ;;  %v1625_v43 = vpop.f32.mrf.mxu0 }
 0x262   : > { %v1580_v44 = vadd.f32 %v1579_v42, %v1088_v15  ;;  %v1626_v45 = vadd.f32 %v1625_v43, %v1088_v15 }
 0x263   : > { %v4435_v46 = vpop.f32.mrf.mxu1  ;;  %v4441_v47 = vpop.f32.mrf.mxu0 }
 0x264   : > { %v1735_v48 = vsel %vm1354_vm3, %v1580_v44, -inf  ;;  %v1738_v49 = vsel %vm1354_vm3, %v1626_v45, -inf }
 0x265   : > { %v1582_v50 = vpop.f32.mrf.mxu1  ;;  %1736 = vmax.xlane.f32.xlu1 %v1735_v48  ;;  %1739 = vmax.xlane.f32.xlu0 %v1738_v49  ;;  %v1628_v51 = vpop.f32.mrf.mxu0 }
 0x267   : > { %v4436_v52 = vpop.f32.mrf.mxu1  ;;  %v4442_v53 = vpop.f32.mrf.mxu0 }
 0x269   : > { %v1671_v54 = vpop.f32.mrf.mxu1  ;;  %v1717_v55 = vpop.f32.mrf.mxu0 }
 0x26a   : > { %v1672_v56 = vadd.f32 %v1671_v54, %v1088_v15  ;;  %v1718_v57 = vadd.f32 %v1717_v55, %v1088_v15 }
 0x26b   : > { %v4447_v58 = vpop.f32.mrf.mxu1  ;;  %v4453_v59 = vpop.f32.mrf.mxu0 }
 0x26c   : > { %v1741_v60 = vsel %vm1354_vm3, %v1672_v56, -inf  ;;  %v1744_v61 = vsel %vm1354_vm3, %v1718_v57, -inf  ;;  %v1725_v11 = vpop.xlane.xlu0 %1724 }
 0x26d   : > { %v1674_v62 = vpop.f32.mrf.mxu1  ;;  %1742 = vmax.xlane.f32.xlu1 %v1741_v60  ;;  %1745 = vmax.xlane.f32.xlu0 %v1744_v61  ;;  %v1720_v63 = vpop.f32.mrf.mxu0  ;;  %v1747_v13 = vsub.f32 %v5314_v17, %v1725_v11 }
 0x26f   : > { %v4448_v0 = vpop.f32.mrf.mxu1  ;;  %v1728_v1 = vpop.xlane.xlu1 %1727  ;;  %v1755_v14 = vmul.f32 1.442695, %v1747_v13 }
 0x270   : > { %v1748_v2 = vsub.f32 %v1442_v22, %v1728_v1  ;;  %v4454_v4 = vpop.f32.mrf.mxu0 }
 0x272   : > { %v1757_v7 = vmul.f32 1.442695, %v1748_v2 }
 0x274   : > { %4849 = vpow2.f32 %v1757_v7 }
 0x275   : > { %4851 = vpow2.f32 %v1755_v14 }
 0x27e   : > { %4734 = vrot.lane.b32.xlu1 %v5327_v8, %s4966_s24 }
 0x281   : > { %v4850_v9 = vpop.eup %4849 }
 0x282   : > { %v1774_v10 = vsel %vm1354_vm3, %v4850_v9, 0.0  ;;  %v5333_v15 = vpop.eup %4851 }
 0x283   : > { %1775 = vadd.xlane.f32.xlu0 %v1774_v10  ;;  %v1771_v16 = vsel %vm1354_vm3, %v5333_v15, 0.0 }
 0x2a2   : > { %1772 = vadd.xlane.f32.xlu1 %v1771_v16 }
 0x2e6   : > { %v1731_v28 = vpop.xlane.xlu0 %1730 }
 0x2e7   : > { %v1749_v30 = vsub.f32 %v1488_v32, %v1731_v28 }
 0x2e9   : > { %v1759_v18 = vmul.f32 1.442695, %v1749_v30 }
 0x2ea   : > { %v1734_v19 = vpop.xlane.xlu0 %1733 }
 0x2eb   : > { %4853 = vpow2.f32 %v1759_v18  ;;  %v1750_v20 = vsub.f32 %v1534_v35, %v1734_v19 }
 0x2ed   : > { %v1761_v21 = vmul.f32 1.442695, %v1750_v20 }
 0x2ee   : > { %v1737_v22 = vpop.xlane.xlu1 %1736  ;;  %v1740_v23 = vpop.xlane.xlu0 %1739 }
 0x2ef   : > { %4855 = vpow2.f32 %v1761_v21  ;;  %v1751_v24 = vsub.f32 %v1580_v44, %v1737_v22  ;;  %v1752_v17 = vsub.f32 %v1626_v45, %v1740_v23 }
 0x2f1   : > { %v1763_v25 = vmul.f32 1.442695, %v1751_v24  ;;  %v1765_v26 = vmul.f32 1.442695, %v1752_v17 }
 0x2f3   : > { %4857 = vpow2.f32 %v1763_v25 }
 0x2f4   : > { %4859 = vpow2.f32 %v1765_v26 }
 0x2f6   : > { %v1743_v27 = vpop.xlane.xlu1 %1742  ;;  %v1746_v29 = vpop.xlane.xlu0 %1745 }
 0x2f7   : > { %v1753_v31 = vsub.f32 %v1672_v56, %v1743_v27  ;;  %v1754_v33 = vsub.f32 %v1718_v57, %v1746_v29 }
 0x2f8   : > { %v4854_v34 = vpop.eup %4853 }
 0x2f9   : > { %v1767_v32 = vmul.f32 1.442695, %v1753_v31  ;;  %v1769_v36 = vmul.f32 1.442695, %v1754_v33  ;;  %v1777_v37 = vsel %vm1354_vm3, %v4854_v34, 0.0 }
 0x2fa   : > { %1778 = vadd.xlane.f32.xlu1 %v1777_v37  ;;  %v4735_v48 = vpop.permute.xlu1 %4734 }
 0x2fb   : > { %4861 = vpow2.f32 %v1767_v32  ;;  %v4737_v49 = vunpack.i.h.bf16 %v4735_v48  ;;  %v4736_v56 = vunpack.i.l.bf16 %v4735_v48 }
 0x2fc   : > { %v4856_v35 = vpop.eup %4855  ;;  %4863 = vpow2.f32 %v1769_v36 }
 0x2fd   : > { %v1780_v38 = vsel %vm1354_vm3, %v4856_v35, 0.0  ;;  %v1349_v51 = vpack.c.bf16 %v4737_v49, %v4737_v49  ;;  %v1348_v58 = vpack.c.bf16 %v4736_v56, %v4736_v56 }
 0x2fe   : > { %1781 = vadd.xlane.f32.xlu0 %v1780_v38 }
 0x2ff   : > { %v1962_v54 = vsel %vm1822_vm4, %v1349_v51, 0  ;;  %v1916_v61 = vsel %vm1822_vm4, %v1348_v58, 0 }
 0x300   : > { %v5339_v39 = vpop.eup %4857 }
 0x301   : > { %v5341_v40 = vpop.eup %4859  ;;  %v1783_v41 = vsel %vm1354_vm3, %v5339_v39, 0.0 }
 0x302   : > { %1784 = vadd.xlane.f32.xlu1 %v1783_v41  ;;  %v1786_v42 = vsel %vm1354_vm3, %v5341_v40, 0.0 }
 0x303   : > { %1787 = vadd.xlane.f32.xlu0 %v1786_v42 }
 0x308   : > { %v5347_v43 = vpop.eup %4861 }
 0x309   : > { %v5349_v44 = vpop.eup %4863  ;;  %v1789_v45 = vsel %vm1354_vm3, %v5347_v43, 0.0 }
 0x30a   : > { %1790 = vadd.xlane.f32.xlu1 %v1789_v45  ;;  %v1792_v46 = vsel %vm1354_vm3, %v5349_v44, 0.0 }
 0x30b   : > { %1793 = vadd.xlane.f32.xlu0 %v1792_v46 }
 0x30c   : > { %v1776_v47 = vpop.xlane.xlu0 %1775 }
 0x30d   : > { %4865 = vrcp.f32 %v1776_v47 }
 0x31a   : > { %v4866_v50 = vpop.eup %4865 }
 0x31b   : > { %4744 = vrot.lane.b32.xlu1 %v5327_v8, %s4967_s25  ;;  %v1804_v52 = vmul.f32 %v4866_v50, %v4850_v9 }
 0x31d   : > { %v1812_v53 = vpack.c.bf16 %v1804_v52, %v1804_v52  ;;  %v4829_v52 = vld [vmem:[%s5144_s1 + $0x8] sm:$0xff]  }
 0x31f   : > { %4464 = vmatmul.mubr.msk.bf16.vlgmr.msra.gmra.mxu0 %vm1354_vm3, %v1812_v53 }
 0x320   : > { %4474 = vmatpush3.bf16.msra.mxu0 %v1962_v54  ;;  %4475 = vmatprep.mubr.msk.bf16.mxu0 %vm4964_vm1, %v4963_v3 }
 0x321   : > { %4739 = vrot.lane.b32.xlu0 %v5327_v8, %s4965_s2  ;;  %4485 = vmatprep.subr.bf16.mxu0 %v4963_v3 }
 0x32b   : > { %v1773_v55 = vpop.xlane.xlu1 %1772 }
 0x32c   : > { %4867 = vrcp.f32 %v1773_v55 }
 0x339   : > { %v4868_v57 = vpop.eup %4867 }
 0x33a   : > { %v1803_v59 = vmul.f32 %v4868_v57, %v5333_v15 }
 0x33c   : > { %v1811_v60 = vpack.c.bf16 %v1803_v59, %v1803_v59  ;;  %v4830_v59 = vld [vmem:[%s5144_s1] sm:$0xff]   ;;  %s4971_s1 = smov 24  }
 0x33e   : > { %4458 = vmatmul.mubr.msk.bf16.vlgmr.msra.gmra.mxu1 %vm1354_vm3, %v1811_v60 }
 0x33f   : > { %4468 = vmatpush3.bf16.msra.mxu1 %v1916_v61  ;;  %4469 = vmatprep.mubr.msk.bf16.mxu1 %vm4964_vm1, %v4963_v3 }
 0x340   : > { %4479 = vmatprep.subr.bf16.mxu1 %v4963_v3 }
 0x383   : > { %v1779_v62 = vpop.xlane.xlu1 %1778 }
 0x384   : > { %4869 = vrcp.f32 %v1779_v62 }
 0x387   : > { %v1782_v63 = vpop.xlane.xlu0 %1781 }
 0x388   : > { %4871 = vrcp.f32 %v1782_v63 }
 0x38b   : > { %v1785_v0 = vpop.xlane.xlu1 %1784 }
 0x38c   : > { %4873 = vrcp.f32 %v1785_v0  ;;  %v1788_v1 = vpop.xlane.xlu0 %1787 }
 0x38d   : > { %4875 = vrcp.f32 %v1788_v1 }
 0x391   : > { %v4870_v2 = vpop.eup %4869 }
 0x392   : > { %v1805_v4 = vmul.f32 %v4870_v2, %v4854_v34 }
 0x393   : > { %v1791_v7 = vpop.xlane.xlu1 %1790 }
 0x394   : > { %4877 = vrcp.f32 %v1791_v7  ;;  %v1794_v8 = vpop.xlane.xlu0 %1793  ;;  %v1813_v9 = vpack.c.bf16 %v1805_v4, %v1805_v4 }
 0x395   : > { %v4872_v10 = vpop.eup %4871  ;;  %4879 = vrcp.f32 %v1794_v8 }
 0x396   : > { %4470 = vmatmul.mubr.msk.bf16.vlgmr.msra.gmra.mxu1 %vm1354_vm3, %v1813_v9  ;;  %v1806_v11 = vmul.f32 %v4872_v10, %v4856_v35 }
 0x397   : > { %v4745_v13 = vpop.permute.xlu1 %4744  ;;  %4481 = vmatprep.mubr.msk.bf16.mxu1 %vm4964_vm1, %v4963_v3 }
 0x398   : > { %v4740_v14 = vpop.permute.xlu0 %4739  ;;  %v1814_v15 = vpack.c.bf16 %v1806_v11, %v1806_v11  ;;  %v4746_v28 = vunpack.i.l.bf16 %v4745_v13  ;;  %v4747_v20 = vunpack.i.h.bf16 %v4745_v13 }
 0x399   : > { %v4874_v16 = vpop.eup %4873  ;;  %v4742_v30 = vunpack.i.h.bf16 %v4740_v14  ;;  %v4741_v18 = vunpack.i.l.bf16 %v4740_v14 }
 0x39a   : > { %v4876_v19 = vpop.eup %4875  ;;  %4476 = vmatmul.mubr.msk.bf16.vlgmr.msra.gmra.mxu0 %vm1354_vm3, %v1814_v15  ;;  %v1807_v23 = vmul.f32 %v4874_v16, %v5339_v39  ;;  %v1352_v17 = vpack.c.bf16 %v4746_v28, %v4746_v28  ;;  %v1353_v27 = vpack.c.bf16 %v4747_v20, %v4747_v20 }
 0x39b   : > { %v1351_v21 = vpack.c.bf16 %v4742_v30, %v4742_v30  ;;  %v1350_v22 = vpack.c.bf16 %v4741_v18, %v4741_v18  ;;  %4487 = vmatprep.mubr.msk.bf16.mxu0 %vm4964_vm1, %v4963_v3  ;;  %v1808_v24 = vmul.f32 %v4876_v19, %v5341_v40 }
 0x39c   : > { %v1815_v29 = vpack.c.bf16 %v1807_v23, %v1807_v23  ;;  %v2100_v34 = vsel %vm1822_vm4, %v1352_v17, 0  ;;  %v2146_v36 = vsel %vm1822_vm4, %v1353_v27, 0 }
 0x39d   : > { %v2008_v25 = vsel %vm1822_vm4, %v1350_v22, 0  ;;  %v2054_v26 = vsel %vm1822_vm4, %v1351_v21, 0  ;;  %v1816_v31 = vpack.c.bf16 %v1808_v24, %v1808_v24 }
 0x39e   : > { %4480 = vmatpush3.bf16.msra.mxu1 %v2008_v25  ;;  %4486 = vmatpush3.bf16.msra.mxu0 %v2054_v26 }
 0x39f   : > { %4491 = vmatprep.subr.bf16.mxu1 %v4963_v3  ;;  %4497 = vmatprep.subr.bf16.mxu0 %v4963_v3 }
 0x3a1   : > { %v4878_v33 = vpop.eup %4877  ;;  %4482 = vmatmul.mubr.msk.bf16.vlgmr.msra.gmra.mxu1 %vm1354_vm3, %v1815_v29 }
 0x3a2   : > { %v4880_v32 = vpop.eup %4879  ;;  %4492 = vmatpush3.bf16.msra.mxu1 %v2100_v34  ;;  %4488 = vmatmul.mubr.msk.bf16.vlgmr.msra.gmra.mxu0 %vm1354_vm3, %v1816_v31  ;;  %v1809_v37 = vmul.f32 %v4878_v33, %v5347_v43  ;;  %v4208_v34 = vld [vmem:[%s5806_s0] ss:$0 sm:$0xff]  ;;  %s5809_s0 = scalar_lea.vmem %s5808_s13, %s5119_s6 }
 0x3a3   : > { %4498 = vmatpush3.bf16.msra.mxu0 %v2146_v36  ;;  %4493 = vmatprep.mubr.msk.bf16.mxu1 %vm4964_vm1, %v4963_v3  ;;  %v1810_v35 = vmul.f32 %v4880_v32, %v5349_v44 }
 0x3a4   : > { %4499 = vmatprep.mubr.msk.bf16.mxu0 %vm4964_vm1, %v4963_v3  ;;  %4503 = vmatprep.subr.bf16.mxu1 %v4963_v3  ;;  %v1817_v38 = vpack.c.bf16 %v1809_v37, %v1809_v37 }
 0x3a5   : > { %4511 = vmatprep.subr.bf16.mxu0 %v4963_v3  ;;  %v1818_v39 = vpack.c.bf16 %v1810_v35, %v1810_v35 }
 0x3a9   : > { %4494 = vmatmul.mubr.msk.bf16.vlgmr.msra.gmra.mxu1 %vm1354_vm3, %v1817_v38 }
 0x3aa   : > { %4500 = vmatmul.mubr.msk.bf16.vlgmr.msra.gmra.mxu0 %vm1354_vm3, %v1818_v39  ;;  %4507 = vmatprep.mubr.msk.bf16.mxu1 %vm4964_vm1, %v4963_v3 }
 0x3ab   : > { %4515 = vmatprep.mubr.msk.bf16.mxu0 %vm4964_vm1, %v4963_v3  ;;  %4504 = vmatpush3.bf16.msra.mxu1 %v4829_v52 }
 0x3ac   : > { %4505 = vmatprep.subr.bf16.mxu1 %v4963_v3 }
 0x3af   : > { %4506 = vmatpush3.bf16.msra.mxu1 %v4830_v59 }
 0x3b0   : > { %4519 = vmatprep.subr.bf16.mxu1 %v4963_v3 }
 0x3df   : > { %v1906_v40 = vpop.f32.mrf.mxu0 }
 0x3e1   : > { %v4465_v41 = vpop.f32.mrf.mxu0 }
 0x3e3   : > { %v1909_v42 = vpop.f32.mrf.mxu0 }
 0x3e5   : > { %v4466_v43 = vpop.f32.mrf.mxu0 }
 0x3fe   : > { %v1860_v44 = vpop.f32.mrf.mxu1 }
 0x400   : > { %v4459_v45 = vpop.f32.mrf.mxu1 }
 0x402   : > { %v1863_v46 = vpop.f32.mrf.mxu1 }
 0x404   : > { %v4460_v47 = vpop.f32.mrf.mxu1 }
 0x456   : > { %v1952_v48 = vpop.f32.mrf.mxu1 }
 0x458   : > { %v4471_v49 = vpop.f32.mrf.mxu1 }
 0x45a   : > { %v1955_v50 = vpop.f32.mrf.mxu1  ;;  %v1998_v51 = vpop.f32.mrf.mxu0 }
 0x45b   : > { %v4748_v53 = vpack.i.bf16 %v1998_v51, %v1952_v48 }
 0x45c   : > { %v4472_v54 = vpop.f32.mrf.mxu1  ;;  %v4477_v55 = vpop.f32.mrf.mxu0 }
 0x45d   : > { %4749 = vrot.lane.b32.xlu1 %v4748_v53, %s4969_s30  ;;  %v4832_v53 = vld [vmem:[%s5162_s7] sm:$0xff]   ;;  %v2331_v55 = vld [vmem:[%s5807_s12 + $0x8] sm:$0xff] }
 0x45e   : > { %v2001_v56 = vpop.f32.mrf.mxu0  ;;  %v2330_v54 = vld [vmem:[%s5807_s12] sm:$0xff] }
 0x45f   : > { %v2376_v56 = vpack.c.bf16 %v2331_v55, %v2330_v54 }
 0x460   : > { %v4478_v57 = vpop.f32.mrf.mxu0 }
 0x461   : > { %v2044_v58 = vpop.f32.mrf.mxu1  ;;  %v4833_v57 = vld [vmem:[%s5157_s23 + $0x8] sm:$0xff]  }
 0x462   : > { %v2090_v60 = vpop.f32.mrf.mxu0  ;;  %4512 = vmatpush3.bf16.msra.mxu0 %v4833_v57 }
 0x463   : > { %v4483_v61 = vpop.f32.mrf.mxu1  ;;  %v4753_v62 = vpack.i.bf16 %v2090_v60, %v2044_v58  ;;  %v4834_v58 = vld [vmem:[%s5157_s23] sm:$0xff]   ;;  %4513 = vmatprep.subr.bf16.mxu0 %v4963_v3  ;;  %s5812_s23 = sld [smem:[#allocation13_spill]] }
 0x464   : > { %v4489_v63 = vpop.f32.mrf.mxu0 }
 0x465   : > { %v2047_v0 = vpop.f32.mrf.mxu1  ;;  %4754 = vrot.lane.b32.xlu0 %v4753_v62, %s4970_s26 }
 0x466   : > { %v2093_v1 = vpop.f32.mrf.mxu0  ;;  %4514 = vmatpush3.bf16.msra.mxu0 %v4834_v58 }
 0x467   : > { %v4484_v2 = vpop.f32.mrf.mxu1  ;;  %4527 = vmatprep.subr.bf16.mxu0 %v4963_v3 }
 0x468   : > { %v4490_v4 = vpop.f32.mrf.mxu0 }
 0x469   : > { %v2136_v7 = vpop.f32.mrf.mxu1  ;;  %v4212_v4 = vld [vmem:[%s5809_s0] ss:$0 sm:$0xff]  ;;  %s5815_s0 = scalar_lea.vmem %s5744_s16, %s5119_s6 }
 0x46a   : > { %v2182_v8 = vpop.f32.mrf.mxu0 }
 0x46b   : > { %v4495_v9 = vpop.f32.mrf.mxu1  ;;  %v4758_v10 = vpack.i.bf16 %v2182_v8, %v2136_v7 }
 0x46c   : > { %v4501_v11 = vpop.f32.mrf.mxu0 }
 0x46d   : > { %v2139_v13 = vpop.f32.mrf.mxu1  ;;  %4759 = vrot.lane.b32.xlu1 %v4758_v10, %s4971_s1  ;;  %v4213_v10 = vld [vmem:[%s5811_s4] ss:$0 sm:$0xff] }
 0x46e   : > { %v2185_v14 = vpop.f32.mrf.mxu0 }
 0x46f   : > { %v4496_v15 = vpop.f32.mrf.mxu1 }
 0x470   : > { %v4502_v16 = vpop.f32.mrf.mxu0  ;;  %v4835_v15 = vld [vmem:[%s5167_s8 + $0x8] sm:$0xff]  }
 0x4cf   : > { %v4750_v28 = vpop.permute.xlu1 %4749 }
 0x4d0   : > { %v4752_v18 = vunpack.i.h.bf16 %v4750_v28  ;;  %v4751_v19 = vunpack.i.l.bf16 %v4750_v28  ;;  %v4836_v28 = vld [vmem:[%s5167_s8] sm:$0xff]  }
 0x4d2   : > { %v2213_v23 = vsel %vm1354_vm3, %v1906_v40, %v4752_v18  ;;  %v2212_v24 = vsel %vm1354_vm3, %v1860_v44, %v4751_v19 }
 0x4d7   : > { %v4755_v30 = vpop.permute.xlu0 %4754 }
 0x4d8   : > { %v4757_v20 = vunpack.i.h.bf16 %v4755_v30  ;;  %v4756_v21 = vunpack.i.l.bf16 %v4755_v30 }
 0x4da   : > { %v2216_v26 = vsel %vm2214_vm6, %v2213_v23, %v4757_v20  ;;  %v2215_v27 = vsel %vm2214_vm6, %v2212_v24, %v4756_v21 }
 0x4df   : > { %v4760_v22 = vpop.permute.xlu1 %4759 }
 0x4e0   : > { %v4762_v17 = vunpack.i.h.bf16 %v4760_v22  ;;  %v4761_v25 = vunpack.i.l.bf16 %v4760_v22 }
 0x4e2   : > { %v2219_v29 = vsel %vm2217_vm7, %v2216_v26, %v4762_v17  ;;  %v2218_v31 = vsel %vm2217_vm7, %v2215_v27, %v4761_v25 }
 0x4e3   : > { %v2220_v33 = vpack.c.bf16 %v2219_v29, %v2218_v31 }
 0x4e5   : > { %4508 = vmatmul.mubr.msk.bf16.vlgmr.msra.gmra.mxu1 %vm1119_vm2, %v2220_v33 }
 0x4e6   : > { %4523 = vmatprep.mubr.msk.bf16.mxu1 %vm4964_vm1, %v4963_v3 }
 0x5a5   : > { %v2276_v32 = vpop.f32.mrf.mxu1 }
 0x5a6   : > { %v2277_v36 = vadd.f32 %v4208_v34, %v2276_v32 }
 0x5a7   : > { %v4509_v37 = vpop.f32.mrf.mxu1 }
 0x5a8   : > { %v2283_v35 = vadd.f32 %v2277_v36, %v5226_v5 }
 0x5a9   : > { %v2279_v38 = vpop.f32.mrf.mxu1 }
 0x5aa   : > { %v2280_v39 = vadd.f32 %v4208_v34, %v2279_v38  ;;  %v2287_v40 = vsel %vm1119_vm2, %v2283_v35, 0.0 }
 0x5ab   : > { %2288 = vadd.xlane.f32.xlu0 %v2287_v40  ;;  %v4510_v41 = vpop.f32.mrf.mxu1 }
 0x5ac   : > { %v2284_v42 = vadd.f32 %v2280_v39, %v5228_v6  ;;  %v4831_v6 = vld [vmem:[%s5162_s7 + $0x8] sm:$0xff]  }
 0x5ad   : > { %4520 = vmatpush3.bf16.msra.mxu1 %v4831_v6 }
 0x5ae   : > { %v2290_v43 = vsel %vm1119_vm2, %v2284_v42, 0.0  ;;  %4521 = vmatprep.subr.bf16.mxu1 %v4963_v3 }
 0x5af   : > { %2291 = vadd.xlane.f32.xlu1 %v2290_v43 }
 0x5b1   : > { %4522 = vmatpush3.bf16.msra.mxu1 %v4832_v53 }
 0x5b2   : > { %4535 = vmatprep.subr.bf16.mxu1 %v4963_v3 }
 0x5b4   : > { %4524 = vmatmul.mubr.msk.bf16.vlgmr.msra.gmra.mxu1 %vm1119_vm2, %v2376_v56 }
 0x5b5   : > { %4537 = vmatprep.mubr.msk.bf16.mxu1 %vm4964_vm1, %v4963_v3 }
 0x634   : > { %v2289_v44 = vpop.xlane.xlu0 %2288 }
 0x635   : > { %v2294_v45 = vmul.f32 0.03125, %v2289_v44 }
 0x637   : > { %v2296_v46 = vsub.f32 %v2283_v35, %v2294_v45 }
 0x638   : > { %v2292_v47 = vpop.xlane.xlu1 %2291 }
 0x639   : > { %v2295_v48 = vmul.f32 0.03125, %v2292_v47  ;;  %v2298_v49 = vmul.f32 %v2296_v46, %v2296_v46 }
 0x63b   : > { %v2297_v5 = vsub.f32 %v2284_v42, %v2295_v48  ;;  %v2300_v50 = vsel %vm1119_vm2, %v2298_v49, 0.0 }
 0x63c   : > { %2301 = vadd.xlane.f32.xlu0 %v2300_v50 }
 0x63d   : > { %v2299_v51 = vmul.f32 %v2297_v5, %v2297_v5 }
 0x63f   : > { %v2303_v52 = vsel %vm1119_vm2, %v2299_v51, 0.0 }
 0x640   : > { %2304 = vadd.xlane.f32.xlu0 %v2303_v52 }
 0x674   : > { %v2482_v30 = vpop.f32.mrf.mxu1 }
 0x675   : > { %v2590_v18 = vpack.c.bf16 %v2482_v30, %v2482_v30 }
 0x676   : > { %v4525_v19 = vpop.f32.mrf.mxu1 }
 0x677   : > { %v2640_v20 = vsel %vm1354_vm3, %v2590_v18, 0  ;;  %v2332_v19 = vld [vmem:[%s5812_s23] sm:$0x3] }
 0x678   : > { %v2485_v21 = vpop.f32.mrf.mxu1  ;;  %4536 = vmatpush3.bf16.xpose.msra.mxu1 %v2640_v20  ;;  %v4214_v20 = vadd.f32 -1.0, %v2332_v19 }
 0x679   : > { %v4763_v22 = vpack.i.bf16 %v2485_v21, %v2482_v30  ;;  %v2591_v23 = vpack.c.bf16 %v2485_v21, %v2485_v21  ;;  %4547 = vmatprep.subr.bf16.mxu1 %v4963_v3  ;;  %v4972_v30 = vmov 1966171168  }
 0x67a   : > { %v4526_v24 = vpop.f32.mrf.mxu1  ;;  %v2337_v18 = vunpack.c.l.s4 %v4972_v30 }
 0x67b   : > { %4764 = vrot.lane.b32.xlu1 %v4763_v22, %s4966_s24  ;;  %v2686_v17 = vsel %vm1354_vm3, %v2591_v23, 0 }
 0x67c   : > { %v2338_v21 = vunpack.c.0.s8 %v2337_v18 }
 0x67e   : > { %v2341_v23 = vsub.s32 %v2338_v21, %v5311_v12 }
 0x67f   : > { %4774 = vrot.lane.b32.xlu1 %v4763_v22, %s4965_s2 }
 0x6c5   : > { %v2302_v59 = vpop.xlane.xlu0 %2301 }
 0x6c6   : > { %v2306_v60 = vmul.f32 0.03125, %v2302_v59 }
 0x6c8   : > { %v2308_v61 = vadd.f32 1e-05, %v2306_v60 }
 0x6c9   : > { %v2305_v62 = vpop.xlane.xlu0 %2304 }
 0x6ca   : > { %4881 = vrsqrt.f32 %v2308_v61  ;;  %v2307_v63 = vmul.f32 0.03125, %v2305_v62 }
 0x6cc   : > { %v2309_v0 = vadd.f32 1e-05, %v2307_v63 }
 0x6ce   : > { %4883 = vrsqrt.f32 %v2309_v0 }
 0x6d7   : > { %v4882_v1 = vpop.eup %4881 }
 0x6d8   : > { %v2312_v2 = vmul.f32 %v4882_v1, %v2296_v46 }
 0x6da   : > { %v2320_v9 = vmul.f32 %v4212_v4, %v2312_v2 }
 0x6db   : > { %v4884_v7 = vpop.eup %4883 }
 0x6dc   : > { %v2313_v8 = vmul.f32 %v4884_v7, %v2297_v5  ;;  %v5454_v13 = vadd.f32 %v4213_v10, %v2320_v9 }
 0x6de   : > { %v2321_v11 = vmul.f32 %v4212_v4, %v2313_v8 }
 0x6e0   : > { %v5456_v14 = vadd.f32 %v4213_v10, %v2321_v11 }
 0x6e2   : > { %v2375_v16 = vpack.c.bf16 %v5456_v14, %v5454_v13 }
 0x6e4   : > { %4516 = vmatmul.mubr.msk.bf16.vlgmr.msra.gmra.mxu0 %vm1119_vm2, %v2375_v16 }
 0x6e5   : > { %4528 = vmatpush3.bf16.msra.mxu0 %v4835_v15  ;;  %4531 = vmatprep.mubr.msk.bf16.mxu0 %vm4964_vm1, %v4963_v3 }
 0x6e6   : > { %4529 = vmatprep.subr.bf16.mxu0 %v4963_v3 }
 0x6e9   : > { %4530 = vmatpush3.bf16.msra.mxu0 %v4836_v28 }
 0x6ea   : > { %4541 = vmatprep.subr.bf16.mxu0 %v4963_v3 }
 0x6ec   : > { %4532 = vmatmul.mubr.msk.bf16.vlgmr.msra.gmra.mxu0 %vm1119_vm2, %v2376_v56 }
 0x6ed   : > { %4543 = vmatprep.mubr.msk.bf16.mxu0 %vm4964_vm1, %v4963_v3  ;;  %4542 = vmatpush3.bf16.xpose.msra.mxu0 %v2686_v17  ;;  %v4765_v25 = vpop.permute.xlu1 %4764 }
 0x6ee   : > { %4553 = vmatprep.subr.bf16.mxu0 %v4963_v3  ;;  %v4766_v26 = vunpack.i.l.bf16 %v4765_v25  ;;  %v4767_v29 = vunpack.i.h.bf16 %v4765_v25  ;;  %v2628_v25 = vsub.s32 0, %v5311_v12 }
 0x6f0   : > { %v2592_v27 = vpack.c.bf16 %v4766_v26, %v4766_v26  ;;  %v2593_v36 = vpack.c.bf16 %v4767_v29, %v4767_v29 }
 0x6f1   : > { %v4775_v45 = vpop.permute.xlu1 %4774 }
 0x6f2   : > { %v2732_v34 = vsel %vm1354_vm3, %v2592_v27, 0  ;;  %v2778_v40 = vsel %vm1354_vm3, %v2593_v36, 0  ;;  %v4777_v46 = vunpack.i.h.bf16 %v4775_v45  ;;  %v4776_v47 = vunpack.i.l.bf16 %v4775_v45 }
 0x6f4   : > { %v2595_v49 = vpack.c.bf16 %v4777_v46, %v4777_v46  ;;  %v2594_v5 = vpack.c.bf16 %v4776_v47, %v4776_v47 }
 0x6f6   : > { %v2824_v57 = vsel %vm1354_vm3, %v2594_v5, 0  ;;  %v2870_v58 = vsel %vm1354_vm3, %v2595_v49, 0 }
 0x7a4   : > { %v2426_v31 = vpop.f32.mrf.mxu0 }
 0x7a5   : > { %v2562_v33 = vpack.c.bf16 %v2426_v31, %v2426_v31 }
 0x7a6   : > { %v4517_v32 = vpop.f32.mrf.mxu0 }
 0x7a7   : > { %4538 = vmatmul.mubr.msk.bf16.vlgmr.msra.gmra.mxu1 %vm1354_vm3, %v2562_v33 }
 0x7a8   : > { %v2429_v37 = vpop.f32.mrf.mxu0  ;;  %4548 = vmatpush3.bf16.xpose.msra.mxu1 %v2732_v34  ;;  %4549 = vmatprep.mubr.msk.bf16.mxu1 %vm4964_vm1, %v4963_v3 }
 0x7a9   : > { %v2563_v35 = vpack.c.bf16 %v2429_v37, %v2429_v37  ;;  %v4778_v38 = vpack.i.bf16 %v2429_v37, %v2426_v31  ;;  %4559 = vmatprep.subr.bf16.mxu1 %v4963_v3 }
 0x7aa   : > { %v4518_v39 = vpop.f32.mrf.mxu0 }
 0x7ab   : > { %4779 = vrot.lane.b32.xlu1 %v4778_v38, %s4965_s2  ;;  %4769 = vrot.lane.b32.xlu0 %v4778_v38, %s4966_s24 }
 0x7ac   : > { %4544 = vmatmul.mubr.msk.bf16.vlgmr.msra.gmra.mxu0 %vm1354_vm3, %v2563_v35  ;;  %v5490_v41 = vpop.f32.mrf.mxu0 }
 0x7ad   : > { %4554 = vmatpush3.bf16.xpose.msra.mxu0 %v2778_v40  ;;  %4555 = vmatprep.mubr.msk.bf16.mxu0 %vm4964_vm1, %v4963_v3  ;;  %v2618_v9 = vpack.c.bf16 %v5490_v41, %v5490_v41 }
 0x7ae   : > { %4565 = vmatprep.subr.bf16.mxu0 %v4963_v3  ;;  %v4533_v42 = vpop.f32.mrf.mxu0 }
 0x7af   : > { %4789 = vrot.lane.b32.xlu1 %v4778_v38, %s4967_s25  ;;  %4784 = vrot.lane.b32.xlu0 %v4763_v22, %s4967_s25  ;;  %v3104_v16 = vsel %vm1822_vm4, %v2618_v9, 0  ;;  %v2334_v22 = vmul.f32 1e+20, %v4214_v20 }
 0x7b0   : > { %v5492_v43 = vpop.f32.mrf.mxu0 }
 0x7b1   : > { %v2619_v10 = vpack.c.bf16 %v5492_v43, %v5492_v43  ;;  %v2342_v24 = vrot.slane %v2334_v22, %v2341_v23 }
 0x7b2   : > { %v4534_v44 = vpop.f32.mrf.mxu0 }
 0x7b3   : > { %v3150_v28 = vsel %vm1822_vm4, %v2619_v10, 0  ;;  %v2350_v17 = vrot.slane %v2342_v24, %v2341_v23  ;;  %v2343_v26 = vcombine.high %v2342_v24, %v2342_v24 }
 0x7b5   : > { %v2629_v27 = vrot.slane %v2350_v17, %v2628_v25  ;;  %v2357_v29 = vrot.slane %v2343_v26, %v2341_v23  ;;  %v5546_v23 = vpack.i.bf16 %v5492_v43, %v5490_v41 }
 0x7b7   : > { %v2633_v32 = vrot.slane %v2357_v29, %v2628_v25 }
 0x81d   : > { %v4770_v48 = vpop.permute.xlu0 %4769  ;;  %v4780_v53 = vpop.permute.xlu1 %4779 }
 0x81e   : > { %v4772_v50 = vunpack.i.h.bf16 %v4770_v48  ;;  %v4771_v51 = vunpack.i.l.bf16 %v4770_v48  ;;  %v4782_v59 = vunpack.i.h.bf16 %v4780_v53  ;;  %v4781_v60 = vunpack.i.l.bf16 %v4780_v53 }
 0x820   : > { %v2565_v52 = vpack.c.bf16 %v4772_v50, %v4772_v50  ;;  %v2564_v6 = vpack.c.bf16 %v4771_v51, %v4771_v51  ;;  %v2567_v63 = vpack.c.bf16 %v4782_v59, %v4782_v59  ;;  %v2566_v0 = vpack.c.bf16 %v4781_v60, %v4781_v60 }
 0x821   : > { %v4785_v54 = vpop.permute.xlu0 %4784  ;;  %v4790_v1 = vpop.permute.xlu1 %4789 }
 0x822   : > { %v4787_v55 = vunpack.i.h.bf16 %v4785_v54  ;;  %v4786_v56 = vunpack.i.l.bf16 %v4785_v54  ;;  %4550 = vmatmul.mubr.msk.bf16.vlgmr.msra.gmra.mxu1 %vm1354_vm3, %v2564_v6  ;;  %4556 = vmatmul.mubr.msk.bf16.vlgmr.msra.gmra.mxu0 %vm1354_vm3, %v2565_v52  ;;  %v4792_v7 = vunpack.i.h.bf16 %v4790_v1  ;;  %v4791_v8 = vunpack.i.l.bf16 %v4790_v1 }
 0x823   : > { %4560 = vmatpush3.bf16.xpose.msra.mxu1 %v2824_v57  ;;  %4566 = vmatpush3.bf16.xpose.msra.mxu0 %v2870_v58 }
 0x824   : > { %4561 = vmatprep.mubr.msk.bf16.mxu1 %vm4964_vm1, %v4963_v3  ;;  %4567 = vmatprep.mubr.msk.bf16.mxu0 %vm4964_vm1, %v4963_v3  ;;  %v2597_v61 = vpack.c.bf16 %v4787_v55, %v4787_v55  ;;  %v2596_v62 = vpack.c.bf16 %v4786_v56, %v4786_v56  ;;  %v2569_v11 = vpack.c.bf16 %v4792_v7, %v4792_v7 }
 0x825   : > { %4571 = vmatprep.subr.bf16.mxu1 %v4963_v3  ;;  %4577 = vmatprep.subr.bf16.mxu0 %v4963_v3  ;;  %v2568_v15 = vpack.c.bf16 %v4791_v8, %v4791_v8 }
 0x826   : > { %v2916_v2 = vsel %vm1354_vm3, %v2596_v62, 0  ;;  %v2962_v4 = vsel %vm1354_vm3, %v2597_v61, 0 }
 0x82a   : > { %4562 = vmatmul.mubr.msk.bf16.vlgmr.msra.gmra.mxu1 %vm1354_vm3, %v2566_v0  ;;  %4568 = vmatmul.mubr.msk.bf16.vlgmr.msra.gmra.mxu0 %vm1354_vm3, %v2567_v63 }
 0x82b   : > { %4572 = vmatpush3.bf16.xpose.msra.mxu1 %v2916_v2  ;;  %4578 = vmatpush3.bf16.xpose.msra.mxu0 %v2962_v4 }
 0x82c   : > { %4573 = vmatprep.mubr.msk.bf16.mxu1 %vm4964_vm1, %v4963_v3  ;;  %4579 = vmatprep.mubr.msk.bf16.mxu0 %vm4964_vm1, %v4963_v3 }
 0x82d   : > { %4583 = vmatprep.subr.bf16.mxu1 %v4963_v3  ;;  %4589 = vmatprep.subr.bf16.mxu0 %v4963_v3 }
 0x832   : > { %4574 = vmatmul.mubr.msk.bf16.vlgmr.msra.gmra.mxu1 %vm1354_vm3, %v2568_v15  ;;  %4580 = vmatmul.mubr.msk.bf16.vlgmr.msra.gmra.mxu0 %vm1354_vm3, %v2569_v11 }
 0x833   : > { %4584 = vmatpush3.bf16.msra.mxu1 %v3104_v16  ;;  %4590 = vmatpush3.bf16.msra.mxu0 %v3150_v28 }
 0x834   : > { %4591 = vmatprep.mubr.msk.bf16.mxu0 %vm4964_vm1, %v4963_v3  ;;  %4601 = vmatprep.subr.bf16.mxu0 %v4963_v3 }
 0x835   : > { %4585 = vmatprep.mubr.msk.bf16.mxu1 %vm4964_vm1, %v4963_v3  ;;  %4595 = vmatprep.subr.bf16.mxu1 %v4963_v3 }
 0x867   : > { %v2676_v31 = vpop.f32.mrf.mxu1 }
 0x868   : > { %v5533_v33 = vadd.f32 %v2676_v31, %v2629_v27 }
 0x869   : > { %v4539_v34 = vpop.f32.mrf.mxu1 }
 0x86a   : > { %v3004_v36 = vsel %vm1354_vm3, %v5533_v33, -inf }
 0x86b   : > { %v2679_v37 = vpop.f32.mrf.mxu1  ;;  %3005 = vmax.xlane.f32.xlu0 %v3004_v36 }
 0x86c   : > { %v2722_v35 = vpop.f32.mrf.mxu0 }
 0x86d   : > { %v2723_v38 = vadd.f32 %v2722_v35, %v2633_v32  ;;  %v4540_v39 = vpop.f32.mrf.mxu1 }
 0x86e   : > { %v4545_v40 = vpop.f32.mrf.mxu0 }
 0x86f   : > { %v3007_v42 = vsel %vm1354_vm3, %v2723_v38, -inf }
 0x870   : > { %3008 = vmax.xlane.f32.xlu1 %v3007_v42  ;;  %v2725_v12 = vpop.f32.mrf.mxu0 }
 0x872   : > { %v4546_v44 = vpop.f32.mrf.mxu0 }
 0x8e2   : > { %v2768_v45 = vpop.f32.mrf.mxu1  ;;  %v2814_v46 = vpop.f32.mrf.mxu0 }
 0x8e3   : > { %v2769_v47 = vadd.f32 %v2768_v45, %v2629_v27  ;;  %v2815_v5 = vadd.f32 %v2814_v46, %v2633_v32 }
 0x8e4   : > { %v4551_v48 = vpop.f32.mrf.mxu1  ;;  %v4557_v49 = vpop.f32.mrf.mxu0 }
 0x8e5   : > { %v3010_v50 = vsel %vm1354_vm3, %v2769_v47, -inf  ;;  %v3013_v54 = vsel %vm1354_vm3, %v2815_v5, -inf }
 0x8e6   : > { %3011 = vmax.xlane.f32.xlu0 %v3010_v50  ;;  %v2771_v51 = vpop.f32.mrf.mxu1  ;;  %v2817_v52 = vpop.f32.mrf.mxu0 }
 0x8e8   : > { %v4552_v6 = vpop.f32.mrf.mxu1  ;;  %v4558_v53 = vpop.f32.mrf.mxu0 }
 0x8ea   : > { %v2860_v55 = vpop.f32.mrf.mxu1  ;;  %3014 = vmax.xlane.f32.xlu0 %v3013_v54  ;;  %v2906_v56 = vpop.f32.mrf.mxu0 }
 0x8eb   : > { %v2861_v57 = vadd.f32 %v2860_v55, %v2629_v27  ;;  %v2907_v58 = vadd.f32 %v2906_v56, %v2633_v32 }
 0x8ec   : > { %v4563_v59 = vpop.f32.mrf.mxu1  ;;  %v4569_v60 = vpop.f32.mrf.mxu0 }
 0x8ed   : > { %v3016_v61 = vsel %vm1354_vm3, %v2861_v57, -inf  ;;  %v3019_v62 = vsel %vm1354_vm3, %v2907_v58, -inf }
 0x8ee   : > { %v2863_v63 = vpop.f32.mrf.mxu1  ;;  %3017 = vmax.xlane.f32.xlu1 %v3016_v61  ;;  %3020 = vmax.xlane.f32.xlu0 %v3019_v62  ;;  %v2909_v0 = vpop.f32.mrf.mxu0 }
 0x8f0   : > { %v4564_v1 = vpop.f32.mrf.mxu1  ;;  %v4570_v2 = vpop.f32.mrf.mxu0 }
 0x8f2   : > { %v2952_v4 = vpop.f32.mrf.mxu1  ;;  %v2998_v7 = vpop.f32.mrf.mxu0 }
 0x8f3   : > { %v2953_v8 = vadd.f32 %v2952_v4, %v2629_v27  ;;  %v2999_v9 = vadd.f32 %v2998_v7, %v2633_v32 }
 0x8f4   : > { %v4575_v10 = vpop.f32.mrf.mxu1  ;;  %v4581_v11 = vpop.f32.mrf.mxu0 }
 0x8f5   : > { %v3022_v15 = vsel %vm1354_vm3, %v2953_v8, -inf  ;;  %v3025_v16 = vsel %vm1354_vm3, %v2999_v9, -inf  ;;  %v3006_v25 = vpop.xlane.xlu0 %3005 }
 0x8f6   : > { %v2955_v28 = vpop.f32.mrf.mxu1  ;;  %3023 = vmax.xlane.f32.xlu1 %v3022_v15  ;;  %3026 = vmax.xlane.f32.xlu0 %v3025_v16  ;;  %v3001_v30 = vpop.f32.mrf.mxu0  ;;  %v3028_v26 = vsub.f32 %v5533_v33, %v3006_v25 }
 0x8f8   : > { %v4576_v18 = vpop.f32.mrf.mxu1  ;;  %v4582_v20 = vpop.f32.mrf.mxu0  ;;  %v3036_v27 = vmul.f32 1.442695, %v3028_v26 }
 0x8f9   : > { %v3009_v19 = vpop.xlane.xlu1 %3008 }
 0x8fa   : > { %v3029_v21 = vsub.f32 %v2723_v38, %v3009_v19 }
 0x8fc   : > { %v3038_v22 = vmul.f32 1.442695, %v3029_v21 }
 0x8fe   : > { %4885 = vpow2.f32 %v3038_v22 }
 0x8ff   : > { %4887 = vpow2.f32 %v3036_v27 }
 0x907   : > { %4794 = vrot.lane.b32.xlu1 %v5546_v23, %s4966_s24  ;;  %s5813_s24 = scalar_lea.vmem %s5742_s14, %s5119_s6 }
 0x90b   : > { %v4886_v24 = vpop.eup %4885 }
 0x90c   : > { %v3055_v17 = vsel %vm1354_vm3, %v4886_v24, 0.0  ;;  %v5552_v29 = vpop.eup %4887 }
 0x90d   : > { %3056 = vadd.xlane.f32.xlu0 %v3055_v17  ;;  %v3052_v31 = vsel %vm1354_vm3, %v5552_v29, 0.0 }
 0x92b   : > { %3053 = vadd.xlane.f32.xlu1 %v3052_v31 }
 0x96f   : > { %v3012_v41 = vpop.xlane.xlu0 %3011 }
 0x970   : > { %v3030_v43 = vsub.f32 %v2769_v47, %v3012_v41 }
 0x972   : > { %v3040_v34 = vmul.f32 1.442695, %v3030_v43 }
 0x973   : > { %v3015_v32 = vpop.xlane.xlu0 %3014 }
 0x974   : > { %4889 = vpow2.f32 %v3040_v34  ;;  %v3031_v36 = vsub.f32 %v2815_v5, %v3015_v32 }
 0x976   : > { %v3042_v37 = vmul.f32 1.442695, %v3031_v36 }
 0x977   : > { %v3018_v35 = vpop.xlane.xlu1 %3017  ;;  %v3021_v38 = vpop.xlane.xlu0 %3020 }
 0x978   : > { %4891 = vpow2.f32 %v3042_v37  ;;  %v3032_v39 = vsub.f32 %v2861_v57, %v3018_v35  ;;  %v3033_v33 = vsub.f32 %v2907_v58, %v3021_v38 }
 0x97a   : > { %v3044_v40 = vmul.f32 1.442695, %v3032_v39  ;;  %v3046_v42 = vmul.f32 1.442695, %v3033_v33 }
 0x97c   : > { %4893 = vpow2.f32 %v3044_v40 }
 0x97d   : > { %4895 = vpow2.f32 %v3046_v42 }
 0x97f   : > { %v3024_v12 = vpop.xlane.xlu1 %3023  ;;  %v3027_v44 = vpop.xlane.xlu0 %3026 }
 0x980   : > { %v3034_v45 = vsub.f32 %v2953_v8, %v3024_v12  ;;  %v3035_v46 = vsub.f32 %v2999_v9, %v3027_v44 }
 0x981   : > { %v4890_v48 = vpop.eup %4889 }
 0x982   : > { %v3048_v47 = vmul.f32 1.442695, %v3034_v45  ;;  %v3050_v49 = vmul.f32 1.442695, %v3035_v46  ;;  %v3058_v50 = vsel %vm1354_vm3, %v4890_v48, 0.0 }
 0x983   : > { %3059 = vadd.xlane.f32.xlu1 %v3058_v50  ;;  %v4795_v60 = vpop.permute.xlu1 %4794 }
 0x984   : > { %4897 = vpow2.f32 %v3048_v47  ;;  %v4797_v61 = vunpack.i.h.bf16 %v4795_v60  ;;  %v4796_v7 = vunpack.i.l.bf16 %v4795_v60 }
 0x985   : > { %v4892_v5 = vpop.eup %4891  ;;  %4899 = vpow2.f32 %v3050_v49 }
 0x986   : > { %v3061_v51 = vsel %vm1354_vm3, %v4892_v5, 0.0  ;;  %v2621_v63 = vpack.c.bf16 %v4797_v61, %v4797_v61  ;;  %v2620_v9 = vpack.c.bf16 %v4796_v7, %v4796_v7 }
 0x987   : > { %3062 = vadd.xlane.f32.xlu0 %v3061_v51 }
 0x988   : > { %v3242_v2 = vsel %vm1822_vm4, %v2621_v63, 0  ;;  %v3196_v15 = vsel %vm1822_vm4, %v2620_v9, 0  ;;  %v4837_v63 = vld [vmem:[%s5172_s9 + $0x8] sm:$0xff]  }
 0x989   : > { %v5558_v52 = vpop.eup %4893 }
 0x98a   : > { %v5560_v6 = vpop.eup %4895  ;;  %v3064_v53 = vsel %vm1354_vm3, %v5558_v52, 0.0 }
 0x98b   : > { %3065 = vadd.xlane.f32.xlu1 %v3064_v53  ;;  %v3067_v54 = vsel %vm1354_vm3, %v5560_v6, 0.0 }
 0x98c   : > { %3068 = vadd.xlane.f32.xlu0 %v3067_v54 }
 0x991   : > { %v5566_v55 = vpop.eup %4897 }
 0x992   : > { %v5568_v56 = vpop.eup %4899  ;;  %v3070_v57 = vsel %vm1354_vm3, %v5566_v55, 0.0 }
 0x993   : > { %3071 = vadd.xlane.f32.xlu1 %v3070_v57  ;;  %v3073_v58 = vsel %vm1354_vm3, %v5568_v56, 0.0 }
 0x994   : > { %3074 = vadd.xlane.f32.xlu0 %v3073_v58 }
 0x996   : > { %v3057_v59 = vpop.xlane.xlu0 %3056 }
 0x997   : > { %4901 = vrcp.f32 %v3057_v59 }
 0x9a4   : > { %v4902_v62 = vpop.eup %4901  ;;  %4804 = vrot.lane.b32.xlu1 %v5546_v23, %s4967_s25 }
 0x9a5   : > { %v3085_v0 = vmul.f32 %v4902_v62, %v4886_v24 }
 0x9a7   : > { %v3093_v1 = vpack.c.bf16 %v3085_v0, %v3085_v0 }
 0x9a9   : > { %4592 = vmatmul.mubr.msk.bf16.vlgmr.msra.gmra.mxu0 %vm1354_vm3, %v3093_v1 }
 0x9aa   : > { %4602 = vmatpush3.bf16.msra.mxu0 %v3242_v2  ;;  %4799 = vrot.lane.b32.xlu0 %v5546_v23, %s4965_s2  ;;  %s5818_s2 = sld [smem:[#allocation7_spill]] }
 0x9ab   : > { %4603 = vmatprep.mubr.msk.bf16.mxu0 %vm4964_vm1, %v4963_v3  ;;  %4613 = vmatprep.subr.bf16.mxu0 %v4963_v3 }
 0x9b0   : > { %p4261_p5 = scmp.ne.s32.totalorder %s5818_s2, 1 }
 0x9b4   : > { %v3054_v4 = vpop.xlane.xlu1 %3053 }
 0x9b5   : > { %4903 = vrcp.f32 %v3054_v4 }
 0x9c2   : > { %v4904_v8 = vpop.eup %4903 }
 0x9c3   : > { %v3084_v10 = vmul.f32 %v4904_v8, %v5552_v29 }
 0x9c5   : > { %v3092_v11 = vpack.c.bf16 %v3084_v10, %v3084_v10  ;;  %v4838_v10 = vld [vmem:[%s5172_s9] sm:$0xff]  }
 0x9c7   : > { %4586 = vmatmul.mubr.msk.bf16.vlgmr.msra.gmra.mxu1 %vm1354_vm3, %v3092_v11 }
 0x9c8   : > { %4596 = vmatpush3.bf16.msra.mxu1 %v3196_v15  ;;  %4597 = vmatprep.mubr.msk.bf16.mxu1 %vm4964_vm1, %v4963_v3 }
 0x9c9   : > { %4607 = vmatprep.subr.bf16.mxu1 %v4963_v3 }
 0xa0c   : > { %v3060_v16 = vpop.xlane.xlu1 %3059 }
 0xa0d   : > { %4905 = vrcp.f32 %v3060_v16 }
 0xa10   : > { %v3063_v28 = vpop.xlane.xlu0 %3062 }
 0xa11   : > { %4907 = vrcp.f32 %v3063_v28 }
 0xa14   : > { %v3066_v30 = vpop.xlane.xlu1 %3065 }
 0xa15   : > { %4909 = vrcp.f32 %v3066_v30  ;;  %v3069_v18 = vpop.xlane.xlu0 %3068 }
 0xa16   : > { %4911 = vrcp.f32 %v3069_v18 }
 0xa1a   : > { %v4906_v19 = vpop.eup %4905 }
 0xa1b   : > { %v3086_v20 = vmul.f32 %v4906_v19, %v4890_v48 }
 0xa1c   : > { %v3072_v21 = vpop.xlane.xlu1 %3071 }
 0xa1d   : > { %4913 = vrcp.f32 %v3072_v21  ;;  %v3075_v22 = vpop.xlane.xlu0 %3074  ;;  %v3094_v23 = vpack.c.bf16 %v3086_v20, %v3086_v20 }
 0xa1e   : > { %v4908_v24 = vpop.eup %4907  ;;  %4915 = vrcp.f32 %v3075_v22 }
 0xa1f   : > { %4598 = vmatmul.mubr.msk.bf16.vlgmr.msra.gmra.mxu1 %vm1354_vm3, %v3094_v23  ;;  %v3087_v17 = vmul.f32 %v4908_v24, %v4892_v5 }
 0xa20   : > { %v4805_v25 = vpop.permute.xlu1 %4804  ;;  %4609 = vmatprep.mubr.msk.bf16.mxu1 %vm4964_vm1, %v4963_v3 }
 0xa21   : > { %v4800_v26 = vpop.permute.xlu0 %4799  ;;  %v3095_v27 = vpack.c.bf16 %v3087_v17, %v3087_v17  ;;  %v4806_v31 = vunpack.i.l.bf16 %v4805_v25  ;;  %v4807_v32 = vunpack.i.h.bf16 %v4805_v25 }
 0xa22   : > { %v4910_v29 = vpop.eup %4909  ;;  %v4802_v41 = vunpack.i.h.bf16 %v4800_v26  ;;  %v4801_v43 = vunpack.i.l.bf16 %v4800_v26 }
 0xa23   : > { %v4912_v34 = vpop.eup %4911  ;;  %4604 = vmatmul.mubr.msk.bf16.vlgmr.msra.gmra.mxu0 %vm1354_vm3, %v3095_v27  ;;  %v3088_v35 = vmul.f32 %v4910_v29, %v5558_v52  ;;  %v2624_v39 = vpack.c.bf16 %v4806_v31, %v4806_v31  ;;  %v2625_v42 = vpack.c.bf16 %v4807_v32, %v4807_v32 }
 0xa24   : > { %v2623_v36 = vpack.c.bf16 %v4802_v41, %v4802_v41  ;;  %v2622_v37 = vpack.c.bf16 %v4801_v43, %v4801_v43  ;;  %4615 = vmatprep.mubr.msk.bf16.mxu0 %vm4964_vm1, %v4963_v3  ;;  %v3089_v38 = vmul.f32 %v4912_v34, %v5560_v6 }
 0xa25   : > { %v3096_v12 = vpack.c.bf16 %v3088_v35, %v3088_v35  ;;  %v3380_v46 = vsel %vm1822_vm4, %v2624_v39, 0  ;;  %v3426_v47 = vsel %vm1822_vm4, %v2625_v42, 0 }
 0xa26   : > { %v3288_v33 = vsel %vm1822_vm4, %v2622_v37, 0  ;;  %v3334_v40 = vsel %vm1822_vm4, %v2623_v36, 0  ;;  %v3097_v44 = vpack.c.bf16 %v3089_v38, %v3089_v38 }
 0xa27   : > { %4608 = vmatpush3.bf16.msra.mxu1 %v3288_v33  ;;  %4614 = vmatpush3.bf16.msra.mxu0 %v3334_v40 }
 0xa28   : > { %4619 = vmatprep.subr.bf16.mxu1 %v4963_v3  ;;  %4625 = vmatprep.subr.bf16.mxu0 %v4963_v3 }
 0xa2a   : > { %v4914_v45 = vpop.eup %4913  ;;  %4610 = vmatmul.mubr.msk.bf16.vlgmr.msra.gmra.mxu1 %vm1354_vm3, %v3096_v12 }
 0xa2b   : > { %v4916_v48 = vpop.eup %4915  ;;  %4620 = vmatpush3.bf16.msra.mxu1 %v3380_v46  ;;  %4616 = vmatmul.mubr.msk.bf16.vlgmr.msra.gmra.mxu0 %vm1354_vm3, %v3097_v44  ;;  %v3090_v49 = vmul.f32 %v4914_v45, %v5566_v55  ;;  %v4240_v45 = vld [vmem:[%s5813_s24] ss:$0 sm:$0xff] }
 0xa2c   : > { %4626 = vmatpush3.bf16.msra.mxu0 %v3426_v47  ;;  %4621 = vmatprep.mubr.msk.bf16.mxu1 %vm4964_vm1, %v4963_v3  ;;  %v3091_v50 = vmul.f32 %v4916_v48, %v5568_v56 }
 0xa2d   : > { %4627 = vmatprep.mubr.msk.bf16.mxu0 %vm4964_vm1, %v4963_v3  ;;  %4631 = vmatprep.subr.bf16.mxu1 %v4963_v3  ;;  %v3098_v5 = vpack.c.bf16 %v3090_v49, %v3090_v49 }
 0xa2e   : > { %4639 = vmatprep.subr.bf16.mxu0 %v4963_v3  ;;  %v3099_v51 = vpack.c.bf16 %v3091_v50, %v3091_v50 }
 0xa32   : > { %4622 = vmatmul.mubr.msk.bf16.vlgmr.msra.gmra.mxu1 %vm1354_vm3, %v3098_v5 }
 0xa33   : > { %4628 = vmatmul.mubr.msk.bf16.vlgmr.msra.gmra.mxu0 %vm1354_vm3, %v3099_v51  ;;  %4635 = vmatprep.mubr.msk.bf16.mxu1 %vm4964_vm1, %v4963_v3 }
 0xa34   : > { %4643 = vmatprep.mubr.msk.bf16.mxu0 %vm4964_vm1, %v4963_v3  ;;  %4632 = vmatpush3.bf16.msra.mxu1 %v4837_v63  ;;  %v4840_v63 = vld [vmem:[%s5189_s11] sm:$0xff]  }
 0xa35   : > { %4633 = vmatprep.subr.bf16.mxu1 %v4963_v3 }
 0xa38   : > { %4634 = vmatpush3.bf16.msra.mxu1 %v4838_v10 }
 0xa39   : > { %4647 = vmatprep.subr.bf16.mxu1 %v4963_v3 }
 0xa69   : > { %v3186_v52 = vpop.f32.mrf.mxu0 }
 0xa6b   : > { %v4593_v6 = vpop.f32.mrf.mxu0 }
 0xa6d   : > { %v3189_v53 = vpop.f32.mrf.mxu0 }
 0xa6f   : > { %v4594_v54 = vpop.f32.mrf.mxu0 }
 0xa87   : > { %v3140_v55 = vpop.f32.mrf.mxu1 }
 0xa89   : > { %v4587_v56 = vpop.f32.mrf.mxu1 }
 0xa8b   : > { %v3143_v57 = vpop.f32.mrf.mxu1 }
 0xa8d   : > { %v4588_v58 = vpop.f32.mrf.mxu1 }
 0xadf   : > { %v3232_v59 = vpop.f32.mrf.mxu1 }
 0xae1   : > { %v4599_v60 = vpop.f32.mrf.mxu1 }
 0xae3   : > { %v3235_v61 = vpop.f32.mrf.mxu1  ;;  %v3278_v62 = vpop.f32.mrf.mxu0 }
 0xae4   : > { %v4808_v0 = vpack.i.bf16 %v3278_v62, %v3232_v59  ;;  %v4839_v62 = vld [vmem:[%s5189_s11 + $0x8] sm:$0xff]   ;;  %s5819_s11 = sld [smem:[#allocation27_spill]] (!%p4261_p5) }
 0xae5   : > { %v4600_v1 = vpop.f32.mrf.mxu1  ;;  %v4605_v2 = vpop.f32.mrf.mxu0  ;;  %4640 = vmatpush3.bf16.msra.mxu0 %v4839_v62 }
 0xae6   : > { %4809 = vrot.lane.b32.xlu1 %v4808_v0, %s4969_s30  ;;  %4641 = vmatprep.subr.bf16.mxu0 %v4963_v3  ;;  %v4841_v0 = vld [vmem:[%s5199_s22 + $0x38] sm:$0xff]   ;;  %v4842_v1 = vld [vmem:[%s5199_s22 + $0x30] sm:$0xff]   ;;  %v4843_v2 = vld [vmem:[%s5199_s22 + $0x28] sm:$0xff]  }
 0xae7   : > { %v3281_v4 = vpop.f32.mrf.mxu0 }
 0xae8   : > { %v4844_v4 = vld [vmem:[%s5199_s22 + $0x20] sm:$0xff]  }
 0xae9   : > { %v4606_v7 = vpop.f32.mrf.mxu0  ;;  %4642 = vmatpush3.bf16.msra.mxu0 %v4840_v63  ;;  %v4259_v63 = vld [vmem:[%s1067_s3] ss:$0 sm:$0xff] }
 0xaea   : > { %v3324_v8 = vpop.f32.mrf.mxu1  ;;  %v4845_v7 = vld [vmem:[%s5199_s22 + $0x18] sm:$0xff]  }
 0xaeb   : > { %v3370_v9 = vpop.f32.mrf.mxu0 }
 0xaec   : > { %v4611_v11 = vpop.f32.mrf.mxu1  ;;  %v4813_v15 = vpack.i.bf16 %v3370_v9, %v3324_v8 }
 0xaed   : > { %v4617_v16 = vpop.f32.mrf.mxu0 }
 0xaee   : > { %v3327_v28 = vpop.f32.mrf.mxu1  ;;  %4814 = vrot.lane.b32.xlu0 %v4813_v15, %s4970_s26  ;;  %s5814_s26 = scalar_lea.vmem %s5743_s15, %s5119_s6 }
 0xaef   : > { %v3373_v30 = vpop.f32.mrf.mxu0 }
 0xaf0   : > { %v4612_v18 = vpop.f32.mrf.mxu1 }
 0xaf1   : > { %v4618_v19 = vpop.f32.mrf.mxu0  ;;  %v4244_v18 = vld [vmem:[%s5814_s26] ss:$0 sm:$0xff] }
 0xaf2   : > { %v3416_v20 = vpop.f32.mrf.mxu1 }
 0xaf3   : > { %v3462_v21 = vpop.f32.mrf.mxu0 }
 0xaf4   : > { %v4623_v22 = vpop.f32.mrf.mxu1  ;;  %v4818_v23 = vpack.i.bf16 %v3462_v21, %v3416_v20 }
 0xaf5   : > { %v4629_v24 = vpop.f32.mrf.mxu0  ;;  %v4245_v22 = vld [vmem:[%s5815_s0] ss:$0 sm:$0xff] }
 0xaf6   : > { %v3419_v17 = vpop.f32.mrf.mxu1  ;;  %4819 = vrot.lane.b32.xlu1 %v4818_v23, %s4971_s1  ;;  %s5820_s1 = sld [smem:[#allocation28_spill]] (!%p4261_p5) }
 0xaf7   : > { %v3465_v25 = vpop.f32.mrf.mxu0 }
 0xaf8   : > { %v4624_v26 = vpop.f32.mrf.mxu1 }
 0xaf9   : > { %v4630_v27 = vpop.f32.mrf.mxu0  ;;  %v4846_v26 = vld [vmem:[%s5199_s22 + $0x10] sm:$0xff]  }
 0xafa   : > { %v4847_v27 = vld [vmem:[%s5199_s22 + $0x8] sm:$0xff]  }
 0xb58   : > { %v4810_v29 = vpop.permute.xlu1 %4809 }
 0xb59   : > { %v4812_v41 = vunpack.i.h.bf16 %v4810_v29  ;;  %v4811_v43 = vunpack.i.l.bf16 %v4810_v29  ;;  %v4848_v29 = vld [vmem:[%s5199_s22] sm:$0xff]  }
 0xb5b   : > { %v3493_v37 = vsel %vm1354_vm3, %v3186_v52, %v4812_v41  ;;  %v3492_v35 = vsel %vm1354_vm3, %v3140_v55, %v4811_v43 }
 0xb60   : > { %v4815_v31 = vpop.permute.xlu0 %4814 }
 0xb61   : > { %v4817_v34 = vunpack.i.h.bf16 %v4815_v31  ;;  %v4816_v32 = vunpack.i.l.bf16 %v4815_v31  ;;  %v4246_v31 = vld [vmem:[%s5816_s27] ss:$0 sm:$0xff] }
 0xb63   : > { %v3495_v33 = vsel %vm2214_vm6, %v3493_v37, %v4817_v34  ;;  %v3494_v40 = vsel %vm2214_vm6, %v3492_v35, %v4816_v32 }
 0xb68   : > { %v4820_v36 = vpop.permute.xlu1 %4819 }
 0xb69   : > { %v4822_v38 = vunpack.i.h.bf16 %v4820_v36  ;;  %v4821_v39 = vunpack.i.l.bf16 %v4820_v36 }
 0xb6b   : > { %v3497_v42 = vsel %vm2217_vm7, %v3495_v33, %v4822_v38  ;;  %v3496_v12 = vsel %vm2217_vm7, %v3494_v40, %v4821_v39 }
 0xb6c   : > { %v3498_v44 = vpack.c.bf16 %v3497_v42, %v3496_v12 }
 0xb6e   : > { %4636 = vmatmul.mubr.msk.bf16.vlgmr.msra.gmra.mxu1 %vm1119_vm2, %v3498_v44 }
 0xb6f   : > { %4663 = vmatprep.mubr.msk.bf16.mxu1 %vm4964_vm1, %v4963_v3  ;;  %4648 = vmatpush3.bf16.msra.mxu1 %v4841_v0 }
 0xb70   : > { %4649 = vmatprep.subr.bf16.mxu1 %v4963_v3 }
 0xb73   : > { %4650 = vmatpush3.bf16.msra.mxu1 %v4842_v1  ;;  %v4260_v1 = vld [vmem:[%s1070_s17] ss:$0 sm:$0xff] }
 0xb74   : > { %4651 = vmatprep.subr.bf16.mxu1 %v4963_v3 }
 0xb77   : > { %4652 = vmatpush3.bf16.msra.mxu1 %v4843_v2 }
 0xb78   : > { %4653 = vmatprep.subr.bf16.mxu1 %v4963_v3 }
 0xb7b   : > { %4654 = vmatpush3.bf16.msra.mxu1 %v4844_v4 }
 0xb7c   : > { %4655 = vmatprep.subr.bf16.mxu1 %v4963_v3 }
 0xb7f   : > { %4656 = vmatpush3.bf16.msra.mxu1 %v4845_v7 }
 0xb80   : > { %4657 = vmatprep.subr.bf16.mxu1 %v4963_v3 }
 0xb83   : > { %4658 = vmatpush3.bf16.msra.mxu1 %v4846_v26 }
 0xb84   : > { %4659 = vmatprep.subr.bf16.mxu1 %v4963_v3 }
 0xb87   : > { %4660 = vmatpush3.bf16.msra.mxu1 %v4847_v27 }
 0xb88   : > { %4661 = vmatprep.subr.bf16.mxu1 %v4963_v3  ;;  %v4250_v3 = vld [vmem:[%s1064_s28] ss:$0 sm:$0xff] }
 0xb8b   : > { %4662 = vmatpush3.bf16.msra.mxu1 %v4848_v29 }
 0xc2e   : > { %v3554_v46 = vpop.f32.mrf.mxu1 }
 0xc2f   : > { %v3555_v48 = vadd.f32 %v4240_v45, %v3554_v46 }
 0xc30   : > { %v4637_v47 = vpop.f32.mrf.mxu1 }
 0xc31   : > { %v3561_v49 = vadd.f32 %v3555_v48, %v5454_v13 }
 0xc32   : > { %v3557_v50 = vpop.f32.mrf.mxu1 }
 0xc33   : > { %v3558_v5 = vadd.f32 %v4240_v45, %v3557_v50  ;;  %v3565_v51 = vsel %vm1119_vm2, %v3561_v49, 0.0 }
 0xc34   : > { %3566 = vadd.xlane.f32.xlu0 %v3565_v51  ;;  %v4638_v52 = vpop.f32.mrf.mxu1 }
 0xc35   : > { %v3562_v6 = vadd.f32 %v3558_v5, %v5456_v14 }
 0xc37   : > { %v3568_v53 = vsel %vm1119_vm2, %v3562_v6, 0.0 }
 0xc38   : > { %3569 = vadd.xlane.f32.xlu1 %v3568_v53 }
 0xcbd   : > { %v3567_v54 = vpop.xlane.xlu0 %3566 }
 0xcbe   : > { %v3571_v55 = vmul.f32 0.03125, %v3567_v54 }
 0xcc0   : > { %v3573_v56 = vsub.f32 %v3561_v49, %v3571_v55 }
 0xcc1   : > { %v3570_v57 = vpop.xlane.xlu1 %3569 }
 0xcc2   : > { %v3572_v13 = vmul.f32 0.03125, %v3570_v57  ;;  %v3575_v58 = vmul.f32 %v3573_v56, %v3573_v56 }
 0xcc4   : > { %v3574_v59 = vsub.f32 %v3562_v6, %v3572_v13  ;;  %v3577_v60 = vsel %vm1119_vm2, %v3575_v58, 0.0 }
 0xcc5   : > { %3578 = vadd.xlane.f32.xlu0 %v3577_v60 }
 0xcc6   : > { %v3576_v61 = vmul.f32 %v3574_v59, %v3574_v59 }
 0xcc8   : > { %v3580_v14 = vsel %vm1119_vm2, %v3576_v61, 0.0 }
 0xcc9   : > { %3581 = vadd.xlane.f32.xlu0 %v3580_v14 }
 0xd4e   : > { %v3579_v8 = vpop.xlane.xlu0 %3578 }
 0xd4f   : > { %v3583_v9 = vmul.f32 0.03125, %v3579_v8 }
 0xd51   : > { %v3585_v10 = vadd.f32 1e-05, %v3583_v9 }
 0xd52   : > { %v3582_v11 = vpop.xlane.xlu0 %3581 }
 0xd53   : > { %4917 = vrsqrt.f32 %v3585_v10  ;;  %v3584_v15 = vmul.f32 0.03125, %v3582_v11 }
 0xd55   : > { %v3586_v16 = vadd.f32 1e-05, %v3584_v15 }
 0xd57   : > { %4919 = vrsqrt.f32 %v3586_v16 }
 0xd60   : > { %v4918_v28 = vpop.eup %4917 }
 0xd61   : > { %v3589_v30 = vmul.f32 %v4918_v28, %v3573_v56 }
 0xd63   : > { %v3597_v21 = vmul.f32 %v4244_v18, %v3589_v30 }
 0xd64   : > { %v4920_v19 = vpop.eup %4919 }
 0xd65   : > { %v3590_v20 = vmul.f32 %v4920_v19, %v3574_v59  ;;  %v3605_v24 = vadd.f32 %v4245_v22, %v3597_v21 }
 0xd67   : > { %v3598_v23 = vmul.f32 %v4244_v18, %v3590_v20 }
 0xd69   : > { %v3606_v17 = vadd.f32 %v4245_v22, %v3598_v23 }
 0xd6b   : > { %v3629_v25 = vpack.c.bf16 %v3606_v17, %v3605_v24 }
 0xd6d   : > { %4644 = vmatmul.mubr.msk.bf16.vlgmr.msra.gmra.mxu0 %vm1119_vm2, %v3629_v25 }
 0xe2d   : > { %v3685_v41 = vpop.f32.mrf.mxu0 }
 0xe2e   : > { %v3686_v34 = vadd.f32 %v4246_v31, %v3685_v41 }
 0xe2f   : > { %v4645_v43 = vpop.f32.mrf.mxu0 }
 0xe30   : > { %v3692_v35 = vmax.f32 %v3686_v34, 0.0 }
 0xe31   : > { %v3688_v32 = vpop.f32.mrf.mxu0 }
 0xe32   : > { %v3689_v36 = vadd.f32 %v4246_v31, %v3688_v32 }
 0xe33   : > { %v4646_v37 = vpop.f32.mrf.mxu0 }
 0xe34   : > { %v3693_v38 = vmax.f32 %v3689_v36, 0.0 }
 0xe36   : > { %v3694_v39 = vpack.c.bf16 %v3693_v38, %v3692_v35 }
 0xe38   : > { %4664 = vmatmul.mubr.bf16.vlgmr.msra.gmra.mxu1 %v3694_v39 }
 0xef8   : > { %v3783_v33 = vpop.f32.mrf.mxu1 }
 0xef9   : > { %v3784_v40 = vadd.f32 %v4250_v3, %v3783_v33 }
 0xefa   : > { %v4665_v42 = vpop.f32.mrf.mxu1 }
 0xefb   : > { %v3790_v12 = vadd.f32 %v3784_v40, %v3605_v24 }
 0xefc   : > { %v3786_v44 = vpop.f32.mrf.mxu1 }
 0xefd   : > { %v3787_v45 = vadd.f32 %v4250_v3, %v3786_v44  ;;  %v3794_v46 = vsel %vm1119_vm2, %v3790_v12, 0.0 }
 0xefe   : > { %3795 = vadd.xlane.f32.xlu1 %v3794_v46  ;;  %v4666_v48 = vpop.f32.mrf.mxu1 }
 0xeff   : > { %v3791_v47 = vadd.f32 %v3787_v45, %v3606_v17 }
 0xf01   : > { %v3797_v49 = vsel %vm1119_vm2, %v3791_v47, 0.0 }
 0xf02   : > { %3798 = vadd.xlane.f32.xlu0 %v3797_v49 }
 0xf87   : > { %v3796_v50 = vpop.xlane.xlu1 %3795 }
 0xf88   : > { %v3800_v5 = vmul.f32 0.03125, %v3796_v50 }
 0xf8a   : > { %v3802_v51 = vsub.f32 %v3790_v12, %v3800_v5 }
 0xf8b   : > { %v3799_v52 = vpop.xlane.xlu0 %3798 }
 0xf8c   : > { %v3801_v6 = vmul.f32 0.03125, %v3799_v52  ;;  %v3804_v53 = vmul.f32 %v3802_v51, %v3802_v51 }
 0xf8e   : > { %v3803_v54 = vsub.f32 %v3791_v47, %v3801_v6  ;;  %v3806_v55 = vsel %vm1119_vm2, %v3804_v53, 0.0 }
 0xf8f   : > { %3807 = vadd.xlane.f32.xlu1 %v3806_v55 }
 0xf90   : > { %v3805_v56 = vmul.f32 %v3803_v54, %v3803_v54 }
 0xf92   : > { %v3809_v57 = vsel %vm1119_vm2, %v3805_v56, 0.0 }
 0xf93   : > { %3810 = vadd.xlane.f32.xlu0 %v3809_v57 }
0x1018   : > { %v3808_v13 = vpop.xlane.xlu1 %3807 }
0x1019   : > { %v3812_v58 = vmul.f32 0.03125, %v3808_v13 }
0x101b   : > { %v3814_v59 = vadd.f32 1e-05, %v3812_v58 }
0x101c   : > { %v3811_v60 = vpop.xlane.xlu0 %3810 }
0x101d   : > { %4921 = vrsqrt.f32 %v3814_v59  ;;  %v3813_v61 = vmul.f32 0.03125, %v3811_v60 }
0x101f   : > { %v3815_v14 = vadd.f32 1e-05, %v3813_v61 }
0x1021   : > { %4923 = vrsqrt.f32 %v3815_v14 }
0x102a   : > { %v4922_v62 = vpop.eup %4921 }
0x102b   : > { %v3818_v0 = vmul.f32 %v4922_v62, %v3802_v51 }
0x102d   : > { %v3826_v2 = vmul.f32 %v4259_v63, %v3818_v0 }
0x102e   : > { %v4924_v4 = vpop.eup %4923 }
0x102f   : > { %v3834_v7 = vadd.f32 %v4260_v1, %v3826_v2  ;;  %v3819_v8 = vmul.f32 %v4924_v4, %v3803_v54 }
0x1031   : > { %3836 = vst.msk [vmem:[#allocation2] sm:$0xff] %vm1119_vm2, %v3834_v7  ;;  %v3827_v9 = vmul.f32 %v4259_v63, %v3819_v8  ;;  %3841 = sbr.rel (%p4261_p5) target bundleno = 4359 (0x1107), region = 128 }
0x1033   : > { %v3835_v10 = vadd.f32 %v4260_v1, %v3827_v9 }
0x1035   : > { %3837 = vst.msk [vmem:[#allocation2 + $0x8] sm:$0xff] %vm1119_vm2, %v3835_v10 }
0x1036   : > { %v4925_v11 = vld [vmem:[%s5819_s11 + $0x8] sm:$0xff]   ;;  %v4973_v15 = vmov 0.0   ;;  %v4926_v16 = vld [vmem:[%s5819_s11] sm:$0xff]   ;;  %vm4974_vm8 = vmmov 0   ;;  %v3842_v28 = vpack.c.bf16 %v3835_v10, %v3834_v7 }
0x1037   : > { %4667 = vmatprep.subr.bf16.mxu0 %v4973_v15  ;;  %4671 = vmatprep.mubr.msk.bf16.mxu0 %vm4974_vm8, %v4973_v15  ;;  %v4262_v30 = vld [vmem:[%s5820_s1] ss:$0 sm:$0xff] }
0x1038   : > { %4668 = vmatpush3.bf16.msra.mxu0 %v4925_v11 }
0x1039   : > { %4669 = vmatprep.subr.bf16.mxu0 %v4973_v15 }
0x103c   : > { %4670 = vmatpush3.bf16.msra.mxu0 %v4926_v16 }
0x103f   : > { %4672 = vmatmul.mubr.msk.bf16.vlgmr.msra.gmra.mxu0 %vm1119_vm2, %v3842_v28 }
0x10ff   : > { %v3903_v18 = vpop.f32.mrf.mxu0 }
0x1100   : > { %v3904_v19 = vadd.f32 %v4262_v30, %v3903_v18 }
0x1101   : > { %v4673_v20 = vpop.f32.mrf.mxu0 }
0x1102   : > { %3910 = vst [vmem:[#allocation3] sm:$0xff] %v3904_v19 }
0x1103   : > { %v3906_v21 = vpop.f32.mrf.mxu0 }
0x1104   : > { %v3907_v22 = vadd.f32 %v4262_v30, %v3906_v21 }
0x1105   : > { %v4674_v23 = vpop.f32.mrf.mxu0 }
0x1106   : > { %3911 = vst [vmem:[#allocation3 + $0x8] sm:$0xff] %v3907_v22 }
0x1107 PF: > { %s5821_s13 = sld [smem:[#allocation7_spill]]  ;;  %s4975_s0 = smov [#allocation3]  }
0x1108   : > { %s3918_s10 = sshll.u32 %s4975_s0, 4  ;;  %s3919_s10 = int_to_ptr.vmem [resolvable:$true] %s3918_s10 }
0x1109   : > { %s4927_s29 = scalar_lea.vmem %s3919_s10, 256  ;;  %p4934_p10 = scmp.lt.s32.totalorder %s3919_s10, %s3919_s10 }
0x110a   : > { %p4928_p7 = scmp.ne.s32.totalorder %s3919_s10, %s4927_s29  ;;  %p4935_p11 = scmp.lt.s32.totalorder %s4927_s29, %s4927_s29 }
0x110c   : > { %p4936_p12 = por %p4935_p11, %p4934_p10 }
0x110d   : > { %p4679_p6 = scmp.eq.s32.totalorder %s5821_s13, 1 }
0x110f   : > { %p4929_p8 = pnand %p4928_p7, %p4679_p6 }
0x1111   : > { %p4930_p9 = pneg %p4929_p8 }
0x1113   : > { %p4937_p13 = pnand %p4936_p12, %p4930_p9 }
0x1115   : > { %4940 = shalt.err (!%p4937_p13)
}
0x1116   : > { %s4976_s27 = smov 128   ;;  %s5822_s22 = sld [smem:[#allocation29_spill]] }
0x111c   : > { %4676 = dma.vmem_to_hbm [thread:$0]  (%p4679_p6), %s3919_s10, 256, %s5822_s22, [#allocation4], %s4976_s27, %s4976_s27, %s4969_s30  }
0x111d   : > { %4956 = dma.done.wait (%p4679_p6), [#allocation4], 256  }
0x111e   : > { %4958 = vsyncadd (%p4679_p6), [#allocation4], 4294967040 }
0x111f PF: > { %s5823_s28 = sld [smem:[#allocation6_spill]] }
0x1125   : > { %s36_s29 = sadd.s32 1, %s5823_s28  }
0x1126   : > { %p33_p0 = scmp.ge.s32.totalorder %s36_s29, 4  }
0x1128   :  { %35 = sbr.rel (!%p33_p0) target bundleno = 21 (0x15), region = 212 }
0x112d   :  { %3934 = vsyncpa [#allocation4], 1 }
0x112e   :  { %3936 = vsyncpa [#allocation4 + $0x1], 1 }

</bundles_post_ra>
